<compile_context>
chip_gen: v5e
topology: v5e:2x2
jax: 0.10.0
libtpu: 0.0.40
codegen_flags: <defaults>
</compile_context>

<pallas_src>
import jax
import jax.numpy as jnp
from jax.experimental import pallas as pl
from jax.experimental.pallas import tpu as pltpu


def _make_decoder_kernel(n_layers, hidden, tb, num_chunks, mm_dtype):
    """Kernel body factory; layer count / tile sizes / dtypes are static."""
    h3 = 3 * hidden

    def kernel(maxlen_ref, pg_ref, lens_ref, whh0_ref, *rest):
        # rest = [w_cat_1, b_1, ..., w_cat_{L-1}, b_{L-1},
        #         fc1_w, fc1_b, fc2_w, fc2_b, o_ref, h_scr, c_scr]
        layer_refs = rest[: 2 * (n_layers - 1)]
        (fc1_w_ref, fc1_b_ref, fc2_w_ref, fc2_b_ref,
         o_ref, h_scr, c_scr) = rest[2 * (n_layers - 1):]

        chunk = pl.program_id(0)
        t0 = chunk * tb
        maxlen = maxlen_ref[0]                       # SMEM scalar (prefetched)
        lens = lens_ref[...]                         # (Np, 1) int32, clamped to <= T

        @pl.when(chunk == 0)
        def _init():                                 # torch "None" initial state
            h_scr[...] = jnp.zeros_like(h_scr)
            c_scr[...] = jnp.zeros_like(c_scr)

        # Skip time chunks entirely past max(lengths): no wasted MXU/EUP work.
        @pl.when(t0 < maxlen)
        def _work():
            def step(tt, carry):
                active = (t0 + tt) < lens            # (Np,1): packed-sequence masking
                layer_in = None
                for l in range(n_layers):
                    h_prev = h_scr[l]                # (Np, H) f32
                    c_prev = c_scr[l]
                    if l == 0:
                        # input projection hoisted to the wrapper's big GEMM
                        gates = (pg_ref[tt].astype(jnp.float32)
                                 + jnp.dot(h_prev.astype(mm_dtype), whh0_ref[...],
                                           preferred_element_type=jnp.float32))
                    else:
                        w_cat = layer_refs[2 * (l - 1)][...]       # (2H, 4H)
                        b = layer_refs[2 * (l - 1) + 1][...]       # (1, 4H) f32
                        xin = jnp.concatenate([layer_in, h_prev],
                                              axis=-1).astype(mm_dtype)
                        gates = (jnp.dot(xin, w_cat,
                                         preferred_element_type=jnp.float32) + b)
                    # columns permuted in wrapper to (i, f, o, g):
                    # one fused sigmoid over a contiguous 3H slab via the tanh form.
                    sig = 0.5 * jnp.tanh(0.5 * gates[:, :h3]) + 0.5
                    i_g = sig[:, 0 * hidden:1 * hidden]
                    f_g = sig[:, 1 * hidden:2 * hidden]
                    o_g = sig[:, 2 * hidden:3 * hidden]
                    g_g = jnp.tanh(gates[:, h3:])
                    c_new = f_g * c_prev + i_g * g_g
                    h_new = o_g * jnp.tanh(c_new)
                    # finished sequences keep a frozen state (pack_padded semantics)
                    c_upd = jnp.where(active, c_new, c_prev)
                    h_upd = jnp.where(active, h_new, h_prev)
                    c_scr[l] = c_upd
                    h_scr[l] = h_upd
                    layer_in = h_upd
                return carry

            jax.lax.fori_loop(0, tb, step, 0, unroll=True)

        @pl.when(chunk == num_chunks - 1)
        def _finalize():
            # RNN_out[:, -1, :] after pad_packed_sequence: last hidden state only for
            # rows of maximal (clamped) length; zero padding for shorter rows.
            # TODO(synk): if the source ever used pad_packed_sequence(total_length=T),
            # this mask would need revisiting.
            feat = jnp.where(lens == maxlen, h_scr[n_layers - 1], 0.0)
            hid = jnp.maximum(
                jnp.dot(feat.astype(mm_dtype), fc1_w_ref[...],
                        preferred_element_type=jnp.float32) + fc1_b_ref[...], 0.0)
            # TODO(synk): F.dropout(p=0.3) is identity at inference; training-mode RNG
            # is not implemented.
            logits = (jnp.dot(hid.astype(mm_dtype), fc2_w_ref[...],
                              preferred_element_type=jnp.float32) + fc2_b_ref[...])
            o_ref[...] = logits.astype(o_ref.dtype)

    return kernel


def decoder_rnn_varlen(x_rnn, x_lengths, lstm_params, fc1, fc2, *,
                       time_block=8, matmul_dtype=jnp.float32):
    """Forward pass of DecoderRNN_varlen (inference).

    x_rnn:       (N, T, D) float32
    x_lengths:   (N,) int
    lstm_params: list of (w_ih (in_dim, 4H), w_hh (H, 4H), b (1, 4H)) per layer,
                 PyTorch (i, f, g, o) gate column order
    fc1:         (w (H, F), b (1, F));  fc2: (w (F, C), b (1, C))
    returns:     (N, C) float32 logits
    """
    N, T, D = x_rnn.shape
    n_layers = len(lstm_params)
    H = lstm_params[0][1].shape[0]
    F_dim = fc1[0].shape[1]
    C_out = fc2[0].shape[1]

    tb = max(1, min(int(time_block), T))
    num_chunks = -(-T // tb)
    T_pad = num_chunks * tb
    N_pad = -(-N // 8) * 8                  # sublane-dense batch tiles
    C_pad = -(-C_out // 128) * 128          # lane-dense (unmasked store) output

    # ---- one-off XLA-side preprocessing -------------------------------------
    lens = jnp.minimum(x_lengths.astype(jnp.int32), jnp.int32(T))     # clamp to T
    maxlen = jnp.max(lens).reshape(1).astype(jnp.int32)               # SMEM prefetch
    lens_pad = jnp.zeros((N_pad, 1), jnp.int32).at[:N, 0].set(lens)   # pad rows inactive

    def perm_cols(w):                       # PyTorch (i, f, g, o) -> (i, f, o, g)
        return jnp.concatenate(
            [w[..., 0:H], w[..., H:2 * H], w[..., 3 * H:4 * H], w[..., 2 * H:3 * H]],
            axis=-1)

    w_ih0, w_hh0, b0 = lstm_params[0]
    w_ih0p = perm_cols(w_ih0.astype(jnp.float32))
    b0p = perm_cols(b0.astype(jnp.float32))
    w_hh0p = perm_cols(w_hh0).astype(matmul_dtype)

    # Hoisted layer-0 input projection: one (N*T, D) x (D, 4H) GEMM instead of T tiny
    # matmuls on the serial critical path; stored time-major for per-chunk streaming.
    pre = (x_rnn.astype(jnp.float32).reshape(N * T, D) @ w_ih0p + b0p)
    pre = pre.reshape(N, T, 4 * H)
    pre = jnp.pad(pre, ((0, N_pad - N), (0, T_pad - T), (0, 0)))
    pre_t = jnp.transpose(pre, (1, 0, 2)).astype(matmul_dtype)        # (T_pad, Np, 4H)
    # (in-place zeroing of the padded x tail in the PyTorch code is unnecessary:
    #  masked state updates make padded steps no-ops.)

    # Layers >= 1: fuse the two per-step matmuls by stacking [W_ih; W_hh].
    layer_ws = []
    for (w_ih, w_hh, b) in lstm_params[1:]:
        layer_ws.append(
            perm_cols(jnp.concatenate([w_ih, w_hh], axis=0)).astype(matmul_dtype))
        layer_ws.append(perm_cols(b).astype(jnp.float32))

    fc1_w = fc1[0].astype(matmul_dtype)
    fc1_b = fc1[1].astype(jnp.float32)
    fc2_w = jnp.pad(fc2[0], ((0, 0), (0, C_pad - C_out))).astype(matmul_dtype)
    fc2_b = jnp.pad(fc2[1], ((0, 0), (0, C_pad - C_out))).astype(jnp.float32)

    inputs = [maxlen, pre_t, lens_pad, w_hh0p] + layer_ws + [fc1_w, fc1_b, fc2_w, fc2_b]

    const2 = lambda c, m: (0, 0)            # resident (constant block index) inputs
    in_specs = [
        pl.BlockSpec((tb, N_pad, 4 * H), lambda c, m: (c, 0, 0)),   # streamed pre-gates
        pl.BlockSpec((N_pad, 1), const2),                           # lengths
        pl.BlockSpec(w_hh0p.shape, const2),
    ]
    for arr in layer_ws + [fc1_w, fc1_b, fc2_w, fc2_b]:
        # TODO(synk): at production sizes (h_RNN=512, 3 layers) add
        # pipeline_mode=pl.Buffered(1) so resident weights are single-buffered
        # (matters on v7x's 64 MiB VMEM); irrelevant at these test sizes.
        in_specs.append(pl.BlockSpec(arr.shape, const2))

    # Advisory cost estimate (weights resident; streamed bytes are the pre-gates).
    flops = (2 * N_pad * H * 4 * H
             + (n_layers - 1) * 2 * N_pad * (2 * H) * 4 * H) * T_pad \
        + 2 * N_pad * (H * F_dim + F_dim * C_pad)
    transcendentals = T_pad * n_layers * N_pad * 5 * H
    bytes_accessed = int(sum(int(a.size) * a.dtype.itemsize for a in inputs)
                         + N_pad * C_pad * 4)

    out_full = pl.pallas_call(
        _make_decoder_kernel(n_layers, H, tb, num_chunks, matmul_dtype),
        out_shape=jax.ShapeDtypeStruct((N_pad, C_pad), jnp.float32),
        grid_spec=pltpu.PrefetchScalarGridSpec(
            num_scalar_prefetch=1,
            grid=(num_chunks,),
            in_specs=in_specs,
            out_specs=pl.BlockSpec((N_pad, C_pad), const2),
            scratch_shapes=[
                pltpu.VMEM((n_layers, N_pad, H), jnp.float32),   # h, carried over chunks
                pltpu.VMEM((n_layers, N_pad, H), jnp.float32),   # c, carried over chunks
            ]),
        compiler_params=pltpu.CompilerParams(
            # Time recurrence is strictly sequential.
            # TODO(synk): on v7x a leading size-2 "parallel" batch-split grid axis would
            # use both TensorCores; omitted to keep the single-TC path simple.
            dimension_semantics=("arbitrary",),
            vmem_limit_bytes=48 * 1024 * 1024),
        cost_estimate=pl.CostEstimate(flops=int(flops),
                                      transcendentals=int(transcendentals),
                                      bytes_accessed=int(bytes_accessed)),
    )(*inputs)

    return out_full[:N, :C_out]


def _reference_forward(x_rnn, x_lengths, lstm_params, fc1, fc2):
    """Pure-JAX reference implementing the same packed-LSTM semantics."""
    N, T, D = x_rnn.shape
    H = lstm_params[0][1].shape[0]
    lens = jnp.minimum(x_lengths.astype(jnp.int32), T).reshape(N, 1)
    maxlen = jnp.max(lens)
    h = [jnp.zeros((N, H), jnp.float32) for _ in lstm_params]
    c = [jnp.zeros((N, H), jnp.float32) for _ in lstm_params]
    for t in range(T):
        active = t < lens
        inp = x_rnn[:, t, :].astype(jnp.float32)
        for l, (w_ih, w_hh, b) in enumerate(lstm_params):
            gates = inp @ w_ih + h[l] @ w_hh + b
            i_g = jax.nn.sigmoid(gates[:, 0 * H:1 * H])
            f_g = jax.nn.sigmoid(gates[:, 1 * H:2 * H])
            g_g = jnp.tanh(gates[:, 2 * H:3 * H])
            o_g = jax.nn.sigmoid(gates[:, 3 * H:4 * H])
            c_new = f_g * c[l] + i_g * g_g
            h_new = o_g * jnp.tanh(c_new)
            c[l] = jnp.where(active, c_new, c[l])
            h[l] = jnp.where(active, h_new, h[l])
            inp = h[l]
    feat = jnp.where(lens == maxlen, h[-1], 0.0)
    hid = jnp.maximum(feat @ fc1[0] + fc1[1], 0.0)
    return hid @ fc2[0] + fc2[1]


if __name__ == "__main__":
    key = jax.random.PRNGKey(0)

    # Small shapes consistent with the module's forward.
    N, T, D = 3, 24, 32            # batch, seq len, CNN_embed_dim
    H, F_dim, C_out = 32, 32, 16   # h_RNN, h_FC_dim, num_classes
    n_layers = 3                   # h_RNN_layers (module default)

    keys = jax.random.split(key, 3 * n_layers + 5)
    k_iter = iter(keys)
    scale = 0.1

    lstm_params = []
    in_dim = D
    for _ in range(n_layers):
        w_ih = scale * jax.random.normal(next(k_iter), (in_dim, 4 * H), jnp.float32)
        w_hh = scale * jax.random.normal(next(k_iter), (H, 4 * H), jnp.float32)
        b = scale * jax.random.normal(next(k_iter), (1, 4 * H), jnp.float32)
        lstm_params.append((w_ih, w_hh, b))
        in_dim = H

    fc1 = (scale * jax.random.normal(next(k_iter), (H, F_dim), jnp.float32),
           scale * jax.random.normal(next(k_iter), (1, F_dim), jnp.float32))
    fc2 = (scale * jax.random.normal(next(k_iter), (F_dim, C_out), jnp.float32),
           scale * jax.random.normal(next(k_iter), (1, C_out), jnp.float32))

    x = jax.random.normal(next(k_iter), (N, T, D), jnp.float32)

    # Case A: over-long sequence (clamped 30 -> 24) + two shorter (tests masking and
    #         the "only max-length rows contribute RNN_out[:, -1, :]" behavior).
    lens_a = jnp.array([30, 10, 5], dtype=jnp.int32)
    # Case B: max(len)=10 < 16 -> the last time chunk is skipped entirely in-kernel.
    lens_b = jnp.array([10, 5, 3], dtype=jnp.int32)

    out_a = jax.block_until_ready(decoder_rnn_varlen(x, lens_a, lstm_params, fc1, fc2))
    out_b = jax.block_until_ready(decoder_rnn_varlen(x, lens_b, lstm_params, fc1, fc2))
    ref_a = _reference_forward(x, lens_a, lstm_params, fc1, fc2)
    ref_b = _reference_forward(x, lens_b, lstm_params, fc1, fc2)

    assert out_a.shape == (N, C_out), out_a.shape
    assert jnp.allclose(out_a, ref_a, atol=2e-4, rtol=2e-4), (out_a, ref_a)
    assert jnp.allclose(out_b, ref_b, atol=2e-4, rtol=2e-4), (out_b, ref_b)

    # Case C: bf16 MXU operands (f32 accumulation, f32 state / elementwise math).
    out_c = jax.block_until_ready(
        decoder_rnn_varlen(x, lens_a, lstm_params, fc1, fc2,
                           matmul_dtype=jnp.bfloat16))
    assert out_c.shape == (N, C_out), out_c.shape
    assert jnp.allclose(out_c, ref_a, atol=5e-2, rtol=5e-2), (out_c, ref_a)

    print("KERNEL_OK")
</pallas_src>

<mosaic_0001>
module attributes {stable_mosaic.version = 11 : i64} {
  func.func @kernel(%arg0: i32, %arg1: memref<1xi32, #tpu.memory_space<smem>>, %arg2: memref<8x8x128xf32, #tpu.memory_space<vmem>>, %arg3: memref<8x1xi32, #tpu.memory_space<vmem>>, %arg4: memref<32x128xf32, #tpu.memory_space<vmem>>, %arg5: memref<64x128xf32, #tpu.memory_space<vmem>>, %arg6: memref<1x128xf32, #tpu.memory_space<vmem>>, %arg7: memref<64x128xf32, #tpu.memory_space<vmem>>, %arg8: memref<1x128xf32, #tpu.memory_space<vmem>>, %arg9: memref<32x32xf32, #tpu.memory_space<vmem>>, %arg10: memref<1x32xf32, #tpu.memory_space<vmem>>, %arg11: memref<32x128xf32, #tpu.memory_space<vmem>>, %arg12: memref<1x128xf32, #tpu.memory_space<vmem>>, %arg13: memref<8x128xf32, #tpu.memory_space<vmem>>, %arg14: memref<3x8x32xf32, #tpu.memory_space<vmem>>, %arg15: memref<3x8x32xf32, #tpu.memory_space<vmem>>) attributes {dimension_semantics = [#tpu.dimension_semantics<arbitrary>], iteration_bounds = array<i64: 3>, scalar_prefetch = 1 : i64, scratch_operands = 2 : i64, tpu.core_type = #tpu.core_type<tc>, window_params = [{transform_indices = @transform_0, window_bounds = array<i64: 8, 8, 128>}, {pipeline_mode = #tpu.pipeline_mode<synchronous>, transform_indices = @transform_1, window_bounds = array<i64: 8, 1>}, {pipeline_mode = #tpu.pipeline_mode<synchronous>, transform_indices = @transform_2, window_bounds = array<i64: 32, 128>}, {pipeline_mode = #tpu.pipeline_mode<synchronous>, transform_indices = @transform_3, window_bounds = array<i64: 64, 128>}, {pipeline_mode = #tpu.pipeline_mode<synchronous>, transform_indices = @transform_4, window_bounds = array<i64: 1, 128>}, {pipeline_mode = #tpu.pipeline_mode<synchronous>, transform_indices = @transform_5, window_bounds = array<i64: 64, 128>}, {pipeline_mode = #tpu.pipeline_mode<synchronous>, transform_indices = @transform_6, window_bounds = array<i64: 1, 128>}, {pipeline_mode = #tpu.pipeline_mode<synchronous>, transform_indices = @transform_7, window_bounds = array<i64: 32, 32>}, {pipeline_mode = #tpu.pipeline_mode<synchronous>, transform_indices = @transform_8, window_bounds = array<i64: 1, 32>}, {pipeline_mode = #tpu.pipeline_mode<synchronous>, transform_indices = @transform_9, window_bounds = array<i64: 32, 128>}, {pipeline_mode = #tpu.pipeline_mode<synchronous>, transform_indices = @transform_10, window_bounds = array<i64: 1, 128>}, {pipeline_mode = #tpu.pipeline_mode<synchronous>, transform_indices = @transform_11, window_bounds = array<i64: 8, 128>}]} {
    %c8_i32 = arith.constant 8 : i32
    %0 = arith.muli %arg0, %c8_i32 : i32
    %c0 = arith.constant 0 : index
    %1 = memref.load %arg1[%c0] : memref<1xi32, #tpu.memory_space<smem>>
    %c0_0 = arith.constant 0 : index
    %c0_1 = arith.constant 0 : index
    %2 = vector.load %arg3[%c0_0, %c0_1] : memref<8x1xi32, #tpu.memory_space<vmem>>, vector<8x1xi32>
    %c0_i32 = arith.constant 0 : i32
    %3 = arith.cmpi eq, %arg0, %c0_i32 : i32
    %4 = arith.extui %3 : i1 to i32
    %c0_i32_2 = arith.constant 0 : i32
    %5 = arith.cmpi ne, %4, %c0_i32_2 : i32
    scf.if %5 {
      %cst = arith.constant 0.000000e+00 : f32
      %12 = vector.broadcast %cst : f32 to vector<3x8x32xf32>
      %c0_5 = arith.constant 0 : index
      %c0_6 = arith.constant 0 : index
      %c0_7 = arith.constant 0 : index
      %13 = vector.load %arg14[%c0_5, %c0_6, %c0_7] : memref<3x8x32xf32, #tpu.memory_space<vmem>>, vector<3x8x32xf32>
      tpu.vector_store %arg14[%c0_5, %c0_6, %c0_7], %12 {strides = array<i32>} : memref<3x8x32xf32, #tpu.memory_space<vmem>>, vector<3x8x32xf32>,
      %cst_8 = arith.constant 0.000000e+00 : f32
      %14 = vector.broadcast %cst_8 : f32 to vector<3x8x32xf32>
      %c0_9 = arith.constant 0 : index
      %c0_10 = arith.constant 0 : index
      %c0_11 = arith.constant 0 : index
      %15 = vector.load %arg15[%c0_9, %c0_10, %c0_11] : memref<3x8x32xf32, #tpu.memory_space<vmem>>, vector<3x8x32xf32>
      tpu.vector_store %arg15[%c0_9, %c0_10, %c0_11], %14 {strides = array<i32>} : memref<3x8x32xf32, #tpu.memory_space<vmem>>, vector<3x8x32xf32>,
    } else {
    }
    %6 = arith.cmpi slt, %0, %1 : i32
    %7 = arith.extui %6 : i1 to i32
    %c0_i32_3 = arith.constant 0 : i32
    %8 = arith.cmpi ne, %7, %c0_i32_3 : i32
    scf.if %8 {
      %c0_i32_5 = arith.constant 0 : i32
      %12 = arith.addi %0, %c0_i32_5 : i32
      %13 = vector.broadcast %12 : i32 to vector<8x1xi32>
      %14 = arith.cmpi slt, %13, %2 : vector<8x1xi32>
      %c0_6 = arith.constant 0 : index
      %c0_7 = arith.constant 0 : index
      %c0_8 = arith.constant 0 : index
      %15 = vector.load %arg14[%c0_6, %c0_7, %c0_8] : memref<3x8x32xf32, #tpu.memory_space<vmem>>, vector<1x8x32xf32>
      %16 = vector.shape_cast %15 : vector<1x8x32xf32> to vector<8x32xf32>
      %c0_9 = arith.constant 0 : index
      %c0_10 = arith.constant 0 : index
      %c0_11 = arith.constant 0 : index
      %17 = vector.load %arg15[%c0_9, %c0_10, %c0_11] : memref<3x8x32xf32, #tpu.memory_space<vmem>>, vector<1x8x32xf32>
      %18 = vector.shape_cast %17 : vector<1x8x32xf32> to vector<8x32xf32>
      %19 = arith.index_cast %c0_i32_5 : i32 to index
      %c0_12 = arith.constant 0 : index
      %c0_13 = arith.constant 0 : index
      %20 = vector.load %arg2[%19, %c0_12, %c0_13] : memref<8x8x128xf32, #tpu.memory_space<vmem>>, vector<1x8x128xf32>
      %21 = vector.shape_cast %20 : vector<1x8x128xf32> to vector<8x128xf32>
      %c0_14 = arith.constant 0 : index
      %c0_15 = arith.constant 0 : index
      %22 = vector.load %arg4[%c0_14, %c0_15] : memref<32x128xf32, #tpu.memory_space<vmem>>, vector<32x128xf32>
      %cst = arith.constant dense<0.000000e+00> : vector<8x128xf32>
      %23 = tpu.matmul %16, %22, %cst {dimension_numbers = #tpu.dot_dimension_numbers<[1], [0], [0], [1], [0, 0, 1, 1], [], []>} : vector<8x32xf32>, vector<32x128xf32>, vector<8x128xf32> -> vector<8x128xf32>
      %24 = arith.addf %21, %23 : vector<8x128xf32>
      %25 = vector.extract_strided_slice %24 {offsets = [0, 0], sizes = [8, 96], strides = [1, 1]} : vector<8x128xf32> to vector<8x96xf32>
      %cst_16 = arith.constant 5.000000e-01 : f32
      %26 = vector.broadcast %cst_16 : f32 to vector<8x96xf32>
      %27 = arith.mulf %26, %25 : vector<8x96xf32>
      %28 = math.tanh %27 : vector<8x96xf32>
      %cst_17 = arith.constant 5.000000e-01 : f32
      %29 = vector.broadcast %cst_17 : f32 to vector<8x96xf32>
      %30 = arith.mulf %29, %28 : vector<8x96xf32>
      %cst_18 = arith.constant 5.000000e-01 : f32
      %31 = vector.broadcast %cst_18 : f32 to vector<8x96xf32>
      %32 = arith.addf %30, %31 : vector<8x96xf32>
      %33 = vector.extract_strided_slice %32 {offsets = [0, 0], sizes = [8, 32], strides = [1, 1]} : vector<8x96xf32> to vector<8x32xf32>
      %34 = vector.extract_strided_slice %32 {offsets = [0, 32], sizes = [8, 32], strides = [1, 1]} : vector<8x96xf32> to vector<8x32xf32>
      %35 = vector.extract_strided_slice %32 {offsets = [0, 64], sizes = [8, 32], strides = [1, 1]} : vector<8x96xf32> to vector<8x32xf32>
      %36 = vector.extract_strided_slice %24 {offsets = [0, 96], sizes = [8, 32], strides = [1, 1]} : vector<8x128xf32> to vector<8x32xf32>
      %37 = math.tanh %36 : vector<8x32xf32>
      %38 = arith.mulf %34, %18 : vector<8x32xf32>
      %39 = arith.mulf %33, %37 : vector<8x32xf32>
      %40 = arith.addf %38, %39 : vector<8x32xf32>
      %41 = math.tanh %40 : vector<8x32xf32>
      %42 = arith.mulf %35, %41 : vector<8x32xf32>
      %43 = vector.shape_cast %14 : vector<8x1xi1> to vector<8x1xi1>
      %44 = vector.broadcast %43 : vector<8x1xi1> to vector<8x32xi1>
      %45 = arith.select %44, %40, %18 : vector<8x32xi1>, vector<8x32xf32>
      %46 = vector.shape_cast %14 : vector<8x1xi1> to vector<8x1xi1>
      %47 = vector.broadcast %46 : vector<8x1xi1> to vector<8x32xi1>
      %48 = arith.select %47, %42, %16 : vector<8x32xi1>, vector<8x32xf32>
      %c0_19 = arith.constant 0 : index
      %c0_20 = arith.constant 0 : index
      %c0_21 = arith.constant 0 : index
      %49 = vector.load %arg15[%c0_19, %c0_20, %c0_21] : memref<3x8x32xf32, #tpu.memory_space<vmem>>, vector<1x8x32xf32>
      %50 = vector.shape_cast %49 : vector<1x8x32xf32> to vector<8x32xf32>
      %51 = vector.shape_cast %45 : vector<8x32xf32> to vector<1x8x32xf32>
      tpu.vector_store %arg15[%c0_19, %c0_20, %c0_21], %51 {strides = array<i32>} : memref<3x8x32xf32, #tpu.memory_space<vmem>>, vector<1x8x32xf32>,
      %c0_22 = arith.constant 0 : index
      %c0_23 = arith.constant 0 : index
      %c0_24 = arith.constant 0 : index
      %52 = vector.load %arg14[%c0_22, %c0_23, %c0_24] : memref<3x8x32xf32, #tpu.memory_space<vmem>>, vector<1x8x32xf32>
      %53 = vector.shape_cast %52 : vector<1x8x32xf32> to vector<8x32xf32>
      %54 = vector.shape_cast %48 : vector<8x32xf32> to vector<1x8x32xf32>
      tpu.vector_store %arg14[%c0_22, %c0_23, %c0_24], %54 {strides = array<i32>} : memref<3x8x32xf32, #tpu.memory_space<vmem>>, vector<1x8x32xf32>,
      %c1 = arith.constant 1 : index
      %c0_25 = arith.constant 0 : index
      %c0_26 = arith.constant 0 : index
      %55 = vector.load %arg14[%c1, %c0_25, %c0_26] : memref<3x8x32xf32, #tpu.memory_space<vmem>>, vector<1x8x32xf32>
      %56 = vector.shape_cast %55 : vector<1x8x32xf32> to vector<8x32xf32>
      %c1_27 = arith.constant 1 : index
      %c0_28 = arith.constant 0 : index
      %c0_29 = arith.constant 0 : index
      %57 = vector.load %arg15[%c1_27, %c0_28, %c0_29] : memref<3x8x32xf32, #tpu.memory_space<vmem>>, vector<1x8x32xf32>
      %58 = vector.shape_cast %57 : vector<1x8x32xf32> to vector<8x32xf32>
      %c0_30 = arith.constant 0 : index
      %c0_31 = arith.constant 0 : index
      %59 = vector.load %arg5[%c0_30, %c0_31] : memref<64x128xf32, #tpu.memory_space<vmem>>, vector<64x128xf32>
      %c0_32 = arith.constant 0 : index
      %c0_33 = arith.constant 0 : index
      %60 = vector.load %arg6[%c0_32, %c0_33] : memref<1x128xf32, #tpu.memory_space<vmem>>, vector<1x128xf32>
      %61 = tpu.concatenate %48, %56 in 1 : vector<8x32xf32>, vector<8x32xf32> -> vector<8x64xf32>
      %cst_34 = arith.constant dense<0.000000e+00> : vector<8x128xf32>
      %62 = tpu.matmul %61, %59, %cst_34 {dimension_numbers = #tpu.dot_dimension_numbers<[1], [0], [0], [1], [0, 0, 1, 1], [], []>} : vector<8x64xf32>, vector<64x128xf32>, vector<8x128xf32> -> vector<8x128xf32>
      %63 = vector.broadcast %60 : vector<1x128xf32> to vector<8x128xf32>
      %64 = arith.addf %62, %63 : vector<8x128xf32>
      %65 = vector.extract_strided_slice %64 {offsets = [0, 0], sizes = [8, 96], strides = [1, 1]} : vector<8x128xf32> to vector<8x96xf32>
      %cst_35 = arith.constant 5.000000e-01 : f32
      %66 = vector.broadcast %cst_35 : f32 to vector<8x96xf32>
      %67 = arith.mulf %66, %65 : vector<8x96xf32>
      %68 = math.tanh %67 : vector<8x96xf32>
      %cst_36 = arith.constant 5.000000e-01 : f32
      %69 = vector.broadcast %cst_36 : f32 to vector<8x96xf32>
      %70 = arith.mulf %69, %68 : vector<8x96xf32>
      %cst_37 = arith.constant 5.000000e-01 : f32
      %71 = vector.broadcast %cst_37 : f32 to vector<8x96xf32>
      %72 = arith.addf %70, %71 : vector<8x96xf32>
      %73 = vector.extract_strided_slice %72 {offsets = [0, 0], sizes = [8, 32], strides = [1, 1]} : vector<8x96xf32> to vector<8x32xf32>
      %74 = vector.extract_strided_slice %72 {offsets = [0, 32], sizes = [8, 32], strides = [1, 1]} : vector<8x96xf32> to vector<8x32xf32>
      %75 = vector.extract_strided_slice %72 {offsets = [0, 64], sizes = [8, 32], strides = [1, 1]} : vector<8x96xf32> to vector<8x32xf32>
      %76 = vector.extract_strided_slice %64 {offsets = [0, 96], sizes = [8, 32], strides = [1, 1]} : vector<8x128xf32> to vector<8x32xf32>
      %77 = math.tanh %76 : vector<8x32xf32>
      %78 = arith.mulf %74, %58 : vector<8x32xf32>
      %79 = arith.mulf %73, %77 : vector<8x32xf32>
      %80 = arith.addf %78, %79 : vector<8x32xf32>
      %81 = math.tanh %80 : vector<8x32xf32>
      %82 = arith.mulf %75, %81 : vector<8x32xf32>
      %83 = vector.shape_cast %14 : vector<8x1xi1> to vector<8x1xi1>
      %84 = vector.broadcast %83 : vector<8x1xi1> to vector<8x32xi1>
      %85 = arith.select %84, %80, %58 : vector<8x32xi1>, vector<8x32xf32>
      %86 = vector.shape_cast %14 : vector<8x1xi1> to vector<8x1xi1>
      %87 = vector.broadcast %86 : vector<8x1xi1> to vector<8x32xi1>
      %88 = arith.select %87, %82, %56 : vector<8x32xi1>, vector<8x32xf32>
      %c1_38 = arith.constant 1 : index
      %c0_39 = arith.constant 0 : index
      %c0_40 = arith.constant 0 : index
      %89 = vector.load %arg15[%c1_38, %c0_39, %c0_40] : memref<3x8x32xf32, #tpu.memory_space<vmem>>, vector<1x8x32xf32>
      %90 = vector.shape_cast %89 : vector<1x8x32xf32> to vector<8x32xf32>
      %91 = vector.shape_cast %85 : vector<8x32xf32> to vector<1x8x32xf32>
      tpu.vector_store %arg15[%c1_38, %c0_39, %c0_40], %91 {strides = array<i32>} : memref<3x8x32xf32, #tpu.memory_space<vmem>>, vector<1x8x32xf32>,
      %c1_41 = arith.constant 1 : index
      %c0_42 = arith.constant 0 : index
      %c0_43 = arith.constant 0 : index
      %92 = vector.load %arg14[%c1_41, %c0_42, %c0_43] : memref<3x8x32xf32, #tpu.memory_space<vmem>>, vector<1x8x32xf32>
      %93 = vector.shape_cast %92 : vector<1x8x32xf32> to vector<8x32xf32>
      %94 = vector.shape_cast %88 : vector<8x32xf32> to vector<1x8x32xf32>
      tpu.vector_store %arg14[%c1_41, %c0_42, %c0_43], %94 {strides = array<i32>} : memref<3x8x32xf32, #tpu.memory_space<vmem>>, vector<1x8x32xf32>,
      %c2 = arith.constant 2 : index
      %c0_44 = arith.constant 0 : index
      %c0_45 = arith.constant 0 : index
      %95 = vector.load %arg14[%c2, %c0_44, %c0_45] : memref<3x8x32xf32, #tpu.memory_space<vmem>>, vector<1x8x32xf32>
      %96 = vector.shape_cast %95 : vector<1x8x32xf32> to vector<8x32xf32>
      %c2_46 = arith.constant 2 : index
      %c0_47 = arith.constant 0 : index
      %c0_48 = arith.constant 0 : index
      %97 = vector.load %arg15[%c2_46, %c0_47, %c0_48] : memref<3x8x32xf32, #tpu.memory_space<vmem>>, vector<1x8x32xf32>
      %98 = vector.shape_cast %97 : vector<1x8x32xf32> to vector<8x32xf32>
      %c0_49 = arith.constant 0 : index
      %c0_50 = arith.constant 0 : index
      %99 = vector.load %arg7[%c0_49, %c0_50] : memref<64x128xf32, #tpu.memory_space<vmem>>, vector<64x128xf32>
      %c0_51 = arith.constant 0 : index
      %c0_52 = arith.constant 0 : index
      %100 = vector.load %arg8[%c0_51, %c0_52] : memref<1x128xf32, #tpu.memory_space<vmem>>, vector<1x128xf32>
      %101 = tpu.concatenate %88, %96 in 1 : vector<8x32xf32>, vector<8x32xf32> -> vector<8x64xf32>
      %cst_53 = arith.constant dense<0.000000e+00> : vector<8x128xf32>
      %102 = tpu.matmul %101, %99, %cst_53 {dimension_numbers = #tpu.dot_dimension_numbers<[1], [0], [0], [1], [0, 0, 1, 1], [], []>} : vector<8x64xf32>, vector<64x128xf32>, vector<8x128xf32> -> vector<8x128xf32>
      %103 = vector.broadcast %100 : vector<1x128xf32> to vector<8x128xf32>
      %104 = arith.addf %102, %103 : vector<8x128xf32>
      %105 = vector.extract_strided_slice %104 {offsets = [0, 0], sizes = [8, 96], strides = [1, 1]} : vector<8x128xf32> to vector<8x96xf32>
      %cst_54 = arith.constant 5.000000e-01 : f32
      %106 = vector.broadcast %cst_54 : f32 to vector<8x96xf32>
      %107 = arith.mulf %106, %105 : vector<8x96xf32>
      %108 = math.tanh %107 : vector<8x96xf32>
      %cst_55 = arith.constant 5.000000e-01 : f32
      %109 = vector.broadcast %cst_55 : f32 to vector<8x96xf32>
      %110 = arith.mulf %109, %108 : vector<8x96xf32>
      %cst_56 = arith.constant 5.000000e-01 : f32
      %111 = vector.broadcast %cst_56 : f32 to vector<8x96xf32>
      %112 = arith.addf %110, %111 : vector<8x96xf32>
      %113 = vector.extract_strided_slice %112 {offsets = [0, 0], sizes = [8, 32], strides = [1, 1]} : vector<8x96xf32> to vector<8x32xf32>
      %114 = vector.extract_strided_slice %112 {offsets = [0, 32], sizes = [8, 32], strides = [1, 1]} : vector<8x96xf32> to vector<8x32xf32>
      %115 = vector.extract_strided_slice %112 {offsets = [0, 64], sizes = [8, 32], strides = [1, 1]} : vector<8x96xf32> to vector<8x32xf32>
      %116 = vector.extract_strided_slice %104 {offsets = [0, 96], sizes = [8, 32], strides = [1, 1]} : vector<8x128xf32> to vector<8x32xf32>
      %117 = math.tanh %116 : vector<8x32xf32>
      %118 = arith.mulf %114, %98 : vector<8x32xf32>
      %119 = arith.mulf %113, %117 : vector<8x32xf32>
      %120 = arith.addf %118, %119 : vector<8x32xf32>
      %121 = math.tanh %120 : vector<8x32xf32>
      %122 = arith.mulf %115, %121 : vector<8x32xf32>
      %123 = vector.shape_cast %14 : vector<8x1xi1> to vector<8x1xi1>
      %124 = vector.broadcast %123 : vector<8x1xi1> to vector<8x32xi1>
      %125 = arith.select %124, %120, %98 : vector<8x32xi1>, vector<8x32xf32>
      %126 = vector.shape_cast %14 : vector<8x1xi1> to vector<8x1xi1>
      %127 = vector.broadcast %126 : vector<8x1xi1> to vector<8x32xi1>
      %128 = arith.select %127, %122, %96 : vector<8x32xi1>, vector<8x32xf32>
      %c2_57 = arith.constant 2 : index
      %c0_58 = arith.constant 0 : index
      %c0_59 = arith.constant 0 : index
      %129 = vector.load %arg15[%c2_57, %c0_58, %c0_59] : memref<3x8x32xf32, #tpu.memory_space<vmem>>, vector<1x8x32xf32>
      %130 = vector.shape_cast %129 : vector<1x8x32xf32> to vector<8x32xf32>
      %131 = vector.shape_cast %125 : vector<8x32xf32> to vector<1x8x32xf32>
      tpu.vector_store %arg15[%c2_57, %c0_58, %c0_59], %131 {strides = array<i32>} : memref<3x8x32xf32, #tpu.memory_space<vmem>>, vector<1x8x32xf32>,
      %c2_60 = arith.constant 2 : index
      %c0_61 = arith.constant 0 : index
      %c0_62 = arith.constant 0 : index
      %132 = vector.load %arg14[%c2_60, %c0_61, %c0_62] : memref<3x8x32xf32, #tpu.memory_space<vmem>>, vector<1x8x32xf32>
      %133 = vector.shape_cast %132 : vector<1x8x32xf32> to vector<8x32xf32>
      %134 = vector.shape_cast %128 : vector<8x32xf32> to vector<1x8x32xf32>
      tpu.vector_store %arg14[%c2_60, %c0_61, %c0_62], %134 {strides = array<i32>} : memref<3x8x32xf32, #tpu.memory_space<vmem>>, vector<1x8x32xf32>,
      %c1_i32 = arith.constant 1 : i32
      %135 = arith.addi %0, %c1_i32 : i32
      %136 = vector.broadcast %135 : i32 to vector<8x1xi32>
      %137 = arith.cmpi slt, %136, %2 : vector<8x1xi32>
      %c0_63 = arith.constant 0 : index
      %c0_64 = arith.constant 0 : index
      %c0_65 = arith.constant 0 : index
      %138 = vector.load %arg14[%c0_63, %c0_64, %c0_65] : memref<3x8x32xf32, #tpu.memory_space<vmem>>, vector<1x8x32xf32>
      %139 = vector.shape_cast %138 : vector<1x8x32xf32> to vector<8x32xf32>
      %c0_66 = arith.constant 0 : index
      %c0_67 = arith.constant 0 : index
      %c0_68 = arith.constant 0 : index
      %140 = vector.load %arg15[%c0_66, %c0_67, %c0_68] : memref<3x8x32xf32, #tpu.memory_space<vmem>>, vector<1x8x32xf32>
      %141 = vector.shape_cast %140 : vector<1x8x32xf32> to vector<8x32xf32>
      %142 = arith.index_cast %c1_i32 : i32 to index
      %c0_69 = arith.constant 0 : index
      %c0_70 = arith.constant 0 : index
      %143 = vector.load %arg2[%142, %c0_69, %c0_70] : memref<8x8x128xf32, #tpu.memory_space<vmem>>, vector<1x8x128xf32>
      %144 = vector.shape_cast %143 : vector<1x8x128xf32> to vector<8x128xf32>
      %c0_71 = arith.constant 0 : index
      %c0_72 = arith.constant 0 : index
      %145 = vector.load %arg4[%c0_71, %c0_72] : memref<32x128xf32, #tpu.memory_space<vmem>>, vector<32x128xf32>
      %cst_73 = arith.constant dense<0.000000e+00> : vector<8x128xf32>
      %146 = tpu.matmul %139, %145, %cst_73 {dimension_numbers = #tpu.dot_dimension_numbers<[1], [0], [0], [1], [0, 0, 1, 1], [], []>} : vector<8x32xf32>, vector<32x128xf32>, vector<8x128xf32> -> vector<8x128xf32>
      %147 = arith.addf %144, %146 : vector<8x128xf32>
      %148 = vector.extract_strided_slice %147 {offsets = [0, 0], sizes = [8, 96], strides = [1, 1]} : vector<8x128xf32> to vector<8x96xf32>
      %cst_74 = arith.constant 5.000000e-01 : f32
      %149 = vector.broadcast %cst_74 : f32 to vector<8x96xf32>
      %150 = arith.mulf %149, %148 : vector<8x96xf32>
      %151 = math.tanh %150 : vector<8x96xf32>
      %cst_75 = arith.constant 5.000000e-01 : f32
      %152 = vector.broadcast %cst_75 : f32 to vector<8x96xf32>
      %153 = arith.mulf %152, %151 : vector<8x96xf32>
      %cst_76 = arith.constant 5.000000e-01 : f32
      %154 = vector.broadcast %cst_76 : f32 to vector<8x96xf32>
      %155 = arith.addf %153, %154 : vector<8x96xf32>
      %156 = vector.extract_strided_slice %155 {offsets = [0, 0], sizes = [8, 32], strides = [1, 1]} : vector<8x96xf32> to vector<8x32xf32>
      %157 = vector.extract_strided_slice %155 {offsets = [0, 32], sizes = [8, 32], strides = [1, 1]} : vector<8x96xf32> to vector<8x32xf32>
      %158 = vector.extract_strided_slice %155 {offsets = [0, 64], sizes = [8, 32], strides = [1, 1]} : vector<8x96xf32> to vector<8x32xf32>
      %159 = vector.extract_strided_slice %147 {offsets = [0, 96], sizes = [8, 32], strides = [1, 1]} : vector<8x128xf32> to vector<8x32xf32>
      %160 = math.tanh %159 : vector<8x32xf32>
      %161 = arith.mulf %157, %141 : vector<8x32xf32>
      %162 = arith.mulf %156, %160 : vector<8x32xf32>
      %163 = arith.addf %161, %162 : vector<8x32xf32>
      %164 = math.tanh %163 : vector<8x32xf32>
      %165 = arith.mulf %158, %164 : vector<8x32xf32>
      %166 = vector.shape_cast %137 : vector<8x1xi1> to vector<8x1xi1>
      %167 = vector.broadcast %166 : vector<8x1xi1> to vector<8x32xi1>
      %168 = arith.select %167, %163, %141 : vector<8x32xi1>, vector<8x32xf32>
      %169 = vector.shape_cast %137 : vector<8x1xi1> to vector<8x1xi1>
      %170 = vector.broadcast %169 : vector<8x1xi1> to vector<8x32xi1>
      %171 = arith.select %170, %165, %139 : vector<8x32xi1>, vector<8x32xf32>
      %c0_77 = arith.constant 0 : index
      %c0_78 = arith.constant 0 : index
      %c0_79 = arith.constant 0 : index
      %172 = vector.load %arg15[%c0_77, %c0_78, %c0_79] : memref<3x8x32xf32, #tpu.memory_space<vmem>>, vector<1x8x32xf32>
      %173 = vector.shape_cast %172 : vector<1x8x32xf32> to vector<8x32xf32>
      %174 = vector.shape_cast %168 : vector<8x32xf32> to vector<1x8x32xf32>
      tpu.vector_store %arg15[%c0_77, %c0_78, %c0_79], %174 {strides = array<i32>} : memref<3x8x32xf32, #tpu.memory_space<vmem>>, vector<1x8x32xf32>,
      %c0_80 = arith.constant 0 : index
      %c0_81 = arith.constant 0 : index
      %c0_82 = arith.constant 0 : index
      %175 = vector.load %arg14[%c0_80, %c0_81, %c0_82] : memref<3x8x32xf32, #tpu.memory_space<vmem>>, vector<1x8x32xf32>
      %176 = vector.shape_cast %175 : vector<1x8x32xf32> to vector<8x32xf32>
      %177 = vector.shape_cast %171 : vector<8x32xf32> to vector<1x8x32xf32>
      tpu.vector_store %arg14[%c0_80, %c0_81, %c0_82], %177 {strides = array<i32>} : memref<3x8x32xf32, #tpu.memory_space<vmem>>, vector<1x8x32xf32>,
      %c1_83 = arith.constant 1 : index
      %c0_84 = arith.constant 0 : index
      %c0_85 = arith.constant 0 : index
      %178 = vector.load %arg14[%c1_83, %c0_84, %c0_85] : memref<3x8x32xf32, #tpu.memory_space<vmem>>, vector<1x8x32xf32>
      %179 = vector.shape_cast %178 : vector<1x8x32xf32> to vector<8x32xf32>
      %c1_86 = arith.constant 1 : index
      %c0_87 = arith.constant 0 : index
      %c0_88 = arith.constant 0 : index
      %180 = vector.load %arg15[%c1_86, %c0_87, %c0_88] : memref<3x8x32xf32, #tpu.memory_space<vmem>>, vector<1x8x32xf32>
      %181 = vector.shape_cast %180 : vector<1x8x32xf32> to vector<8x32xf32>
      %c0_89 = arith.constant 0 : index
      %c0_90 = arith.constant 0 : index
      %182 = vector.load %arg5[%c0_89, %c0_90] : memref<64x128xf32, #tpu.memory_space<vmem>>, vector<64x128xf32>
      %c0_91 = arith.constant 0 : index
      %c0_92 = arith.constant 0 : index
      %183 = vector.load %arg6[%c0_91, %c0_92] : memref<1x128xf32, #tpu.memory_space<vmem>>, vector<1x128xf32>
      %184 = tpu.concatenate %171, %179 in 1 : vector<8x32xf32>, vector<8x32xf32> -> vector<8x64xf32>
      %cst_93 = arith.constant dense<0.000000e+00> : vector<8x128xf32>
      %185 = tpu.matmul %184, %182, %cst_93 {dimension_numbers = #tpu.dot_dimension_numbers<[1], [0], [0], [1], [0, 0, 1, 1], [], []>} : vector<8x64xf32>, vector<64x128xf32>, vector<8x128xf32> -> vector<8x128xf32>
      %186 = vector.broadcast %183 : vector<1x128xf32> to vector<8x128xf32>
      %187 = arith.addf %185, %186 : vector<8x128xf32>
      %188 = vector.extract_strided_slice %187 {offsets = [0, 0], sizes = [8, 96], strides = [1, 1]} : vector<8x128xf32> to vector<8x96xf32>
      %cst_94 = arith.constant 5.000000e-01 : f32
      %189 = vector.broadcast %cst_94 : f32 to vector<8x96xf32>
      %190 = arith.mulf %189, %188 : vector<8x96xf32>
      %191 = math.tanh %190 : vector<8x96xf32>
      %cst_95 = arith.constant 5.000000e-01 : f32
      %192 = vector.broadcast %cst_95 : f32 to vector<8x96xf32>
      %193 = arith.mulf %192, %191 : vector<8x96xf32>
      %cst_96 = arith.constant 5.000000e-01 : f32
      %194 = vector.broadcast %cst_96 : f32 to vector<8x96xf32>
      %195 = arith.addf %193, %194 : vector<8x96xf32>
      %196 = vector.extract_strided_slice %195 {offsets = [0, 0], sizes = [8, 32], strides = [1, 1]} : vector<8x96xf32> to vector<8x32xf32>
      %197 = vector.extract_strided_slice %195 {offsets = [0, 32], sizes = [8, 32], strides = [1, 1]} : vector<8x96xf32> to vector<8x32xf32>
      %198 = vector.extract_strided_slice %195 {offsets = [0, 64], sizes = [8, 32], strides = [1, 1]} : vector<8x96xf32> to vector<8x32xf32>
      %199 = vector.extract_strided_slice %187 {offsets = [0, 96], sizes = [8, 32], strides = [1, 1]} : vector<8x128xf32> to vector<8x32xf32>
      %200 = math.tanh %199 : vector<8x32xf32>
      %201 = arith.mulf %197, %181 : vector<8x32xf32>
      %202 = arith.mulf %196, %200 : vector<8x32xf32>
      %203 = arith.addf %201, %202 : vector<8x32xf32>
      %204 = math.tanh %203 : vector<8x32xf32>
      %205 = arith.mulf %198, %204 : vector<8x32xf32>
      %206 = vector.shape_cast %137 : vector<8x1xi1> to vector<8x1xi1>
      %207 = vector.broadcast %206 : vector<8x1xi1> to vector<8x32xi1>
      %208 = arith.select %207, %203, %181 : vector<8x32xi1>, vector<8x32xf32>
      %209 = vector.shape_cast %137 : vector<8x1xi1> to vector<8x1xi1>
      %210 = vector.broadcast %209 : vector<8x1xi1> to vector<8x32xi1>
      %211 = arith.select %210, %205, %179 : vector<8x32xi1>, vector<8x32xf32>
      %c1_97 = arith.constant 1 : index
      %c0_98 = arith.constant 0 : index
      %c0_99 = arith.constant 0 : index
      %212 = vector.load %arg15[%c1_97, %c0_98, %c0_99] : memref<3x8x32xf32, #tpu.memory_space<vmem>>, vector<1x8x32xf32>
      %213 = vector.shape_cast %212 : vector<1x8x32xf32> to vector<8x32xf32>
      %214 = vector.shape_cast %208 : vector<8x32xf32> to vector<1x8x32xf32>
      tpu.vector_store %arg15[%c1_97, %c0_98, %c0_99], %214 {strides = array<i32>} : memref<3x8x32xf32, #tpu.memory_space<vmem>>, vector<1x8x32xf32>,
      %c1_100 = arith.constant 1 : index
      %c0_101 = arith.constant 0 : index
      %c0_102 = arith.constant 0 : index
      %215 = vector.load %arg14[%c1_100, %c0_101, %c0_102] : memref<3x8x32xf32, #tpu.memory_space<vmem>>, vector<1x8x32xf32>
      %216 = vector.shape_cast %215 : vector<1x8x32xf32> to vector<8x32xf32>
      %217 = vector.shape_cast %211 : vector<8x32xf32> to vector<1x8x32xf32>
      tpu.vector_store %arg14[%c1_100, %c0_101, %c0_102], %217 {strides = array<i32>} : memref<3x8x32xf32, #tpu.memory_space<vmem>>, vector<1x8x32xf32>,
      %c2_103 = arith.constant 2 : index
      %c0_104 = arith.constant 0 : index
      %c0_105 = arith.constant 0 : index
      %218 = vector.load %arg14[%c2_103, %c0_104, %c0_105] : memref<3x8x32xf32, #tpu.memory_space<vmem>>, vector<1x8x32xf32>
      %219 = vector.shape_cast %218 : vector<1x8x32xf32> to vector<8x32xf32>
      %c2_106 = arith.constant 2 : index
      %c0_107 = arith.constant 0 : index
      %c0_108 = arith.constant 0 : index
      %220 = vector.load %arg15[%c2_106, %c0_107, %c0_108] : memref<3x8x32xf32, #tpu.memory_space<vmem>>, vector<1x8x32xf32>
      %221 = vector.shape_cast %220 : vector<1x8x32xf32> to vector<8x32xf32>
      %c0_109 = arith.constant 0 : index
      %c0_110 = arith.constant 0 : index
      %222 = vector.load %arg7[%c0_109, %c0_110] : memref<64x128xf32, #tpu.memory_space<vmem>>, vector<64x128xf32>
      %c0_111 = arith.constant 0 : index
      %c0_112 = arith.constant 0 : index
      %223 = vector.load %arg8[%c0_111, %c0_112] : memref<1x128xf32, #tpu.memory_space<vmem>>, vector<1x128xf32>
      %224 = tpu.concatenate %211, %219 in 1 : vector<8x32xf32>, vector<8x32xf32> -> vector<8x64xf32>
      %cst_113 = arith.constant dense<0.000000e+00> : vector<8x128xf32>
      %225 = tpu.matmul %224, %222, %cst_113 {dimension_numbers = #tpu.dot_dimension_numbers<[1], [0], [0], [1], [0, 0, 1, 1], [], []>} : vector<8x64xf32>, vector<64x128xf32>, vector<8x128xf32> -> vector<8x128xf32>
      %226 = vector.broadcast %223 : vector<1x128xf32> to vector<8x128xf32>
      %227 = arith.addf %225, %226 : vector<8x128xf32>
      %228 = vector.extract_strided_slice %227 {offsets = [0, 0], sizes = [8, 96], strides = [1, 1]} : vector<8x128xf32> to vector<8x96xf32>
      %cst_114 = arith.constant 5.000000e-01 : f32
      %229 = vector.broadcast %cst_114 : f32 to vector<8x96xf32>
      %230 = arith.mulf %229, %228 : vector<8x96xf32>
      %231 = math.tanh %230 : vector<8x96xf32>
      %cst_115 = arith.constant 5.000000e-01 : f32
      %232 = vector.broadcast %cst_115 : f32 to vector<8x96xf32>
      %233 = arith.mulf %232, %231 : vector<8x96xf32>
      %cst_116 = arith.constant 5.000000e-01 : f32
      %234 = vector.broadcast %cst_116 : f32 to vector<8x96xf32>
      %235 = arith.addf %233, %234 : vector<8x96xf32>
      %236 = vector.extract_strided_slice %235 {offsets = [0, 0], sizes = [8, 32], strides = [1, 1]} : vector<8x96xf32> to vector<8x32xf32>
      %237 = vector.extract_strided_slice %235 {offsets = [0, 32], sizes = [8, 32], strides = [1, 1]} : vector<8x96xf32> to vector<8x32xf32>
      %238 = vector.extract_strided_slice %235 {offsets = [0, 64], sizes = [8, 32], strides = [1, 1]} : vector<8x96xf32> to vector<8x32xf32>
      %239 = vector.extract_strided_slice %227 {offsets = [0, 96], sizes = [8, 32], strides = [1, 1]} : vector<8x128xf32> to vector<8x32xf32>
      %240 = math.tanh %239 : vector<8x32xf32>
      %241 = arith.mulf %237, %221 : vector<8x32xf32>
      %242 = arith.mulf %236, %240 : vector<8x32xf32>
      %243 = arith.addf %241, %242 : vector<8x32xf32>
      %244 = math.tanh %243 : vector<8x32xf32>
      %245 = arith.mulf %238, %244 : vector<8x32xf32>
      %246 = vector.shape_cast %137 : vector<8x1xi1> to vector<8x1xi1>
      %247 = vector.broadcast %246 : vector<8x1xi1> to vector<8x32xi1>
      %248 = arith.select %247, %243, %221 : vector<8x32xi1>, vector<8x32xf32>
      %249 = vector.shape_cast %137 : vector<8x1xi1> to vector<8x1xi1>
      %250 = vector.broadcast %249 : vector<8x1xi1> to vector<8x32xi1>
      %251 = arith.select %250, %245, %219 : vector<8x32xi1>, vector<8x32xf32>
      %c2_117 = arith.constant 2 : index
      %c0_118 = arith.constant 0 : index
      %c0_119 = arith.constant 0 : index
      %252 = vector.load %arg15[%c2_117, %c0_118, %c0_119] : memref<3x8x32xf32, #tpu.memory_space<vmem>>, vector<1x8x32xf32>
      %253 = vector.shape_cast %252 : vector<1x8x32xf32> to vector<8x32xf32>
      %254 = vector.shape_cast %248 : vector<8x32xf32> to vector<1x8x32xf32>
      tpu.vector_store %arg15[%c2_117, %c0_118, %c0_119], %254 {strides = array<i32>} : memref<3x8x32xf32, #tpu.memory_space<vmem>>, vector<1x8x32xf32>,
      %c2_120 = arith.constant 2 : index
      %c0_121 = arith.constant 0 : index
      %c0_122 = arith.constant 0 : index
      %255 = vector.load %arg14[%c2_120, %c0_121, %c0_122] : memref<3x8x32xf32, #tpu.memory_space<vmem>>, vector<1x8x32xf32>
      %256 = vector.shape_cast %255 : vector<1x8x32xf32> to vector<8x32xf32>
      %257 = vector.shape_cast %251 : vector<8x32xf32> to vector<1x8x32xf32>
      tpu.vector_store %arg14[%c2_120, %c0_121, %c0_122], %257 {strides = array<i32>} : memref<3x8x32xf32, #tpu.memory_space<vmem>>, vector<1x8x32xf32>,
      %c2_i32_123 = arith.constant 2 : i32
      %258 = arith.addi %0, %c2_i32_123 : i32
      %259 = vector.broadcast %258 : i32 to vector<8x1xi32>
      %260 = arith.cmpi slt, %259, %2 : vector<8x1xi32>
      %c0_124 = arith.constant 0 : index
      %c0_125 = arith.constant 0 : index
      %c0_126 = arith.constant 0 : index
      %261 = vector.load %arg14[%c0_124, %c0_125, %c0_126] : memref<3x8x32xf32, #tpu.memory_space<vmem>>, vector<1x8x32xf32>
      %262 = vector.shape_cast %261 : vector<1x8x32xf32> to vector<8x32xf32>
      %c0_127 = arith.constant 0 : index
      %c0_128 = arith.constant 0 : index
      %c0_129 = arith.constant 0 : index
      %263 = vector.load %arg15[%c0_127, %c0_128, %c0_129] : memref<3x8x32xf32, #tpu.memory_space<vmem>>, vector<1x8x32xf32>
      %264 = vector.shape_cast %263 : vector<1x8x32xf32> to vector<8x32xf32>
      %265 = arith.index_cast %c2_i32_123 : i32 to index
      %c0_130 = arith.constant 0 : index
      %c0_131 = arith.constant 0 : index
      %266 = vector.load %arg2[%265, %c0_130, %c0_131] : memref<8x8x128xf32, #tpu.memory_space<vmem>>, vector<1x8x128xf32>
      %267 = vector.shape_cast %266 : vector<1x8x128xf32> to vector<8x128xf32>
      %c0_132 = arith.constant 0 : index
      %c0_133 = arith.constant 0 : index
      %268 = vector.load %arg4[%c0_132, %c0_133] : memref<32x128xf32, #tpu.memory_space<vmem>>, vector<32x128xf32>
      %cst_134 = arith.constant dense<0.000000e+00> : vector<8x128xf32>
      %269 = tpu.matmul %262, %268, %cst_134 {dimension_numbers = #tpu.dot_dimension_numbers<[1], [0], [0], [1], [0, 0, 1, 1], [], []>} : vector<8x32xf32>, vector<32x128xf32>, vector<8x128xf32> -> vector<8x128xf32>
      %270 = arith.addf %267, %269 : vector<8x128xf32>
      %271 = vector.extract_strided_slice %270 {offsets = [0, 0], sizes = [8, 96], strides = [1, 1]} : vector<8x128xf32> to vector<8x96xf32>
      %cst_135 = arith.constant 5.000000e-01 : f32
      %272 = vector.broadcast %cst_135 : f32 to vector<8x96xf32>
      %273 = arith.mulf %272, %271 : vector<8x96xf32>
      %274 = math.tanh %273 : vector<8x96xf32>
      %cst_136 = arith.constant 5.000000e-01 : f32
      %275 = vector.broadcast %cst_136 : f32 to vector<8x96xf32>
      %276 = arith.mulf %275, %274 : vector<8x96xf32>
      %cst_137 = arith.constant 5.000000e-01 : f32
      %277 = vector.broadcast %cst_137 : f32 to vector<8x96xf32>
      %278 = arith.addf %276, %277 : vector<8x96xf32>
      %279 = vector.extract_strided_slice %278 {offsets = [0, 0], sizes = [8, 32], strides = [1, 1]} : vector<8x96xf32> to vector<8x32xf32>
      %280 = vector.extract_strided_slice %278 {offsets = [0, 32], sizes = [8, 32], strides = [1, 1]} : vector<8x96xf32> to vector<8x32xf32>
      %281 = vector.extract_strided_slice %278 {offsets = [0, 64], sizes = [8, 32], strides = [1, 1]} : vector<8x96xf32> to vector<8x32xf32>
      %282 = vector.extract_strided_slice %270 {offsets = [0, 96], sizes = [8, 32], strides = [1, 1]} : vector<8x128xf32> to vector<8x32xf32>
      %283 = math.tanh %282 : vector<8x32xf32>
      %284 = arith.mulf %280, %264 : vector<8x32xf32>
      %285 = arith.mulf %279, %283 : vector<8x32xf32>
      %286 = arith.addf %284, %285 : vector<8x32xf32>
      %287 = math.tanh %286 : vector<8x32xf32>
      %288 = arith.mulf %281, %287 : vector<8x32xf32>
      %289 = vector.shape_cast %260 : vector<8x1xi1> to vector<8x1xi1>
      %290 = vector.broadcast %289 : vector<8x1xi1> to vector<8x32xi1>
      %291 = arith.select %290, %286, %264 : vector<8x32xi1>, vector<8x32xf32>
      %292 = vector.shape_cast %260 : vector<8x1xi1> to vector<8x1xi1>
      %293 = vector.broadcast %292 : vector<8x1xi1> to vector<8x32xi1>
      %294 = arith.select %293, %288, %262 : vector<8x32xi1>, vector<8x32xf32>
      %c0_138 = arith.constant 0 : index
      %c0_139 = arith.constant 0 : index
      %c0_140 = arith.constant 0 : index
      %295 = vector.load %arg15[%c0_138, %c0_139, %c0_140] : memref<3x8x32xf32, #tpu.memory_space<vmem>>, vector<1x8x32xf32>
      %296 = vector.shape_cast %295 : vector<1x8x32xf32> to vector<8x32xf32>
      %297 = vector.shape_cast %291 : vector<8x32xf32> to vector<1x8x32xf32>
      tpu.vector_store %arg15[%c0_138, %c0_139, %c0_140], %297 {strides = array<i32>} : memref<3x8x32xf32, #tpu.memory_space<vmem>>, vector<1x8x32xf32>,
      %c0_141 = arith.constant 0 : index
      %c0_142 = arith.constant 0 : index
      %c0_143 = arith.constant 0 : index
      %298 = vector.load %arg14[%c0_141, %c0_142, %c0_143] : memref<3x8x32xf32, #tpu.memory_space<vmem>>, vector<1x8x32xf32>
      %299 = vector.shape_cast %298 : vector<1x8x32xf32> to vector<8x32xf32>
      %300 = vector.shape_cast %294 : vector<8x32xf32> to vector<1x8x32xf32>
      tpu.vector_store %arg14[%c0_141, %c0_142, %c0_143], %300 {strides = array<i32>} : memref<3x8x32xf32, #tpu.memory_space<vmem>>, vector<1x8x32xf32>,
      %c1_144 = arith.constant 1 : index
      %c0_145 = arith.constant 0 : index
      %c0_146 = arith.constant 0 : index
      %301 = vector.load %arg14[%c1_144, %c0_145, %c0_146] : memref<3x8x32xf32, #tpu.memory_space<vmem>>, vector<1x8x32xf32>
      %302 = vector.shape_cast %301 : vector<1x8x32xf32> to vector<8x32xf32>
      %c1_147 = arith.constant 1 : index
      %c0_148 = arith.constant 0 : index
      %c0_149 = arith.constant 0 : index
      %303 = vector.load %arg15[%c1_147, %c0_148, %c0_149] : memref<3x8x32xf32, #tpu.memory_space<vmem>>, vector<1x8x32xf32>
      %304 = vector.shape_cast %303 : vector<1x8x32xf32> to vector<8x32xf32>
      %c0_150 = arith.constant 0 : index
      %c0_151 = arith.constant 0 : index
      %305 = vector.load %arg5[%c0_150, %c0_151] : memref<64x128xf32, #tpu.memory_space<vmem>>, vector<64x128xf32>
      %c0_152 = arith.constant 0 : index
      %c0_153 = arith.constant 0 : index
      %306 = vector.load %arg6[%c0_152, %c0_153] : memref<1x128xf32, #tpu.memory_space<vmem>>, vector<1x128xf32>
      %307 = tpu.concatenate %294, %302 in 1 : vector<8x32xf32>, vector<8x32xf32> -> vector<8x64xf32>
      %cst_154 = arith.constant dense<0.000000e+00> : vector<8x128xf32>
      %308 = tpu.matmul %307, %305, %cst_154 {dimension_numbers = #tpu.dot_dimension_numbers<[1], [0], [0], [1], [0, 0, 1, 1], [], []>} : vector<8x64xf32>, vector<64x128xf32>, vector<8x128xf32> -> vector<8x128xf32>
      %309 = vector.broadcast %306 : vector<1x128xf32> to vector<8x128xf32>
      %310 = arith.addf %308, %309 : vector<8x128xf32>
      %311 = vector.extract_strided_slice %310 {offsets = [0, 0], sizes = [8, 96], strides = [1, 1]} : vector<8x128xf32> to vector<8x96xf32>
      %cst_155 = arith.constant 5.000000e-01 : f32
      %312 = vector.broadcast %cst_155 : f32 to vector<8x96xf32>
      %313 = arith.mulf %312, %311 : vector<8x96xf32>
      %314 = math.tanh %313 : vector<8x96xf32>
      %cst_156 = arith.constant 5.000000e-01 : f32
      %315 = vector.broadcast %cst_156 : f32 to vector<8x96xf32>
      %316 = arith.mulf %315, %314 : vector<8x96xf32>
      %cst_157 = arith.constant 5.000000e-01 : f32
      %317 = vector.broadcast %cst_157 : f32 to vector<8x96xf32>
      %318 = arith.addf %316, %317 : vector<8x96xf32>
      %319 = vector.extract_strided_slice %318 {offsets = [0, 0], sizes = [8, 32], strides = [1, 1]} : vector<8x96xf32> to vector<8x32xf32>
      %320 = vector.extract_strided_slice %318 {offsets = [0, 32], sizes = [8, 32], strides = [1, 1]} : vector<8x96xf32> to vector<8x32xf32>
      %321 = vector.extract_strided_slice %318 {offsets = [0, 64], sizes = [8, 32], strides = [1, 1]} : vector<8x96xf32> to vector<8x32xf32>
      %322 = vector.extract_strided_slice %310 {offsets = [0, 96], sizes = [8, 32], strides = [1, 1]} : vector<8x128xf32> to vector<8x32xf32>
      %323 = math.tanh %322 : vector<8x32xf32>
      %324 = arith.mulf %320, %304 : vector<8x32xf32>
      %325 = arith.mulf %319, %323 : vector<8x32xf32>
      %326 = arith.addf %324, %325 : vector<8x32xf32>
      %327 = math.tanh %326 : vector<8x32xf32>
      %328 = arith.mulf %321, %327 : vector<8x32xf32>
      %329 = vector.shape_cast %260 : vector<8x1xi1> to vector<8x1xi1>
      %330 = vector.broadcast %329 : vector<8x1xi1> to vector<8x32xi1>
      %331 = arith.select %330, %326, %304 : vector<8x32xi1>, vector<8x32xf32>
      %332 = vector.shape_cast %260 : vector<8x1xi1> to vector<8x1xi1>
      %333 = vector.broadcast %332 : vector<8x1xi1> to vector<8x32xi1>
      %334 = arith.select %333, %328, %302 : vector<8x32xi1>, vector<8x32xf32>
      %c1_158 = arith.constant 1 : index
      %c0_159 = arith.constant 0 : index
      %c0_160 = arith.constant 0 : index
      %335 = vector.load %arg15[%c1_158, %c0_159, %c0_160] : memref<3x8x32xf32, #tpu.memory_space<vmem>>, vector<1x8x32xf32>
      %336 = vector.shape_cast %335 : vector<1x8x32xf32> to vector<8x32xf32>
      %337 = vector.shape_cast %331 : vector<8x32xf32> to vector<1x8x32xf32>
      tpu.vector_store %arg15[%c1_158, %c0_159, %c0_160], %337 {strides = array<i32>} : memref<3x8x32xf32, #tpu.memory_space<vmem>>, vector<1x8x32xf32>,
      %c1_161 = arith.constant 1 : index
      %c0_162 = arith.constant 0 : index
      %c0_163 = arith.constant 0 : index
      %338 = vector.load %arg14[%c1_161, %c0_162, %c0_163] : memref<3x8x32xf32, #tpu.memory_space<vmem>>, vector<1x8x32xf32>
      %339 = vector.shape_cast %338 : vector<1x8x32xf32> to vector<8x32xf32>
      %340 = vector.shape_cast %334 : vector<8x32xf32> to vector<1x8x32xf32>
      tpu.vector_store %arg14[%c1_161, %c0_162, %c0_163], %340 {strides = array<i32>} : memref<3x8x32xf32, #tpu.memory_space<vmem>>, vector<1x8x32xf32>,
      %c2_164 = arith.constant 2 : index
      %c0_165 = arith.constant 0 : index
      %c0_166 = arith.constant 0 : index
      %341 = vector.load %arg14[%c2_164, %c0_165, %c0_166] : memref<3x8x32xf32, #tpu.memory_space<vmem>>, vector<1x8x32xf32>
      %342 = vector.shape_cast %341 : vector<1x8x32xf32> to vector<8x32xf32>
      %c2_167 = arith.constant 2 : index
      %c0_168 = arith.constant 0 : index
      %c0_169 = arith.constant 0 : index
      %343 = vector.load %arg15[%c2_167, %c0_168, %c0_169] : memref<3x8x32xf32, #tpu.memory_space<vmem>>, vector<1x8x32xf32>
      %344 = vector.shape_cast %343 : vector<1x8x32xf32> to vector<8x32xf32>
      %c0_170 = arith.constant 0 : index
      %c0_171 = arith.constant 0 : index
      %345 = vector.load %arg7[%c0_170, %c0_171] : memref<64x128xf32, #tpu.memory_space<vmem>>, vector<64x128xf32>
      %c0_172 = arith.constant 0 : index
      %c0_173 = arith.constant 0 : index
      %346 = vector.load %arg8[%c0_172, %c0_173] : memref<1x128xf32, #tpu.memory_space<vmem>>, vector<1x128xf32>
      %347 = tpu.concatenate %334, %342 in 1 : vector<8x32xf32>, vector<8x32xf32> -> vector<8x64xf32>
      %cst_174 = arith.constant dense<0.000000e+00> : vector<8x128xf32>
      %348 = tpu.matmul %347, %345, %cst_174 {dimension_numbers = #tpu.dot_dimension_numbers<[1], [0], [0], [1], [0, 0, 1, 1], [], []>} : vector<8x64xf32>, vector<64x128xf32>, vector<8x128xf32> -> vector<8x128xf32>
      %349 = vector.broadcast %346 : vector<1x128xf32> to vector<8x128xf32>
      %350 = arith.addf %348, %349 : vector<8x128xf32>
      %351 = vector.extract_strided_slice %350 {offsets = [0, 0], sizes = [8, 96], strides = [1, 1]} : vector<8x128xf32> to vector<8x96xf32>
      %cst_175 = arith.constant 5.000000e-01 : f32
      %352 = vector.broadcast %cst_175 : f32 to vector<8x96xf32>
      %353 = arith.mulf %352, %351 : vector<8x96xf32>
      %354 = math.tanh %353 : vector<8x96xf32>
      %cst_176 = arith.constant 5.000000e-01 : f32
      %355 = vector.broadcast %cst_176 : f32 to vector<8x96xf32>
      %356 = arith.mulf %355, %354 : vector<8x96xf32>
      %cst_177 = arith.constant 5.000000e-01 : f32
      %357 = vector.broadcast %cst_177 : f32 to vector<8x96xf32>
      %358 = arith.addf %356, %357 : vector<8x96xf32>
      %359 = vector.extract_strided_slice %358 {offsets = [0, 0], sizes = [8, 32], strides = [1, 1]} : vector<8x96xf32> to vector<8x32xf32>
      %360 = vector.extract_strided_slice %358 {offsets = [0, 32], sizes = [8, 32], strides = [1, 1]} : vector<8x96xf32> to vector<8x32xf32>
      %361 = vector.extract_strided_slice %358 {offsets = [0, 64], sizes = [8, 32], strides = [1, 1]} : vector<8x96xf32> to vector<8x32xf32>
      %362 = vector.extract_strided_slice %350 {offsets = [0, 96], sizes = [8, 32], strides = [1, 1]} : vector<8x128xf32> to vector<8x32xf32>
      %363 = math.tanh %362 : vector<8x32xf32>
      %364 = arith.mulf %360, %344 : vector<8x32xf32>
      %365 = arith.mulf %359, %363 : vector<8x32xf32>
      %366 = arith.addf %364, %365 : vector<8x32xf32>
      %367 = math.tanh %366 : vector<8x32xf32>
      %368 = arith.mulf %361, %367 : vector<8x32xf32>
      %369 = vector.shape_cast %260 : vector<8x1xi1> to vector<8x1xi1>
      %370 = vector.broadcast %369 : vector<8x1xi1> to vector<8x32xi1>
      %371 = arith.select %370, %366, %344 : vector<8x32xi1>, vector<8x32xf32>
      %372 = vector.shape_cast %260 : vector<8x1xi1> to vector<8x1xi1>
      %373 = vector.broadcast %372 : vector<8x1xi1> to vector<8x32xi1>
      %374 = arith.select %373, %368, %342 : vector<8x32xi1>, vector<8x32xf32>
      %c2_178 = arith.constant 2 : index
      %c0_179 = arith.constant 0 : index
      %c0_180 = arith.constant 0 : index
      %375 = vector.load %arg15[%c2_178, %c0_179, %c0_180] : memref<3x8x32xf32, #tpu.memory_space<vmem>>, vector<1x8x32xf32>
      %376 = vector.shape_cast %375 : vector<1x8x32xf32> to vector<8x32xf32>
      %377 = vector.shape_cast %371 : vector<8x32xf32> to vector<1x8x32xf32>
      tpu.vector_store %arg15[%c2_178, %c0_179, %c0_180], %377 {strides = array<i32>} : memref<3x8x32xf32, #tpu.memory_space<vmem>>, vector<1x8x32xf32>,
      %c2_181 = arith.constant 2 : index
      %c0_182 = arith.constant 0 : index
      %c0_183 = arith.constant 0 : index
      %378 = vector.load %arg14[%c2_181, %c0_182, %c0_183] : memref<3x8x32xf32, #tpu.memory_space<vmem>>, vector<1x8x32xf32>
      %379 = vector.shape_cast %378 : vector<1x8x32xf32> to vector<8x32xf32>
      %380 = vector.shape_cast %374 : vector<8x32xf32> to vector<1x8x32xf32>
      tpu.vector_store %arg14[%c2_181, %c0_182, %c0_183], %380 {strides = array<i32>} : memref<3x8x32xf32, #tpu.memory_space<vmem>>, vector<1x8x32xf32>,
      %c3_i32 = arith.constant 3 : i32
      %381 = arith.addi %0, %c3_i32 : i32
      %382 = vector.broadcast %381 : i32 to vector<8x1xi32>
      %383 = arith.cmpi slt, %382, %2 : vector<8x1xi32>
      %c0_184 = arith.constant 0 : index
      %c0_185 = arith.constant 0 : index
      %c0_186 = arith.constant 0 : index
      %384 = vector.load %arg14[%c0_184, %c0_185, %c0_186] : memref<3x8x32xf32, #tpu.memory_space<vmem>>, vector<1x8x32xf32>
      %385 = vector.shape_cast %384 : vector<1x8x32xf32> to vector<8x32xf32>
      %c0_187 = arith.constant 0 : index
      %c0_188 = arith.constant 0 : index
      %c0_189 = arith.constant 0 : index
      %386 = vector.load %arg15[%c0_187, %c0_188, %c0_189] : memref<3x8x32xf32, #tpu.memory_space<vmem>>, vector<1x8x32xf32>
      %387 = vector.shape_cast %386 : vector<1x8x32xf32> to vector<8x32xf32>
      %388 = arith.index_cast %c3_i32 : i32 to index
      %c0_190 = arith.constant 0 : index
      %c0_191 = arith.constant 0 : index
      %389 = vector.load %arg2[%388, %c0_190, %c0_191] : memref<8x8x128xf32, #tpu.memory_space<vmem>>, vector<1x8x128xf32>
      %390 = vector.shape_cast %389 : vector<1x8x128xf32> to vector<8x128xf32>
      %c0_192 = arith.constant 0 : index
      %c0_193 = arith.constant 0 : index
      %391 = vector.load %arg4[%c0_192, %c0_193] : memref<32x128xf32, #tpu.memory_space<vmem>>, vector<32x128xf32>
      %cst_194 = arith.constant dense<0.000000e+00> : vector<8x128xf32>
      %392 = tpu.matmul %385, %391, %cst_194 {dimension_numbers = #tpu.dot_dimension_numbers<[1], [0], [0], [1], [0, 0, 1, 1], [], []>} : vector<8x32xf32>, vector<32x128xf32>, vector<8x128xf32> -> vector<8x128xf32>
      %393 = arith.addf %390, %392 : vector<8x128xf32>
      %394 = vector.extract_strided_slice %393 {offsets = [0, 0], sizes = [8, 96], strides = [1, 1]} : vector<8x128xf32> to vector<8x96xf32>
      %cst_195 = arith.constant 5.000000e-01 : f32
      %395 = vector.broadcast %cst_195 : f32 to vector<8x96xf32>
      %396 = arith.mulf %395, %394 : vector<8x96xf32>
      %397 = math.tanh %396 : vector<8x96xf32>
      %cst_196 = arith.constant 5.000000e-01 : f32
      %398 = vector.broadcast %cst_196 : f32 to vector<8x96xf32>
      %399 = arith.mulf %398, %397 : vector<8x96xf32>
      %cst_197 = arith.constant 5.000000e-01 : f32
      %400 = vector.broadcast %cst_197 : f32 to vector<8x96xf32>
      %401 = arith.addf %399, %400 : vector<8x96xf32>
      %402 = vector.extract_strided_slice %401 {offsets = [0, 0], sizes = [8, 32], strides = [1, 1]} : vector<8x96xf32> to vector<8x32xf32>
      %403 = vector.extract_strided_slice %401 {offsets = [0, 32], sizes = [8, 32], strides = [1, 1]} : vector<8x96xf32> to vector<8x32xf32>
      %404 = vector.extract_strided_slice %401 {offsets = [0, 64], sizes = [8, 32], strides = [1, 1]} : vector<8x96xf32> to vector<8x32xf32>
      %405 = vector.extract_strided_slice %393 {offsets = [0, 96], sizes = [8, 32], strides = [1, 1]} : vector<8x128xf32> to vector<8x32xf32>
      %406 = math.tanh %405 : vector<8x32xf32>
      %407 = arith.mulf %403, %387 : vector<8x32xf32>
      %408 = arith.mulf %402, %406 : vector<8x32xf32>
      %409 = arith.addf %407, %408 : vector<8x32xf32>
      %410 = math.tanh %409 : vector<8x32xf32>
      %411 = arith.mulf %404, %410 : vector<8x32xf32>
      %412 = vector.shape_cast %383 : vector<8x1xi1> to vector<8x1xi1>
      %413 = vector.broadcast %412 : vector<8x1xi1> to vector<8x32xi1>
      %414 = arith.select %413, %409, %387 : vector<8x32xi1>, vector<8x32xf32>
      %415 = vector.shape_cast %383 : vector<8x1xi1> to vector<8x1xi1>
      %416 = vector.broadcast %415 : vector<8x1xi1> to vector<8x32xi1>
      %417 = arith.select %416, %411, %385 : vector<8x32xi1>, vector<8x32xf32>
      %c0_198 = arith.constant 0 : index
      %c0_199 = arith.constant 0 : index
      %c0_200 = arith.constant 0 : index
      %418 = vector.load %arg15[%c0_198, %c0_199, %c0_200] : memref<3x8x32xf32, #tpu.memory_space<vmem>>, vector<1x8x32xf32>
      %419 = vector.shape_cast %418 : vector<1x8x32xf32> to vector<8x32xf32>
      %420 = vector.shape_cast %414 : vector<8x32xf32> to vector<1x8x32xf32>
      tpu.vector_store %arg15[%c0_198, %c0_199, %c0_200], %420 {strides = array<i32>} : memref<3x8x32xf32, #tpu.memory_space<vmem>>, vector<1x8x32xf32>,
      %c0_201 = arith.constant 0 : index
      %c0_202 = arith.constant 0 : index
      %c0_203 = arith.constant 0 : index
      %421 = vector.load %arg14[%c0_201, %c0_202, %c0_203] : memref<3x8x32xf32, #tpu.memory_space<vmem>>, vector<1x8x32xf32>
      %422 = vector.shape_cast %421 : vector<1x8x32xf32> to vector<8x32xf32>
      %423 = vector.shape_cast %417 : vector<8x32xf32> to vector<1x8x32xf32>
      tpu.vector_store %arg14[%c0_201, %c0_202, %c0_203], %423 {strides = array<i32>} : memref<3x8x32xf32, #tpu.memory_space<vmem>>, vector<1x8x32xf32>,
      %c1_204 = arith.constant 1 : index
      %c0_205 = arith.constant 0 : index
      %c0_206 = arith.constant 0 : index
      %424 = vector.load %arg14[%c1_204, %c0_205, %c0_206] : memref<3x8x32xf32, #tpu.memory_space<vmem>>, vector<1x8x32xf32>
      %425 = vector.shape_cast %424 : vector<1x8x32xf32> to vector<8x32xf32>
      %c1_207 = arith.constant 1 : index
      %c0_208 = arith.constant 0 : index
      %c0_209 = arith.constant 0 : index
      %426 = vector.load %arg15[%c1_207, %c0_208, %c0_209] : memref<3x8x32xf32, #tpu.memory_space<vmem>>, vector<1x8x32xf32>
      %427 = vector.shape_cast %426 : vector<1x8x32xf32> to vector<8x32xf32>
      %c0_210 = arith.constant 0 : index
      %c0_211 = arith.constant 0 : index
      %428 = vector.load %arg5[%c0_210, %c0_211] : memref<64x128xf32, #tpu.memory_space<vmem>>, vector<64x128xf32>
      %c0_212 = arith.constant 0 : index
      %c0_213 = arith.constant 0 : index
      %429 = vector.load %arg6[%c0_212, %c0_213] : memref<1x128xf32, #tpu.memory_space<vmem>>, vector<1x128xf32>
      %430 = tpu.concatenate %417, %425 in 1 : vector<8x32xf32>, vector<8x32xf32> -> vector<8x64xf32>
      %cst_214 = arith.constant dense<0.000000e+00> : vector<8x128xf32>
      %431 = tpu.matmul %430, %428, %cst_214 {dimension_numbers = #tpu.dot_dimension_numbers<[1], [0], [0], [1], [0, 0, 1, 1], [], []>} : vector<8x64xf32>, vector<64x128xf32>, vector<8x128xf32> -> vector<8x128xf32>
      %432 = vector.broadcast %429 : vector<1x128xf32> to vector<8x128xf32>
      %433 = arith.addf %431, %432 : vector<8x128xf32>
      %434 = vector.extract_strided_slice %433 {offsets = [0, 0], sizes = [8, 96], strides = [1, 1]} : vector<8x128xf32> to vector<8x96xf32>
      %cst_215 = arith.constant 5.000000e-01 : f32
      %435 = vector.broadcast %cst_215 : f32 to vector<8x96xf32>
      %436 = arith.mulf %435, %434 : vector<8x96xf32>
      %437 = math.tanh %436 : vector<8x96xf32>
      %cst_216 = arith.constant 5.000000e-01 : f32
      %438 = vector.broadcast %cst_216 : f32 to vector<8x96xf32>
      %439 = arith.mulf %438, %437 : vector<8x96xf32>
      %cst_217 = arith.constant 5.000000e-01 : f32
      %440 = vector.broadcast %cst_217 : f32 to vector<8x96xf32>
      %441 = arith.addf %439, %440 : vector<8x96xf32>
      %442 = vector.extract_strided_slice %441 {offsets = [0, 0], sizes = [8, 32], strides = [1, 1]} : vector<8x96xf32> to vector<8x32xf32>
      %443 = vector.extract_strided_slice %441 {offsets = [0, 32], sizes = [8, 32], strides = [1, 1]} : vector<8x96xf32> to vector<8x32xf32>
      %444 = vector.extract_strided_slice %441 {offsets = [0, 64], sizes = [8, 32], strides = [1, 1]} : vector<8x96xf32> to vector<8x32xf32>
      %445 = vector.extract_strided_slice %433 {offsets = [0, 96], sizes = [8, 32], strides = [1, 1]} : vector<8x128xf32> to vector<8x32xf32>
      %446 = math.tanh %445 : vector<8x32xf32>
      %447 = arith.mulf %443, %427 : vector<8x32xf32>
      %448 = arith.mulf %442, %446 : vector<8x32xf32>
      %449 = arith.addf %447, %448 : vector<8x32xf32>
      %450 = math.tanh %449 : vector<8x32xf32>
      %451 = arith.mulf %444, %450 : vector<8x32xf32>
      %452 = vector.shape_cast %383 : vector<8x1xi1> to vector<8x1xi1>
      %453 = vector.broadcast %452 : vector<8x1xi1> to vector<8x32xi1>
      %454 = arith.select %453, %449, %427 : vector<8x32xi1>, vector<8x32xf32>
      %455 = vector.shape_cast %383 : vector<8x1xi1> to vector<8x1xi1>
      %456 = vector.broadcast %455 : vector<8x1xi1> to vector<8x32xi1>
      %457 = arith.select %456, %451, %425 : vector<8x32xi1>, vector<8x32xf32>
      %c1_218 = arith.constant 1 : index
      %c0_219 = arith.constant 0 : index
      %c0_220 = arith.constant 0 : index
      %458 = vector.load %arg15[%c1_218, %c0_219, %c0_220] : memref<3x8x32xf32, #tpu.memory_space<vmem>>, vector<1x8x32xf32>
      %459 = vector.shape_cast %458 : vector<1x8x32xf32> to vector<8x32xf32>
      %460 = vector.shape_cast %454 : vector<8x32xf32> to vector<1x8x32xf32>
      tpu.vector_store %arg15[%c1_218, %c0_219, %c0_220], %460 {strides = array<i32>} : memref<3x8x32xf32, #tpu.memory_space<vmem>>, vector<1x8x32xf32>,
      %c1_221 = arith.constant 1 : index
      %c0_222 = arith.constant 0 : index
      %c0_223 = arith.constant 0 : index
      %461 = vector.load %arg14[%c1_221, %c0_222, %c0_223] : memref<3x8x32xf32, #tpu.memory_space<vmem>>, vector<1x8x32xf32>
      %462 = vector.shape_cast %461 : vector<1x8x32xf32> to vector<8x32xf32>
      %463 = vector.shape_cast %457 : vector<8x32xf32> to vector<1x8x32xf32>
      tpu.vector_store %arg14[%c1_221, %c0_222, %c0_223], %463 {strides = array<i32>} : memref<3x8x32xf32, #tpu.memory_space<vmem>>, vector<1x8x32xf32>,
      %c2_224 = arith.constant 2 : index
      %c0_225 = arith.constant 0 : index
      %c0_226 = arith.constant 0 : index
      %464 = vector.load %arg14[%c2_224, %c0_225, %c0_226] : memref<3x8x32xf32, #tpu.memory_space<vmem>>, vector<1x8x32xf32>
      %465 = vector.shape_cast %464 : vector<1x8x32xf32> to vector<8x32xf32>
      %c2_227 = arith.constant 2 : index
      %c0_228 = arith.constant 0 : index
      %c0_229 = arith.constant 0 : index
      %466 = vector.load %arg15[%c2_227, %c0_228, %c0_229] : memref<3x8x32xf32, #tpu.memory_space<vmem>>, vector<1x8x32xf32>
      %467 = vector.shape_cast %466 : vector<1x8x32xf32> to vector<8x32xf32>
      %c0_230 = arith.constant 0 : index
      %c0_231 = arith.constant 0 : index
      %468 = vector.load %arg7[%c0_230, %c0_231] : memref<64x128xf32, #tpu.memory_space<vmem>>, vector<64x128xf32>
      %c0_232 = arith.constant 0 : index
      %c0_233 = arith.constant 0 : index
      %469 = vector.load %arg8[%c0_232, %c0_233] : memref<1x128xf32, #tpu.memory_space<vmem>>, vector<1x128xf32>
      %470 = tpu.concatenate %457, %465 in 1 : vector<8x32xf32>, vector<8x32xf32> -> vector<8x64xf32>
      %cst_234 = arith.constant dense<0.000000e+00> : vector<8x128xf32>
      %471 = tpu.matmul %470, %468, %cst_234 {dimension_numbers = #tpu.dot_dimension_numbers<[1], [0], [0], [1], [0, 0, 1, 1], [], []>} : vector<8x64xf32>, vector<64x128xf32>, vector<8x128xf32> -> vector<8x128xf32>
      %472 = vector.broadcast %469 : vector<1x128xf32> to vector<8x128xf32>
      %473 = arith.addf %471, %472 : vector<8x128xf32>
      %474 = vector.extract_strided_slice %473 {offsets = [0, 0], sizes = [8, 96], strides = [1, 1]} : vector<8x128xf32> to vector<8x96xf32>
      %cst_235 = arith.constant 5.000000e-01 : f32
      %475 = vector.broadcast %cst_235 : f32 to vector<8x96xf32>
      %476 = arith.mulf %475, %474 : vector<8x96xf32>
      %477 = math.tanh %476 : vector<8x96xf32>
      %cst_236 = arith.constant 5.000000e-01 : f32
      %478 = vector.broadcast %cst_236 : f32 to vector<8x96xf32>
      %479 = arith.mulf %478, %477 : vector<8x96xf32>
      %cst_237 = arith.constant 5.000000e-01 : f32
      %480 = vector.broadcast %cst_237 : f32 to vector<8x96xf32>
      %481 = arith.addf %479, %480 : vector<8x96xf32>
      %482 = vector.extract_strided_slice %481 {offsets = [0, 0], sizes = [8, 32], strides = [1, 1]} : vector<8x96xf32> to vector<8x32xf32>
      %483 = vector.extract_strided_slice %481 {offsets = [0, 32], sizes = [8, 32], strides = [1, 1]} : vector<8x96xf32> to vector<8x32xf32>
      %484 = vector.extract_strided_slice %481 {offsets = [0, 64], sizes = [8, 32], strides = [1, 1]} : vector<8x96xf32> to vector<8x32xf32>
      %485 = vector.extract_strided_slice %473 {offsets = [0, 96], sizes = [8, 32], strides = [1, 1]} : vector<8x128xf32> to vector<8x32xf32>
      %486 = math.tanh %485 : vector<8x32xf32>
      %487 = arith.mulf %483, %467 : vector<8x32xf32>
      %488 = arith.mulf %482, %486 : vector<8x32xf32>
      %489 = arith.addf %487, %488 : vector<8x32xf32>
      %490 = math.tanh %489 : vector<8x32xf32>
      %491 = arith.mulf %484, %490 : vector<8x32xf32>
      %492 = vector.shape_cast %383 : vector<8x1xi1> to vector<8x1xi1>
      %493 = vector.broadcast %492 : vector<8x1xi1> to vector<8x32xi1>
      %494 = arith.select %493, %489, %467 : vector<8x32xi1>, vector<8x32xf32>
      %495 = vector.shape_cast %383 : vector<8x1xi1> to vector<8x1xi1>
      %496 = vector.broadcast %495 : vector<8x1xi1> to vector<8x32xi1>
      %497 = arith.select %496, %491, %465 : vector<8x32xi1>, vector<8x32xf32>
      %c2_238 = arith.constant 2 : index
      %c0_239 = arith.constant 0 : index
      %c0_240 = arith.constant 0 : index
      %498 = vector.load %arg15[%c2_238, %c0_239, %c0_240] : memref<3x8x32xf32, #tpu.memory_space<vmem>>, vector<1x8x32xf32>
      %499 = vector.shape_cast %498 : vector<1x8x32xf32> to vector<8x32xf32>
      %500 = vector.shape_cast %494 : vector<8x32xf32> to vector<1x8x32xf32>
      tpu.vector_store %arg15[%c2_238, %c0_239, %c0_240], %500 {strides = array<i32>} : memref<3x8x32xf32, #tpu.memory_space<vmem>>, vector<1x8x32xf32>,
      %c2_241 = arith.constant 2 : index
      %c0_242 = arith.constant 0 : index
      %c0_243 = arith.constant 0 : index
      %501 = vector.load %arg14[%c2_241, %c0_242, %c0_243] : memref<3x8x32xf32, #tpu.memory_space<vmem>>, vector<1x8x32xf32>
      %502 = vector.shape_cast %501 : vector<1x8x32xf32> to vector<8x32xf32>
      %503 = vector.shape_cast %497 : vector<8x32xf32> to vector<1x8x32xf32>
      tpu.vector_store %arg14[%c2_241, %c0_242, %c0_243], %503 {strides = array<i32>} : memref<3x8x32xf32, #tpu.memory_space<vmem>>, vector<1x8x32xf32>,
      %c4_i32 = arith.constant 4 : i32
      %504 = arith.addi %0, %c4_i32 : i32
      %505 = vector.broadcast %504 : i32 to vector<8x1xi32>
      %506 = arith.cmpi slt, %505, %2 : vector<8x1xi32>
      %c0_244 = arith.constant 0 : index
      %c0_245 = arith.constant 0 : index
      %c0_246 = arith.constant 0 : index
      %507 = vector.load %arg14[%c0_244, %c0_245, %c0_246] : memref<3x8x32xf32, #tpu.memory_space<vmem>>, vector<1x8x32xf32>
      %508 = vector.shape_cast %507 : vector<1x8x32xf32> to vector<8x32xf32>
      %c0_247 = arith.constant 0 : index
      %c0_248 = arith.constant 0 : index
      %c0_249 = arith.constant 0 : index
      %509 = vector.load %arg15[%c0_247, %c0_248, %c0_249] : memref<3x8x32xf32, #tpu.memory_space<vmem>>, vector<1x8x32xf32>
      %510 = vector.shape_cast %509 : vector<1x8x32xf32> to vector<8x32xf32>
      %511 = arith.index_cast %c4_i32 : i32 to index
      %c0_250 = arith.constant 0 : index
      %c0_251 = arith.constant 0 : index
      %512 = vector.load %arg2[%511, %c0_250, %c0_251] : memref<8x8x128xf32, #tpu.memory_space<vmem>>, vector<1x8x128xf32>
      %513 = vector.shape_cast %512 : vector<1x8x128xf32> to vector<8x128xf32>
      %c0_252 = arith.constant 0 : index
      %c0_253 = arith.constant 0 : index
      %514 = vector.load %arg4[%c0_252, %c0_253] : memref<32x128xf32, #tpu.memory_space<vmem>>, vector<32x128xf32>
      %cst_254 = arith.constant dense<0.000000e+00> : vector<8x128xf32>
      %515 = tpu.matmul %508, %514, %cst_254 {dimension_numbers = #tpu.dot_dimension_numbers<[1], [0], [0], [1], [0, 0, 1, 1], [], []>} : vector<8x32xf32>, vector<32x128xf32>, vector<8x128xf32> -> vector<8x128xf32>
      %516 = arith.addf %513, %515 : vector<8x128xf32>
      %517 = vector.extract_strided_slice %516 {offsets = [0, 0], sizes = [8, 96], strides = [1, 1]} : vector<8x128xf32> to vector<8x96xf32>
      %cst_255 = arith.constant 5.000000e-01 : f32
      %518 = vector.broadcast %cst_255 : f32 to vector<8x96xf32>
      %519 = arith.mulf %518, %517 : vector<8x96xf32>
      %520 = math.tanh %519 : vector<8x96xf32>
      %cst_256 = arith.constant 5.000000e-01 : f32
      %521 = vector.broadcast %cst_256 : f32 to vector<8x96xf32>
      %522 = arith.mulf %521, %520 : vector<8x96xf32>
      %cst_257 = arith.constant 5.000000e-01 : f32
      %523 = vector.broadcast %cst_257 : f32 to vector<8x96xf32>
      %524 = arith.addf %522, %523 : vector<8x96xf32>
      %525 = vector.extract_strided_slice %524 {offsets = [0, 0], sizes = [8, 32], strides = [1, 1]} : vector<8x96xf32> to vector<8x32xf32>
      %526 = vector.extract_strided_slice %524 {offsets = [0, 32], sizes = [8, 32], strides = [1, 1]} : vector<8x96xf32> to vector<8x32xf32>
      %527 = vector.extract_strided_slice %524 {offsets = [0, 64], sizes = [8, 32], strides = [1, 1]} : vector<8x96xf32> to vector<8x32xf32>
      %528 = vector.extract_strided_slice %516 {offsets = [0, 96], sizes = [8, 32], strides = [1, 1]} : vector<8x128xf32> to vector<8x32xf32>
      %529 = math.tanh %528 : vector<8x32xf32>
      %530 = arith.mulf %526, %510 : vector<8x32xf32>
      %531 = arith.mulf %525, %529 : vector<8x32xf32>
      %532 = arith.addf %530, %531 : vector<8x32xf32>
      %533 = math.tanh %532 : vector<8x32xf32>
      %534 = arith.mulf %527, %533 : vector<8x32xf32>
      %535 = vector.shape_cast %506 : vector<8x1xi1> to vector<8x1xi1>
      %536 = vector.broadcast %535 : vector<8x1xi1> to vector<8x32xi1>
      %537 = arith.select %536, %532, %510 : vector<8x32xi1>, vector<8x32xf32>
      %538 = vector.shape_cast %506 : vector<8x1xi1> to vector<8x1xi1>
      %539 = vector.broadcast %538 : vector<8x1xi1> to vector<8x32xi1>
      %540 = arith.select %539, %534, %508 : vector<8x32xi1>, vector<8x32xf32>
      %c0_258 = arith.constant 0 : index
      %c0_259 = arith.constant 0 : index
      %c0_260 = arith.constant 0 : index
      %541 = vector.load %arg15[%c0_258, %c0_259, %c0_260] : memref<3x8x32xf32, #tpu.memory_space<vmem>>, vector<1x8x32xf32>
      %542 = vector.shape_cast %541 : vector<1x8x32xf32> to vector<8x32xf32>
      %543 = vector.shape_cast %537 : vector<8x32xf32> to vector<1x8x32xf32>
      tpu.vector_store %arg15[%c0_258, %c0_259, %c0_260], %543 {strides = array<i32>} : memref<3x8x32xf32, #tpu.memory_space<vmem>>, vector<1x8x32xf32>,
      %c0_261 = arith.constant 0 : index
      %c0_262 = arith.constant 0 : index
      %c0_263 = arith.constant 0 : index
      %544 = vector.load %arg14[%c0_261, %c0_262, %c0_263] : memref<3x8x32xf32, #tpu.memory_space<vmem>>, vector<1x8x32xf32>
      %545 = vector.shape_cast %544 : vector<1x8x32xf32> to vector<8x32xf32>
      %546 = vector.shape_cast %540 : vector<8x32xf32> to vector<1x8x32xf32>
      tpu.vector_store %arg14[%c0_261, %c0_262, %c0_263], %546 {strides = array<i32>} : memref<3x8x32xf32, #tpu.memory_space<vmem>>, vector<1x8x32xf32>,
      %c1_264 = arith.constant 1 : index
      %c0_265 = arith.constant 0 : index
      %c0_266 = arith.constant 0 : index
      %547 = vector.load %arg14[%c1_264, %c0_265, %c0_266] : memref<3x8x32xf32, #tpu.memory_space<vmem>>, vector<1x8x32xf32>
      %548 = vector.shape_cast %547 : vector<1x8x32xf32> to vector<8x32xf32>
      %c1_267 = arith.constant 1 : index
      %c0_268 = arith.constant 0 : index
      %c0_269 = arith.constant 0 : index
      %549 = vector.load %arg15[%c1_267, %c0_268, %c0_269] : memref<3x8x32xf32, #tpu.memory_space<vmem>>, vector<1x8x32xf32>
      %550 = vector.shape_cast %549 : vector<1x8x32xf32> to vector<8x32xf32>
      %c0_270 = arith.constant 0 : index
      %c0_271 = arith.constant 0 : index
      %551 = vector.load %arg5[%c0_270, %c0_271] : memref<64x128xf32, #tpu.memory_space<vmem>>, vector<64x128xf32>
      %c0_272 = arith.constant 0 : index
      %c0_273 = arith.constant 0 : index
      %552 = vector.load %arg6[%c0_272, %c0_273] : memref<1x128xf32, #tpu.memory_space<vmem>>, vector<1x128xf32>
      %553 = tpu.concatenate %540, %548 in 1 : vector<8x32xf32>, vector<8x32xf32> -> vector<8x64xf32>
      %cst_274 = arith.constant dense<0.000000e+00> : vector<8x128xf32>
      %554 = tpu.matmul %553, %551, %cst_274 {dimension_numbers = #tpu.dot_dimension_numbers<[1], [0], [0], [1], [0, 0, 1, 1], [], []>} : vector<8x64xf32>, vector<64x128xf32>, vector<8x128xf32> -> vector<8x128xf32>
      %555 = vector.broadcast %552 : vector<1x128xf32> to vector<8x128xf32>
      %556 = arith.addf %554, %555 : vector<8x128xf32>
      %557 = vector.extract_strided_slice %556 {offsets = [0, 0], sizes = [8, 96], strides = [1, 1]} : vector<8x128xf32> to vector<8x96xf32>
      %cst_275 = arith.constant 5.000000e-01 : f32
      %558 = vector.broadcast %cst_275 : f32 to vector<8x96xf32>
      %559 = arith.mulf %558, %557 : vector<8x96xf32>
      %560 = math.tanh %559 : vector<8x96xf32>
      %cst_276 = arith.constant 5.000000e-01 : f32
      %561 = vector.broadcast %cst_276 : f32 to vector<8x96xf32>
      %562 = arith.mulf %561, %560 : vector<8x96xf32>
      %cst_277 = arith.constant 5.000000e-01 : f32
      %563 = vector.broadcast %cst_277 : f32 to vector<8x96xf32>
      %564 = arith.addf %562, %563 : vector<8x96xf32>
      %565 = vector.extract_strided_slice %564 {offsets = [0, 0], sizes = [8, 32], strides = [1, 1]} : vector<8x96xf32> to vector<8x32xf32>
      %566 = vector.extract_strided_slice %564 {offsets = [0, 32], sizes = [8, 32], strides = [1, 1]} : vector<8x96xf32> to vector<8x32xf32>
      %567 = vector.extract_strided_slice %564 {offsets = [0, 64], sizes = [8, 32], strides = [1, 1]} : vector<8x96xf32> to vector<8x32xf32>
      %568 = vector.extract_strided_slice %556 {offsets = [0, 96], sizes = [8, 32], strides = [1, 1]} : vector<8x128xf32> to vector<8x32xf32>
      %569 = math.tanh %568 : vector<8x32xf32>
      %570 = arith.mulf %566, %550 : vector<8x32xf32>
      %571 = arith.mulf %565, %569 : vector<8x32xf32>
      %572 = arith.addf %570, %571 : vector<8x32xf32>
      %573 = math.tanh %572 : vector<8x32xf32>
      %574 = arith.mulf %567, %573 : vector<8x32xf32>
      %575 = vector.shape_cast %506 : vector<8x1xi1> to vector<8x1xi1>
      %576 = vector.broadcast %575 : vector<8x1xi1> to vector<8x32xi1>
      %577 = arith.select %576, %572, %550 : vector<8x32xi1>, vector<8x32xf32>
      %578 = vector.shape_cast %506 : vector<8x1xi1> to vector<8x1xi1>
      %579 = vector.broadcast %578 : vector<8x1xi1> to vector<8x32xi1>
      %580 = arith.select %579, %574, %548 : vector<8x32xi1>, vector<8x32xf32>
      %c1_278 = arith.constant 1 : index
      %c0_279 = arith.constant 0 : index
      %c0_280 = arith.constant 0 : index
      %581 = vector.load %arg15[%c1_278, %c0_279, %c0_280] : memref<3x8x32xf32, #tpu.memory_space<vmem>>, vector<1x8x32xf32>
      %582 = vector.shape_cast %581 : vector<1x8x32xf32> to vector<8x32xf32>
      %583 = vector.shape_cast %577 : vector<8x32xf32> to vector<1x8x32xf32>
      tpu.vector_store %arg15[%c1_278, %c0_279, %c0_280], %583 {strides = array<i32>} : memref<3x8x32xf32, #tpu.memory_space<vmem>>, vector<1x8x32xf32>,
      %c1_281 = arith.constant 1 : index
      %c0_282 = arith.constant 0 : index
      %c0_283 = arith.constant 0 : index
      %584 = vector.load %arg14[%c1_281, %c0_282, %c0_283] : memref<3x8x32xf32, #tpu.memory_space<vmem>>, vector<1x8x32xf32>
      %585 = vector.shape_cast %584 : vector<1x8x32xf32> to vector<8x32xf32>
      %586 = vector.shape_cast %580 : vector<8x32xf32> to vector<1x8x32xf32>
      tpu.vector_store %arg14[%c1_281, %c0_282, %c0_283], %586 {strides = array<i32>} : memref<3x8x32xf32, #tpu.memory_space<vmem>>, vector<1x8x32xf32>,
      %c2_284 = arith.constant 2 : index
      %c0_285 = arith.constant 0 : index
      %c0_286 = arith.constant 0 : index
      %587 = vector.load %arg14[%c2_284, %c0_285, %c0_286] : memref<3x8x32xf32, #tpu.memory_space<vmem>>, vector<1x8x32xf32>
      %588 = vector.shape_cast %587 : vector<1x8x32xf32> to vector<8x32xf32>
      %c2_287 = arith.constant 2 : index
      %c0_288 = arith.constant 0 : index
      %c0_289 = arith.constant 0 : index
      %589 = vector.load %arg15[%c2_287, %c0_288, %c0_289] : memref<3x8x32xf32, #tpu.memory_space<vmem>>, vector<1x8x32xf32>
      %590 = vector.shape_cast %589 : vector<1x8x32xf32> to vector<8x32xf32>
      %c0_290 = arith.constant 0 : index
      %c0_291 = arith.constant 0 : index
      %591 = vector.load %arg7[%c0_290, %c0_291] : memref<64x128xf32, #tpu.memory_space<vmem>>, vector<64x128xf32>
      %c0_292 = arith.constant 0 : index
      %c0_293 = arith.constant 0 : index
      %592 = vector.load %arg8[%c0_292, %c0_293] : memref<1x128xf32, #tpu.memory_space<vmem>>, vector<1x128xf32>
      %593 = tpu.concatenate %580, %588 in 1 : vector<8x32xf32>, vector<8x32xf32> -> vector<8x64xf32>
      %cst_294 = arith.constant dense<0.000000e+00> : vector<8x128xf32>
      %594 = tpu.matmul %593, %591, %cst_294 {dimension_numbers = #tpu.dot_dimension_numbers<[1], [0], [0], [1], [0, 0, 1, 1], [], []>} : vector<8x64xf32>, vector<64x128xf32>, vector<8x128xf32> -> vector<8x128xf32>
      %595 = vector.broadcast %592 : vector<1x128xf32> to vector<8x128xf32>
      %596 = arith.addf %594, %595 : vector<8x128xf32>
      %597 = vector.extract_strided_slice %596 {offsets = [0, 0], sizes = [8, 96], strides = [1, 1]} : vector<8x128xf32> to vector<8x96xf32>
      %cst_295 = arith.constant 5.000000e-01 : f32
      %598 = vector.broadcast %cst_295 : f32 to vector<8x96xf32>
      %599 = arith.mulf %598, %597 : vector<8x96xf32>
      %600 = math.tanh %599 : vector<8x96xf32>
      %cst_296 = arith.constant 5.000000e-01 : f32
      %601 = vector.broadcast %cst_296 : f32 to vector<8x96xf32>
      %602 = arith.mulf %601, %600 : vector<8x96xf32>
      %cst_297 = arith.constant 5.000000e-01 : f32
      %603 = vector.broadcast %cst_297 : f32 to vector<8x96xf32>
      %604 = arith.addf %602, %603 : vector<8x96xf32>
      %605 = vector.extract_strided_slice %604 {offsets = [0, 0], sizes = [8, 32], strides = [1, 1]} : vector<8x96xf32> to vector<8x32xf32>
      %606 = vector.extract_strided_slice %604 {offsets = [0, 32], sizes = [8, 32], strides = [1, 1]} : vector<8x96xf32> to vector<8x32xf32>
      %607 = vector.extract_strided_slice %604 {offsets = [0, 64], sizes = [8, 32], strides = [1, 1]} : vector<8x96xf32> to vector<8x32xf32>
      %608 = vector.extract_strided_slice %596 {offsets = [0, 96], sizes = [8, 32], strides = [1, 1]} : vector<8x128xf32> to vector<8x32xf32>
      %609 = math.tanh %608 : vector<8x32xf32>
      %610 = arith.mulf %606, %590 : vector<8x32xf32>
      %611 = arith.mulf %605, %609 : vector<8x32xf32>
      %612 = arith.addf %610, %611 : vector<8x32xf32>
      %613 = math.tanh %612 : vector<8x32xf32>
      %614 = arith.mulf %607, %613 : vector<8x32xf32>
      %615 = vector.shape_cast %506 : vector<8x1xi1> to vector<8x1xi1>
      %616 = vector.broadcast %615 : vector<8x1xi1> to vector<8x32xi1>
      %617 = arith.select %616, %612, %590 : vector<8x32xi1>, vector<8x32xf32>
      %618 = vector.shape_cast %506 : vector<8x1xi1> to vector<8x1xi1>
      %619 = vector.broadcast %618 : vector<8x1xi1> to vector<8x32xi1>
      %620 = arith.select %619, %614, %588 : vector<8x32xi1>, vector<8x32xf32>
      %c2_298 = arith.constant 2 : index
      %c0_299 = arith.constant 0 : index
      %c0_300 = arith.constant 0 : index
      %621 = vector.load %arg15[%c2_298, %c0_299, %c0_300] : memref<3x8x32xf32, #tpu.memory_space<vmem>>, vector<1x8x32xf32>
      %622 = vector.shape_cast %621 : vector<1x8x32xf32> to vector<8x32xf32>
      %623 = vector.shape_cast %617 : vector<8x32xf32> to vector<1x8x32xf32>
      tpu.vector_store %arg15[%c2_298, %c0_299, %c0_300], %623 {strides = array<i32>} : memref<3x8x32xf32, #tpu.memory_space<vmem>>, vector<1x8x32xf32>,
      %c2_301 = arith.constant 2 : index
      %c0_302 = arith.constant 0 : index
      %c0_303 = arith.constant 0 : index
      %624 = vector.load %arg14[%c2_301, %c0_302, %c0_303] : memref<3x8x32xf32, #tpu.memory_space<vmem>>, vector<1x8x32xf32>
      %625 = vector.shape_cast %624 : vector<1x8x32xf32> to vector<8x32xf32>
      %626 = vector.shape_cast %620 : vector<8x32xf32> to vector<1x8x32xf32>
      tpu.vector_store %arg14[%c2_301, %c0_302, %c0_303], %626 {strides = array<i32>} : memref<3x8x32xf32, #tpu.memory_space<vmem>>, vector<1x8x32xf32>,
      %c5_i32 = arith.constant 5 : i32
      %627 = arith.addi %0, %c5_i32 : i32
      %628 = vector.broadcast %627 : i32 to vector<8x1xi32>
      %629 = arith.cmpi slt, %628, %2 : vector<8x1xi32>
      %c0_304 = arith.constant 0 : index
      %c0_305 = arith.constant 0 : index
      %c0_306 = arith.constant 0 : index
      %630 = vector.load %arg14[%c0_304, %c0_305, %c0_306] : memref<3x8x32xf32, #tpu.memory_space<vmem>>, vector<1x8x32xf32>
      %631 = vector.shape_cast %630 : vector<1x8x32xf32> to vector<8x32xf32>
      %c0_307 = arith.constant 0 : index
      %c0_308 = arith.constant 0 : index
      %c0_309 = arith.constant 0 : index
      %632 = vector.load %arg15[%c0_307, %c0_308, %c0_309] : memref<3x8x32xf32, #tpu.memory_space<vmem>>, vector<1x8x32xf32>
      %633 = vector.shape_cast %632 : vector<1x8x32xf32> to vector<8x32xf32>
      %634 = arith.index_cast %c5_i32 : i32 to index
      %c0_310 = arith.constant 0 : index
      %c0_311 = arith.constant 0 : index
      %635 = vector.load %arg2[%634, %c0_310, %c0_311] : memref<8x8x128xf32, #tpu.memory_space<vmem>>, vector<1x8x128xf32>
      %636 = vector.shape_cast %635 : vector<1x8x128xf32> to vector<8x128xf32>
      %c0_312 = arith.constant 0 : index
      %c0_313 = arith.constant 0 : index
      %637 = vector.load %arg4[%c0_312, %c0_313] : memref<32x128xf32, #tpu.memory_space<vmem>>, vector<32x128xf32>
      %cst_314 = arith.constant dense<0.000000e+00> : vector<8x128xf32>
      %638 = tpu.matmul %631, %637, %cst_314 {dimension_numbers = #tpu.dot_dimension_numbers<[1], [0], [0], [1], [0, 0, 1, 1], [], []>} : vector<8x32xf32>, vector<32x128xf32>, vector<8x128xf32> -> vector<8x128xf32>
      %639 = arith.addf %636, %638 : vector<8x128xf32>
      %640 = vector.extract_strided_slice %639 {offsets = [0, 0], sizes = [8, 96], strides = [1, 1]} : vector<8x128xf32> to vector<8x96xf32>
      %cst_315 = arith.constant 5.000000e-01 : f32
      %641 = vector.broadcast %cst_315 : f32 to vector<8x96xf32>
      %642 = arith.mulf %641, %640 : vector<8x96xf32>
      %643 = math.tanh %642 : vector<8x96xf32>
      %cst_316 = arith.constant 5.000000e-01 : f32
      %644 = vector.broadcast %cst_316 : f32 to vector<8x96xf32>
      %645 = arith.mulf %644, %643 : vector<8x96xf32>
      %cst_317 = arith.constant 5.000000e-01 : f32
      %646 = vector.broadcast %cst_317 : f32 to vector<8x96xf32>
      %647 = arith.addf %645, %646 : vector<8x96xf32>
      %648 = vector.extract_strided_slice %647 {offsets = [0, 0], sizes = [8, 32], strides = [1, 1]} : vector<8x96xf32> to vector<8x32xf32>
      %649 = vector.extract_strided_slice %647 {offsets = [0, 32], sizes = [8, 32], strides = [1, 1]} : vector<8x96xf32> to vector<8x32xf32>
      %650 = vector.extract_strided_slice %647 {offsets = [0, 64], sizes = [8, 32], strides = [1, 1]} : vector<8x96xf32> to vector<8x32xf32>
      %651 = vector.extract_strided_slice %639 {offsets = [0, 96], sizes = [8, 32], strides = [1, 1]} : vector<8x128xf32> to vector<8x32xf32>
      %652 = math.tanh %651 : vector<8x32xf32>
      %653 = arith.mulf %649, %633 : vector<8x32xf32>
      %654 = arith.mulf %648, %652 : vector<8x32xf32>
      %655 = arith.addf %653, %654 : vector<8x32xf32>
      %656 = math.tanh %655 : vector<8x32xf32>
      %657 = arith.mulf %650, %656 : vector<8x32xf32>
      %658 = vector.shape_cast %629 : vector<8x1xi1> to vector<8x1xi1>
      %659 = vector.broadcast %658 : vector<8x1xi1> to vector<8x32xi1>
      %660 = arith.select %659, %655, %633 : vector<8x32xi1>, vector<8x32xf32>
      %661 = vector.shape_cast %629 : vector<8x1xi1> to vector<8x1xi1>
      %662 = vector.broadcast %661 : vector<8x1xi1> to vector<8x32xi1>
      %663 = arith.select %662, %657, %631 : vector<8x32xi1>, vector<8x32xf32>
      %c0_318 = arith.constant 0 : index
      %c0_319 = arith.constant 0 : index
      %c0_320 = arith.constant 0 : index
      %664 = vector.load %arg15[%c0_318, %c0_319, %c0_320] : memref<3x8x32xf32, #tpu.memory_space<vmem>>, vector<1x8x32xf32>
      %665 = vector.shape_cast %664 : vector<1x8x32xf32> to vector<8x32xf32>
      %666 = vector.shape_cast %660 : vector<8x32xf32> to vector<1x8x32xf32>
      tpu.vector_store %arg15[%c0_318, %c0_319, %c0_320], %666 {strides = array<i32>} : memref<3x8x32xf32, #tpu.memory_space<vmem>>, vector<1x8x32xf32>,
      %c0_321 = arith.constant 0 : index
      %c0_322 = arith.constant 0 : index
      %c0_323 = arith.constant 0 : index
      %667 = vector.load %arg14[%c0_321, %c0_322, %c0_323] : memref<3x8x32xf32, #tpu.memory_space<vmem>>, vector<1x8x32xf32>
      %668 = vector.shape_cast %667 : vector<1x8x32xf32> to vector<8x32xf32>
      %669 = vector.shape_cast %663 : vector<8x32xf32> to vector<1x8x32xf32>
      tpu.vector_store %arg14[%c0_321, %c0_322, %c0_323], %669 {strides = array<i32>} : memref<3x8x32xf32, #tpu.memory_space<vmem>>, vector<1x8x32xf32>,
      %c1_324 = arith.constant 1 : index
      %c0_325 = arith.constant 0 : index
      %c0_326 = arith.constant 0 : index
      %670 = vector.load %arg14[%c1_324, %c0_325, %c0_326] : memref<3x8x32xf32, #tpu.memory_space<vmem>>, vector<1x8x32xf32>
      %671 = vector.shape_cast %670 : vector<1x8x32xf32> to vector<8x32xf32>
      %c1_327 = arith.constant 1 : index
      %c0_328 = arith.constant 0 : index
      %c0_329 = arith.constant 0 : index
      %672 = vector.load %arg15[%c1_327, %c0_328, %c0_329] : memref<3x8x32xf32, #tpu.memory_space<vmem>>, vector<1x8x32xf32>
      %673 = vector.shape_cast %672 : vector<1x8x32xf32> to vector<8x32xf32>
      %c0_330 = arith.constant 0 : index
      %c0_331 = arith.constant 0 : index
      %674 = vector.load %arg5[%c0_330, %c0_331] : memref<64x128xf32, #tpu.memory_space<vmem>>, vector<64x128xf32>
      %c0_332 = arith.constant 0 : index
      %c0_333 = arith.constant 0 : index
      %675 = vector.load %arg6[%c0_332, %c0_333] : memref<1x128xf32, #tpu.memory_space<vmem>>, vector<1x128xf32>
      %676 = tpu.concatenate %663, %671 in 1 : vector<8x32xf32>, vector<8x32xf32> -> vector<8x64xf32>
      %cst_334 = arith.constant dense<0.000000e+00> : vector<8x128xf32>
      %677 = tpu.matmul %676, %674, %cst_334 {dimension_numbers = #tpu.dot_dimension_numbers<[1], [0], [0], [1], [0, 0, 1, 1], [], []>} : vector<8x64xf32>, vector<64x128xf32>, vector<8x128xf32> -> vector<8x128xf32>
      %678 = vector.broadcast %675 : vector<1x128xf32> to vector<8x128xf32>
      %679 = arith.addf %677, %678 : vector<8x128xf32>
      %680 = vector.extract_strided_slice %679 {offsets = [0, 0], sizes = [8, 96], strides = [1, 1]} : vector<8x128xf32> to vector<8x96xf32>
      %cst_335 = arith.constant 5.000000e-01 : f32
      %681 = vector.broadcast %cst_335 : f32 to vector<8x96xf32>
      %682 = arith.mulf %681, %680 : vector<8x96xf32>
      %683 = math.tanh %682 : vector<8x96xf32>
      %cst_336 = arith.constant 5.000000e-01 : f32
      %684 = vector.broadcast %cst_336 : f32 to vector<8x96xf32>
      %685 = arith.mulf %684, %683 : vector<8x96xf32>
      %cst_337 = arith.constant 5.000000e-01 : f32
      %686 = vector.broadcast %cst_337 : f32 to vector<8x96xf32>
      %687 = arith.addf %685, %686 : vector<8x96xf32>
      %688 = vector.extract_strided_slice %687 {offsets = [0, 0], sizes = [8, 32], strides = [1, 1]} : vector<8x96xf32> to vector<8x32xf32>
      %689 = vector.extract_strided_slice %687 {offsets = [0, 32], sizes = [8, 32], strides = [1, 1]} : vector<8x96xf32> to vector<8x32xf32>
      %690 = vector.extract_strided_slice %687 {offsets = [0, 64], sizes = [8, 32], strides = [1, 1]} : vector<8x96xf32> to vector<8x32xf32>
      %691 = vector.extract_strided_slice %679 {offsets = [0, 96], sizes = [8, 32], strides = [1, 1]} : vector<8x128xf32> to vector<8x32xf32>
      %692 = math.tanh %691 : vector<8x32xf32>
      %693 = arith.mulf %689, %673 : vector<8x32xf32>
      %694 = arith.mulf %688, %692 : vector<8x32xf32>
      %695 = arith.addf %693, %694 : vector<8x32xf32>
      %696 = math.tanh %695 : vector<8x32xf32>
      %697 = arith.mulf %690, %696 : vector<8x32xf32>
      %698 = vector.shape_cast %629 : vector<8x1xi1> to vector<8x1xi1>
      %699 = vector.broadcast %698 : vector<8x1xi1> to vector<8x32xi1>
      %700 = arith.select %699, %695, %673 : vector<8x32xi1>, vector<8x32xf32>
      %701 = vector.shape_cast %629 : vector<8x1xi1> to vector<8x1xi1>
      %702 = vector.broadcast %701 : vector<8x1xi1> to vector<8x32xi1>
      %703 = arith.select %702, %697, %671 : vector<8x32xi1>, vector<8x32xf32>
      %c1_338 = arith.constant 1 : index
      %c0_339 = arith.constant 0 : index
      %c0_340 = arith.constant 0 : index
      %704 = vector.load %arg15[%c1_338, %c0_339, %c0_340] : memref<3x8x32xf32, #tpu.memory_space<vmem>>, vector<1x8x32xf32>
      %705 = vector.shape_cast %704 : vector<1x8x32xf32> to vector<8x32xf32>
      %706 = vector.shape_cast %700 : vector<8x32xf32> to vector<1x8x32xf32>
      tpu.vector_store %arg15[%c1_338, %c0_339, %c0_340], %706 {strides = array<i32>} : memref<3x8x32xf32, #tpu.memory_space<vmem>>, vector<1x8x32xf32>,
      %c1_341 = arith.constant 1 : index
      %c0_342 = arith.constant 0 : index
      %c0_343 = arith.constant 0 : index
      %707 = vector.load %arg14[%c1_341, %c0_342, %c0_343] : memref<3x8x32xf32, #tpu.memory_space<vmem>>, vector<1x8x32xf32>
      %708 = vector.shape_cast %707 : vector<1x8x32xf32> to vector<8x32xf32>
      %709 = vector.shape_cast %703 : vector<8x32xf32> to vector<1x8x32xf32>
      tpu.vector_store %arg14[%c1_341, %c0_342, %c0_343], %709 {strides = array<i32>} : memref<3x8x32xf32, #tpu.memory_space<vmem>>, vector<1x8x32xf32>,
      %c2_344 = arith.constant 2 : index
      %c0_345 = arith.constant 0 : index
      %c0_346 = arith.constant 0 : index
      %710 = vector.load %arg14[%c2_344, %c0_345, %c0_346] : memref<3x8x32xf32, #tpu.memory_space<vmem>>, vector<1x8x32xf32>
      %711 = vector.shape_cast %710 : vector<1x8x32xf32> to vector<8x32xf32>
      %c2_347 = arith.constant 2 : index
      %c0_348 = arith.constant 0 : index
      %c0_349 = arith.constant 0 : index
      %712 = vector.load %arg15[%c2_347, %c0_348, %c0_349] : memref<3x8x32xf32, #tpu.memory_space<vmem>>, vector<1x8x32xf32>
      %713 = vector.shape_cast %712 : vector<1x8x32xf32> to vector<8x32xf32>
      %c0_350 = arith.constant 0 : index
      %c0_351 = arith.constant 0 : index
      %714 = vector.load %arg7[%c0_350, %c0_351] : memref<64x128xf32, #tpu.memory_space<vmem>>, vector<64x128xf32>
      %c0_352 = arith.constant 0 : index
      %c0_353 = arith.constant 0 : index
      %715 = vector.load %arg8[%c0_352, %c0_353] : memref<1x128xf32, #tpu.memory_space<vmem>>, vector<1x128xf32>
      %716 = tpu.concatenate %703, %711 in 1 : vector<8x32xf32>, vector<8x32xf32> -> vector<8x64xf32>
      %cst_354 = arith.constant dense<0.000000e+00> : vector<8x128xf32>
      %717 = tpu.matmul %716, %714, %cst_354 {dimension_numbers = #tpu.dot_dimension_numbers<[1], [0], [0], [1], [0, 0, 1, 1], [], []>} : vector<8x64xf32>, vector<64x128xf32>, vector<8x128xf32> -> vector<8x128xf32>
      %718 = vector.broadcast %715 : vector<1x128xf32> to vector<8x128xf32>
      %719 = arith.addf %717, %718 : vector<8x128xf32>
      %720 = vector.extract_strided_slice %719 {offsets = [0, 0], sizes = [8, 96], strides = [1, 1]} : vector<8x128xf32> to vector<8x96xf32>
      %cst_355 = arith.constant 5.000000e-01 : f32
      %721 = vector.broadcast %cst_355 : f32 to vector<8x96xf32>
      %722 = arith.mulf %721, %720 : vector<8x96xf32>
      %723 = math.tanh %722 : vector<8x96xf32>
      %cst_356 = arith.constant 5.000000e-01 : f32
      %724 = vector.broadcast %cst_356 : f32 to vector<8x96xf32>
      %725 = arith.mulf %724, %723 : vector<8x96xf32>
      %cst_357 = arith.constant 5.000000e-01 : f32
      %726 = vector.broadcast %cst_357 : f32 to vector<8x96xf32>
      %727 = arith.addf %725, %726 : vector<8x96xf32>
      %728 = vector.extract_strided_slice %727 {offsets = [0, 0], sizes = [8, 32], strides = [1, 1]} : vector<8x96xf32> to vector<8x32xf32>
      %729 = vector.extract_strided_slice %727 {offsets = [0, 32], sizes = [8, 32], strides = [1, 1]} : vector<8x96xf32> to vector<8x32xf32>
      %730 = vector.extract_strided_slice %727 {offsets = [0, 64], sizes = [8, 32], strides = [1, 1]} : vector<8x96xf32> to vector<8x32xf32>
      %731 = vector.extract_strided_slice %719 {offsets = [0, 96], sizes = [8, 32], strides = [1, 1]} : vector<8x128xf32> to vector<8x32xf32>
      %732 = math.tanh %731 : vector<8x32xf32>
      %733 = arith.mulf %729, %713 : vector<8x32xf32>
      %734 = arith.mulf %728, %732 : vector<8x32xf32>
      %735 = arith.addf %733, %734 : vector<8x32xf32>
      %736 = math.tanh %735 : vector<8x32xf32>
      %737 = arith.mulf %730, %736 : vector<8x32xf32>
      %738 = vector.shape_cast %629 : vector<8x1xi1> to vector<8x1xi1>
      %739 = vector.broadcast %738 : vector<8x1xi1> to vector<8x32xi1>
      %740 = arith.select %739, %735, %713 : vector<8x32xi1>, vector<8x32xf32>
      %741 = vector.shape_cast %629 : vector<8x1xi1> to vector<8x1xi1>
      %742 = vector.broadcast %741 : vector<8x1xi1> to vector<8x32xi1>
      %743 = arith.select %742, %737, %711 : vector<8x32xi1>, vector<8x32xf32>
      %c2_358 = arith.constant 2 : index
      %c0_359 = arith.constant 0 : index
      %c0_360 = arith.constant 0 : index
      %744 = vector.load %arg15[%c2_358, %c0_359, %c0_360] : memref<3x8x32xf32, #tpu.memory_space<vmem>>, vector<1x8x32xf32>
      %745 = vector.shape_cast %744 : vector<1x8x32xf32> to vector<8x32xf32>
      %746 = vector.shape_cast %740 : vector<8x32xf32> to vector<1x8x32xf32>
      tpu.vector_store %arg15[%c2_358, %c0_359, %c0_360], %746 {strides = array<i32>} : memref<3x8x32xf32, #tpu.memory_space<vmem>>, vector<1x8x32xf32>,
      %c2_361 = arith.constant 2 : index
      %c0_362 = arith.constant 0 : index
      %c0_363 = arith.constant 0 : index
      %747 = vector.load %arg14[%c2_361, %c0_362, %c0_363] : memref<3x8x32xf32, #tpu.memory_space<vmem>>, vector<1x8x32xf32>
      %748 = vector.shape_cast %747 : vector<1x8x32xf32> to vector<8x32xf32>
      %749 = vector.shape_cast %743 : vector<8x32xf32> to vector<1x8x32xf32>
      tpu.vector_store %arg14[%c2_361, %c0_362, %c0_363], %749 {strides = array<i32>} : memref<3x8x32xf32, #tpu.memory_space<vmem>>, vector<1x8x32xf32>,
      %c6_i32 = arith.constant 6 : i32
      %750 = arith.addi %0, %c6_i32 : i32
      %751 = vector.broadcast %750 : i32 to vector<8x1xi32>
      %752 = arith.cmpi slt, %751, %2 : vector<8x1xi32>
      %c0_364 = arith.constant 0 : index
      %c0_365 = arith.constant 0 : index
      %c0_366 = arith.constant 0 : index
      %753 = vector.load %arg14[%c0_364, %c0_365, %c0_366] : memref<3x8x32xf32, #tpu.memory_space<vmem>>, vector<1x8x32xf32>
      %754 = vector.shape_cast %753 : vector<1x8x32xf32> to vector<8x32xf32>
      %c0_367 = arith.constant 0 : index
      %c0_368 = arith.constant 0 : index
      %c0_369 = arith.constant 0 : index
      %755 = vector.load %arg15[%c0_367, %c0_368, %c0_369] : memref<3x8x32xf32, #tpu.memory_space<vmem>>, vector<1x8x32xf32>
      %756 = vector.shape_cast %755 : vector<1x8x32xf32> to vector<8x32xf32>
      %757 = arith.index_cast %c6_i32 : i32 to index
      %c0_370 = arith.constant 0 : index
      %c0_371 = arith.constant 0 : index
      %758 = vector.load %arg2[%757, %c0_370, %c0_371] : memref<8x8x128xf32, #tpu.memory_space<vmem>>, vector<1x8x128xf32>
      %759 = vector.shape_cast %758 : vector<1x8x128xf32> to vector<8x128xf32>
      %c0_372 = arith.constant 0 : index
      %c0_373 = arith.constant 0 : index
      %760 = vector.load %arg4[%c0_372, %c0_373] : memref<32x128xf32, #tpu.memory_space<vmem>>, vector<32x128xf32>
      %cst_374 = arith.constant dense<0.000000e+00> : vector<8x128xf32>
      %761 = tpu.matmul %754, %760, %cst_374 {dimension_numbers = #tpu.dot_dimension_numbers<[1], [0], [0], [1], [0, 0, 1, 1], [], []>} : vector<8x32xf32>, vector<32x128xf32>, vector<8x128xf32> -> vector<8x128xf32>
      %762 = arith.addf %759, %761 : vector<8x128xf32>
      %763 = vector.extract_strided_slice %762 {offsets = [0, 0], sizes = [8, 96], strides = [1, 1]} : vector<8x128xf32> to vector<8x96xf32>
      %cst_375 = arith.constant 5.000000e-01 : f32
      %764 = vector.broadcast %cst_375 : f32 to vector<8x96xf32>
      %765 = arith.mulf %764, %763 : vector<8x96xf32>
      %766 = math.tanh %765 : vector<8x96xf32>
      %cst_376 = arith.constant 5.000000e-01 : f32
      %767 = vector.broadcast %cst_376 : f32 to vector<8x96xf32>
      %768 = arith.mulf %767, %766 : vector<8x96xf32>
      %cst_377 = arith.constant 5.000000e-01 : f32
      %769 = vector.broadcast %cst_377 : f32 to vector<8x96xf32>
      %770 = arith.addf %768, %769 : vector<8x96xf32>
      %771 = vector.extract_strided_slice %770 {offsets = [0, 0], sizes = [8, 32], strides = [1, 1]} : vector<8x96xf32> to vector<8x32xf32>
      %772 = vector.extract_strided_slice %770 {offsets = [0, 32], sizes = [8, 32], strides = [1, 1]} : vector<8x96xf32> to vector<8x32xf32>
      %773 = vector.extract_strided_slice %770 {offsets = [0, 64], sizes = [8, 32], strides = [1, 1]} : vector<8x96xf32> to vector<8x32xf32>
      %774 = vector.extract_strided_slice %762 {offsets = [0, 96], sizes = [8, 32], strides = [1, 1]} : vector<8x128xf32> to vector<8x32xf32>
      %775 = math.tanh %774 : vector<8x32xf32>
      %776 = arith.mulf %772, %756 : vector<8x32xf32>
      %777 = arith.mulf %771, %775 : vector<8x32xf32>
      %778 = arith.addf %776, %777 : vector<8x32xf32>
      %779 = math.tanh %778 : vector<8x32xf32>
      %780 = arith.mulf %773, %779 : vector<8x32xf32>
      %781 = vector.shape_cast %752 : vector<8x1xi1> to vector<8x1xi1>
      %782 = vector.broadcast %781 : vector<8x1xi1> to vector<8x32xi1>
      %783 = arith.select %782, %778, %756 : vector<8x32xi1>, vector<8x32xf32>
      %784 = vector.shape_cast %752 : vector<8x1xi1> to vector<8x1xi1>
      %785 = vector.broadcast %784 : vector<8x1xi1> to vector<8x32xi1>
      %786 = arith.select %785, %780, %754 : vector<8x32xi1>, vector<8x32xf32>
      %c0_378 = arith.constant 0 : index
      %c0_379 = arith.constant 0 : index
      %c0_380 = arith.constant 0 : index
      %787 = vector.load %arg15[%c0_378, %c0_379, %c0_380] : memref<3x8x32xf32, #tpu.memory_space<vmem>>, vector<1x8x32xf32>
      %788 = vector.shape_cast %787 : vector<1x8x32xf32> to vector<8x32xf32>
      %789 = vector.shape_cast %783 : vector<8x32xf32> to vector<1x8x32xf32>
      tpu.vector_store %arg15[%c0_378, %c0_379, %c0_380], %789 {strides = array<i32>} : memref<3x8x32xf32, #tpu.memory_space<vmem>>, vector<1x8x32xf32>,
      %c0_381 = arith.constant 0 : index
      %c0_382 = arith.constant 0 : index
      %c0_383 = arith.constant 0 : index
      %790 = vector.load %arg14[%c0_381, %c0_382, %c0_383] : memref<3x8x32xf32, #tpu.memory_space<vmem>>, vector<1x8x32xf32>
      %791 = vector.shape_cast %790 : vector<1x8x32xf32> to vector<8x32xf32>
      %792 = vector.shape_cast %786 : vector<8x32xf32> to vector<1x8x32xf32>
      tpu.vector_store %arg14[%c0_381, %c0_382, %c0_383], %792 {strides = array<i32>} : memref<3x8x32xf32, #tpu.memory_space<vmem>>, vector<1x8x32xf32>,
      %c1_384 = arith.constant 1 : index
      %c0_385 = arith.constant 0 : index
      %c0_386 = arith.constant 0 : index
      %793 = vector.load %arg14[%c1_384, %c0_385, %c0_386] : memref<3x8x32xf32, #tpu.memory_space<vmem>>, vector<1x8x32xf32>
      %794 = vector.shape_cast %793 : vector<1x8x32xf32> to vector<8x32xf32>
      %c1_387 = arith.constant 1 : index
      %c0_388 = arith.constant 0 : index
      %c0_389 = arith.constant 0 : index
      %795 = vector.load %arg15[%c1_387, %c0_388, %c0_389] : memref<3x8x32xf32, #tpu.memory_space<vmem>>, vector<1x8x32xf32>
      %796 = vector.shape_cast %795 : vector<1x8x32xf32> to vector<8x32xf32>
      %c0_390 = arith.constant 0 : index
      %c0_391 = arith.constant 0 : index
      %797 = vector.load %arg5[%c0_390, %c0_391] : memref<64x128xf32, #tpu.memory_space<vmem>>, vector<64x128xf32>
      %c0_392 = arith.constant 0 : index
      %c0_393 = arith.constant 0 : index
      %798 = vector.load %arg6[%c0_392, %c0_393] : memref<1x128xf32, #tpu.memory_space<vmem>>, vector<1x128xf32>
      %799 = tpu.concatenate %786, %794 in 1 : vector<8x32xf32>, vector<8x32xf32> -> vector<8x64xf32>
      %cst_394 = arith.constant dense<0.000000e+00> : vector<8x128xf32>
      %800 = tpu.matmul %799, %797, %cst_394 {dimension_numbers = #tpu.dot_dimension_numbers<[1], [0], [0], [1], [0, 0, 1, 1], [], []>} : vector<8x64xf32>, vector<64x128xf32>, vector<8x128xf32> -> vector<8x128xf32>
      %801 = vector.broadcast %798 : vector<1x128xf32> to vector<8x128xf32>
      %802 = arith.addf %800, %801 : vector<8x128xf32>
      %803 = vector.extract_strided_slice %802 {offsets = [0, 0], sizes = [8, 96], strides = [1, 1]} : vector<8x128xf32> to vector<8x96xf32>
      %cst_395 = arith.constant 5.000000e-01 : f32
      %804 = vector.broadcast %cst_395 : f32 to vector<8x96xf32>
      %805 = arith.mulf %804, %803 : vector<8x96xf32>
      %806 = math.tanh %805 : vector<8x96xf32>
      %cst_396 = arith.constant 5.000000e-01 : f32
      %807 = vector.broadcast %cst_396 : f32 to vector<8x96xf32>
      %808 = arith.mulf %807, %806 : vector<8x96xf32>
      %cst_397 = arith.constant 5.000000e-01 : f32
      %809 = vector.broadcast %cst_397 : f32 to vector<8x96xf32>
      %810 = arith.addf %808, %809 : vector<8x96xf32>
      %811 = vector.extract_strided_slice %810 {offsets = [0, 0], sizes = [8, 32], strides = [1, 1]} : vector<8x96xf32> to vector<8x32xf32>
      %812 = vector.extract_strided_slice %810 {offsets = [0, 32], sizes = [8, 32], strides = [1, 1]} : vector<8x96xf32> to vector<8x32xf32>
      %813 = vector.extract_strided_slice %810 {offsets = [0, 64], sizes = [8, 32], strides = [1, 1]} : vector<8x96xf32> to vector<8x32xf32>
      %814 = vector.extract_strided_slice %802 {offsets = [0, 96], sizes = [8, 32], strides = [1, 1]} : vector<8x128xf32> to vector<8x32xf32>
      %815 = math.tanh %814 : vector<8x32xf32>
      %816 = arith.mulf %812, %796 : vector<8x32xf32>
      %817 = arith.mulf %811, %815 : vector<8x32xf32>
      %818 = arith.addf %816, %817 : vector<8x32xf32>
      %819 = math.tanh %818 : vector<8x32xf32>
      %820 = arith.mulf %813, %819 : vector<8x32xf32>
      %821 = vector.shape_cast %752 : vector<8x1xi1> to vector<8x1xi1>
      %822 = vector.broadcast %821 : vector<8x1xi1> to vector<8x32xi1>
      %823 = arith.select %822, %818, %796 : vector<8x32xi1>, vector<8x32xf32>
      %824 = vector.shape_cast %752 : vector<8x1xi1> to vector<8x1xi1>
      %825 = vector.broadcast %824 : vector<8x1xi1> to vector<8x32xi1>
      %826 = arith.select %825, %820, %794 : vector<8x32xi1>, vector<8x32xf32>
      %c1_398 = arith.constant 1 : index
      %c0_399 = arith.constant 0 : index
      %c0_400 = arith.constant 0 : index
      %827 = vector.load %arg15[%c1_398, %c0_399, %c0_400] : memref<3x8x32xf32, #tpu.memory_space<vmem>>, vector<1x8x32xf32>
      %828 = vector.shape_cast %827 : vector<1x8x32xf32> to vector<8x32xf32>
      %829 = vector.shape_cast %823 : vector<8x32xf32> to vector<1x8x32xf32>
      tpu.vector_store %arg15[%c1_398, %c0_399, %c0_400], %829 {strides = array<i32>} : memref<3x8x32xf32, #tpu.memory_space<vmem>>, vector<1x8x32xf32>,
      %c1_401 = arith.constant 1 : index
      %c0_402 = arith.constant 0 : index
      %c0_403 = arith.constant 0 : index
      %830 = vector.load %arg14[%c1_401, %c0_402, %c0_403] : memref<3x8x32xf32, #tpu.memory_space<vmem>>, vector<1x8x32xf32>
      %831 = vector.shape_cast %830 : vector<1x8x32xf32> to vector<8x32xf32>
      %832 = vector.shape_cast %826 : vector<8x32xf32> to vector<1x8x32xf32>
      tpu.vector_store %arg14[%c1_401, %c0_402, %c0_403], %832 {strides = array<i32>} : memref<3x8x32xf32, #tpu.memory_space<vmem>>, vector<1x8x32xf32>,
      %c2_404 = arith.constant 2 : index
      %c0_405 = arith.constant 0 : index
      %c0_406 = arith.constant 0 : index
      %833 = vector.load %arg14[%c2_404, %c0_405, %c0_406] : memref<3x8x32xf32, #tpu.memory_space<vmem>>, vector<1x8x32xf32>
      %834 = vector.shape_cast %833 : vector<1x8x32xf32> to vector<8x32xf32>
      %c2_407 = arith.constant 2 : index
      %c0_408 = arith.constant 0 : index
      %c0_409 = arith.constant 0 : index
      %835 = vector.load %arg15[%c2_407, %c0_408, %c0_409] : memref<3x8x32xf32, #tpu.memory_space<vmem>>, vector<1x8x32xf32>
      %836 = vector.shape_cast %835 : vector<1x8x32xf32> to vector<8x32xf32>
      %c0_410 = arith.constant 0 : index
      %c0_411 = arith.constant 0 : index
      %837 = vector.load %arg7[%c0_410, %c0_411] : memref<64x128xf32, #tpu.memory_space<vmem>>, vector<64x128xf32>
      %c0_412 = arith.constant 0 : index
      %c0_413 = arith.constant 0 : index
      %838 = vector.load %arg8[%c0_412, %c0_413] : memref<1x128xf32, #tpu.memory_space<vmem>>, vector<1x128xf32>
      %839 = tpu.concatenate %826, %834 in 1 : vector<8x32xf32>, vector<8x32xf32> -> vector<8x64xf32>
      %cst_414 = arith.constant dense<0.000000e+00> : vector<8x128xf32>
      %840 = tpu.matmul %839, %837, %cst_414 {dimension_numbers = #tpu.dot_dimension_numbers<[1], [0], [0], [1], [0, 0, 1, 1], [], []>} : vector<8x64xf32>, vector<64x128xf32>, vector<8x128xf32> -> vector<8x128xf32>
      %841 = vector.broadcast %838 : vector<1x128xf32> to vector<8x128xf32>
      %842 = arith.addf %840, %841 : vector<8x128xf32>
      %843 = vector.extract_strided_slice %842 {offsets = [0, 0], sizes = [8, 96], strides = [1, 1]} : vector<8x128xf32> to vector<8x96xf32>
      %cst_415 = arith.constant 5.000000e-01 : f32
      %844 = vector.broadcast %cst_415 : f32 to vector<8x96xf32>
      %845 = arith.mulf %844, %843 : vector<8x96xf32>
      %846 = math.tanh %845 : vector<8x96xf32>
      %cst_416 = arith.constant 5.000000e-01 : f32
      %847 = vector.broadcast %cst_416 : f32 to vector<8x96xf32>
      %848 = arith.mulf %847, %846 : vector<8x96xf32>
      %cst_417 = arith.constant 5.000000e-01 : f32
      %849 = vector.broadcast %cst_417 : f32 to vector<8x96xf32>
      %850 = arith.addf %848, %849 : vector<8x96xf32>
      %851 = vector.extract_strided_slice %850 {offsets = [0, 0], sizes = [8, 32], strides = [1, 1]} : vector<8x96xf32> to vector<8x32xf32>
      %852 = vector.extract_strided_slice %850 {offsets = [0, 32], sizes = [8, 32], strides = [1, 1]} : vector<8x96xf32> to vector<8x32xf32>
      %853 = vector.extract_strided_slice %850 {offsets = [0, 64], sizes = [8, 32], strides = [1, 1]} : vector<8x96xf32> to vector<8x32xf32>
      %854 = vector.extract_strided_slice %842 {offsets = [0, 96], sizes = [8, 32], strides = [1, 1]} : vector<8x128xf32> to vector<8x32xf32>
      %855 = math.tanh %854 : vector<8x32xf32>
      %856 = arith.mulf %852, %836 : vector<8x32xf32>
      %857 = arith.mulf %851, %855 : vector<8x32xf32>
      %858 = arith.addf %856, %857 : vector<8x32xf32>
      %859 = math.tanh %858 : vector<8x32xf32>
      %860 = arith.mulf %853, %859 : vector<8x32xf32>
      %861 = vector.shape_cast %752 : vector<8x1xi1> to vector<8x1xi1>
      %862 = vector.broadcast %861 : vector<8x1xi1> to vector<8x32xi1>
      %863 = arith.select %862, %858, %836 : vector<8x32xi1>, vector<8x32xf32>
      %864 = vector.shape_cast %752 : vector<8x1xi1> to vector<8x1xi1>
      %865 = vector.broadcast %864 : vector<8x1xi1> to vector<8x32xi1>
      %866 = arith.select %865, %860, %834 : vector<8x32xi1>, vector<8x32xf32>
      %c2_418 = arith.constant 2 : index
      %c0_419 = arith.constant 0 : index
      %c0_420 = arith.constant 0 : index
      %867 = vector.load %arg15[%c2_418, %c0_419, %c0_420] : memref<3x8x32xf32, #tpu.memory_space<vmem>>, vector<1x8x32xf32>
      %868 = vector.shape_cast %867 : vector<1x8x32xf32> to vector<8x32xf32>
      %869 = vector.shape_cast %863 : vector<8x32xf32> to vector<1x8x32xf32>
      tpu.vector_store %arg15[%c2_418, %c0_419, %c0_420], %869 {strides = array<i32>} : memref<3x8x32xf32, #tpu.memory_space<vmem>>, vector<1x8x32xf32>,
      %c2_421 = arith.constant 2 : index
      %c0_422 = arith.constant 0 : index
      %c0_423 = arith.constant 0 : index
      %870 = vector.load %arg14[%c2_421, %c0_422, %c0_423] : memref<3x8x32xf32, #tpu.memory_space<vmem>>, vector<1x8x32xf32>
      %871 = vector.shape_cast %870 : vector<1x8x32xf32> to vector<8x32xf32>
      %872 = vector.shape_cast %866 : vector<8x32xf32> to vector<1x8x32xf32>
      tpu.vector_store %arg14[%c2_421, %c0_422, %c0_423], %872 {strides = array<i32>} : memref<3x8x32xf32, #tpu.memory_space<vmem>>, vector<1x8x32xf32>,
      %c7_i32 = arith.constant 7 : i32
      %873 = arith.addi %0, %c7_i32 : i32
      %874 = vector.broadcast %873 : i32 to vector<8x1xi32>
      %875 = arith.cmpi slt, %874, %2 : vector<8x1xi32>
      %c0_424 = arith.constant 0 : index
      %c0_425 = arith.constant 0 : index
      %c0_426 = arith.constant 0 : index
      %876 = vector.load %arg14[%c0_424, %c0_425, %c0_426] : memref<3x8x32xf32, #tpu.memory_space<vmem>>, vector<1x8x32xf32>
      %877 = vector.shape_cast %876 : vector<1x8x32xf32> to vector<8x32xf32>
      %c0_427 = arith.constant 0 : index
      %c0_428 = arith.constant 0 : index
      %c0_429 = arith.constant 0 : index
      %878 = vector.load %arg15[%c0_427, %c0_428, %c0_429] : memref<3x8x32xf32, #tpu.memory_space<vmem>>, vector<1x8x32xf32>
      %879 = vector.shape_cast %878 : vector<1x8x32xf32> to vector<8x32xf32>
      %880 = arith.index_cast %c7_i32 : i32 to index
      %c0_430 = arith.constant 0 : index
      %c0_431 = arith.constant 0 : index
      %881 = vector.load %arg2[%880, %c0_430, %c0_431] : memref<8x8x128xf32, #tpu.memory_space<vmem>>, vector<1x8x128xf32>
      %882 = vector.shape_cast %881 : vector<1x8x128xf32> to vector<8x128xf32>
      %c0_432 = arith.constant 0 : index
      %c0_433 = arith.constant 0 : index
      %883 = vector.load %arg4[%c0_432, %c0_433] : memref<32x128xf32, #tpu.memory_space<vmem>>, vector<32x128xf32>
      %cst_434 = arith.constant dense<0.000000e+00> : vector<8x128xf32>
      %884 = tpu.matmul %877, %883, %cst_434 {dimension_numbers = #tpu.dot_dimension_numbers<[1], [0], [0], [1], [0, 0, 1, 1], [], []>} : vector<8x32xf32>, vector<32x128xf32>, vector<8x128xf32> -> vector<8x128xf32>
      %885 = arith.addf %882, %884 : vector<8x128xf32>
      %886 = vector.extract_strided_slice %885 {offsets = [0, 0], sizes = [8, 96], strides = [1, 1]} : vector<8x128xf32> to vector<8x96xf32>
      %cst_435 = arith.constant 5.000000e-01 : f32
      %887 = vector.broadcast %cst_435 : f32 to vector<8x96xf32>
      %888 = arith.mulf %887, %886 : vector<8x96xf32>
      %889 = math.tanh %888 : vector<8x96xf32>
      %cst_436 = arith.constant 5.000000e-01 : f32
      %890 = vector.broadcast %cst_436 : f32 to vector<8x96xf32>
      %891 = arith.mulf %890, %889 : vector<8x96xf32>
      %cst_437 = arith.constant 5.000000e-01 : f32
      %892 = vector.broadcast %cst_437 : f32 to vector<8x96xf32>
      %893 = arith.addf %891, %892 : vector<8x96xf32>
      %894 = vector.extract_strided_slice %893 {offsets = [0, 0], sizes = [8, 32], strides = [1, 1]} : vector<8x96xf32> to vector<8x32xf32>
      %895 = vector.extract_strided_slice %893 {offsets = [0, 32], sizes = [8, 32], strides = [1, 1]} : vector<8x96xf32> to vector<8x32xf32>
      %896 = vector.extract_strided_slice %893 {offsets = [0, 64], sizes = [8, 32], strides = [1, 1]} : vector<8x96xf32> to vector<8x32xf32>
      %897 = vector.extract_strided_slice %885 {offsets = [0, 96], sizes = [8, 32], strides = [1, 1]} : vector<8x128xf32> to vector<8x32xf32>
      %898 = math.tanh %897 : vector<8x32xf32>
      %899 = arith.mulf %895, %879 : vector<8x32xf32>
      %900 = arith.mulf %894, %898 : vector<8x32xf32>
      %901 = arith.addf %899, %900 : vector<8x32xf32>
      %902 = math.tanh %901 : vector<8x32xf32>
      %903 = arith.mulf %896, %902 : vector<8x32xf32>
      %904 = vector.shape_cast %875 : vector<8x1xi1> to vector<8x1xi1>
      %905 = vector.broadcast %904 : vector<8x1xi1> to vector<8x32xi1>
      %906 = arith.select %905, %901, %879 : vector<8x32xi1>, vector<8x32xf32>
      %907 = vector.shape_cast %875 : vector<8x1xi1> to vector<8x1xi1>
      %908 = vector.broadcast %907 : vector<8x1xi1> to vector<8x32xi1>
      %909 = arith.select %908, %903, %877 : vector<8x32xi1>, vector<8x32xf32>
      %c0_438 = arith.constant 0 : index
      %c0_439 = arith.constant 0 : index
      %c0_440 = arith.constant 0 : index
      %910 = vector.load %arg15[%c0_438, %c0_439, %c0_440] : memref<3x8x32xf32, #tpu.memory_space<vmem>>, vector<1x8x32xf32>
      %911 = vector.shape_cast %910 : vector<1x8x32xf32> to vector<8x32xf32>
      %912 = vector.shape_cast %906 : vector<8x32xf32> to vector<1x8x32xf32>
      tpu.vector_store %arg15[%c0_438, %c0_439, %c0_440], %912 {strides = array<i32>} : memref<3x8x32xf32, #tpu.memory_space<vmem>>, vector<1x8x32xf32>,
      %c0_441 = arith.constant 0 : index
      %c0_442 = arith.constant 0 : index
      %c0_443 = arith.constant 0 : index
      %913 = vector.load %arg14[%c0_441, %c0_442, %c0_443] : memref<3x8x32xf32, #tpu.memory_space<vmem>>, vector<1x8x32xf32>
      %914 = vector.shape_cast %913 : vector<1x8x32xf32> to vector<8x32xf32>
      %915 = vector.shape_cast %909 : vector<8x32xf32> to vector<1x8x32xf32>
      tpu.vector_store %arg14[%c0_441, %c0_442, %c0_443], %915 {strides = array<i32>} : memref<3x8x32xf32, #tpu.memory_space<vmem>>, vector<1x8x32xf32>,
      %c1_444 = arith.constant 1 : index
      %c0_445 = arith.constant 0 : index
      %c0_446 = arith.constant 0 : index
      %916 = vector.load %arg14[%c1_444, %c0_445, %c0_446] : memref<3x8x32xf32, #tpu.memory_space<vmem>>, vector<1x8x32xf32>
      %917 = vector.shape_cast %916 : vector<1x8x32xf32> to vector<8x32xf32>
      %c1_447 = arith.constant 1 : index
      %c0_448 = arith.constant 0 : index
      %c0_449 = arith.constant 0 : index
      %918 = vector.load %arg15[%c1_447, %c0_448, %c0_449] : memref<3x8x32xf32, #tpu.memory_space<vmem>>, vector<1x8x32xf32>
      %919 = vector.shape_cast %918 : vector<1x8x32xf32> to vector<8x32xf32>
      %c0_450 = arith.constant 0 : index
      %c0_451 = arith.constant 0 : index
      %920 = vector.load %arg5[%c0_450, %c0_451] : memref<64x128xf32, #tpu.memory_space<vmem>>, vector<64x128xf32>
      %c0_452 = arith.constant 0 : index
      %c0_453 = arith.constant 0 : index
      %921 = vector.load %arg6[%c0_452, %c0_453] : memref<1x128xf32, #tpu.memory_space<vmem>>, vector<1x128xf32>
      %922 = tpu.concatenate %909, %917 in 1 : vector<8x32xf32>, vector<8x32xf32> -> vector<8x64xf32>
      %cst_454 = arith.constant dense<0.000000e+00> : vector<8x128xf32>
      %923 = tpu.matmul %922, %920, %cst_454 {dimension_numbers = #tpu.dot_dimension_numbers<[1], [0], [0], [1], [0, 0, 1, 1], [], []>} : vector<8x64xf32>, vector<64x128xf32>, vector<8x128xf32> -> vector<8x128xf32>
      %924 = vector.broadcast %921 : vector<1x128xf32> to vector<8x128xf32>
      %925 = arith.addf %923, %924 : vector<8x128xf32>
      %926 = vector.extract_strided_slice %925 {offsets = [0, 0], sizes = [8, 96], strides = [1, 1]} : vector<8x128xf32> to vector<8x96xf32>
      %cst_455 = arith.constant 5.000000e-01 : f32
      %927 = vector.broadcast %cst_455 : f32 to vector<8x96xf32>
      %928 = arith.mulf %927, %926 : vector<8x96xf32>
      %929 = math.tanh %928 : vector<8x96xf32>
      %cst_456 = arith.constant 5.000000e-01 : f32
      %930 = vector.broadcast %cst_456 : f32 to vector<8x96xf32>
      %931 = arith.mulf %930, %929 : vector<8x96xf32>
      %cst_457 = arith.constant 5.000000e-01 : f32
      %932 = vector.broadcast %cst_457 : f32 to vector<8x96xf32>
      %933 = arith.addf %931, %932 : vector<8x96xf32>
      %934 = vector.extract_strided_slice %933 {offsets = [0, 0], sizes = [8, 32], strides = [1, 1]} : vector<8x96xf32> to vector<8x32xf32>
      %935 = vector.extract_strided_slice %933 {offsets = [0, 32], sizes = [8, 32], strides = [1, 1]} : vector<8x96xf32> to vector<8x32xf32>
      %936 = vector.extract_strided_slice %933 {offsets = [0, 64], sizes = [8, 32], strides = [1, 1]} : vector<8x96xf32> to vector<8x32xf32>
      %937 = vector.extract_strided_slice %925 {offsets = [0, 96], sizes = [8, 32], strides = [1, 1]} : vector<8x128xf32> to vector<8x32xf32>
      %938 = math.tanh %937 : vector<8x32xf32>
      %939 = arith.mulf %935, %919 : vector<8x32xf32>
      %940 = arith.mulf %934, %938 : vector<8x32xf32>
      %941 = arith.addf %939, %940 : vector<8x32xf32>
      %942 = math.tanh %941 : vector<8x32xf32>
      %943 = arith.mulf %936, %942 : vector<8x32xf32>
      %944 = vector.shape_cast %875 : vector<8x1xi1> to vector<8x1xi1>
      %945 = vector.broadcast %944 : vector<8x1xi1> to vector<8x32xi1>
      %946 = arith.select %945, %941, %919 : vector<8x32xi1>, vector<8x32xf32>
      %947 = vector.shape_cast %875 : vector<8x1xi1> to vector<8x1xi1>
      %948 = vector.broadcast %947 : vector<8x1xi1> to vector<8x32xi1>
      %949 = arith.select %948, %943, %917 : vector<8x32xi1>, vector<8x32xf32>
      %c1_458 = arith.constant 1 : index
      %c0_459 = arith.constant 0 : index
      %c0_460 = arith.constant 0 : index
      %950 = vector.load %arg15[%c1_458, %c0_459, %c0_460] : memref<3x8x32xf32, #tpu.memory_space<vmem>>, vector<1x8x32xf32>
      %951 = vector.shape_cast %950 : vector<1x8x32xf32> to vector<8x32xf32>
      %952 = vector.shape_cast %946 : vector<8x32xf32> to vector<1x8x32xf32>
      tpu.vector_store %arg15[%c1_458, %c0_459, %c0_460], %952 {strides = array<i32>} : memref<3x8x32xf32, #tpu.memory_space<vmem>>, vector<1x8x32xf32>,
      %c1_461 = arith.constant 1 : index
      %c0_462 = arith.constant 0 : index
      %c0_463 = arith.constant 0 : index
      %953 = vector.load %arg14[%c1_461, %c0_462, %c0_463] : memref<3x8x32xf32, #tpu.memory_space<vmem>>, vector<1x8x32xf32>
      %954 = vector.shape_cast %953 : vector<1x8x32xf32> to vector<8x32xf32>
      %955 = vector.shape_cast %949 : vector<8x32xf32> to vector<1x8x32xf32>
      tpu.vector_store %arg14[%c1_461, %c0_462, %c0_463], %955 {strides = array<i32>} : memref<3x8x32xf32, #tpu.memory_space<vmem>>, vector<1x8x32xf32>,
      %c2_464 = arith.constant 2 : index
      %c0_465 = arith.constant 0 : index
      %c0_466 = arith.constant 0 : index
      %956 = vector.load %arg14[%c2_464, %c0_465, %c0_466] : memref<3x8x32xf32, #tpu.memory_space<vmem>>, vector<1x8x32xf32>
      %957 = vector.shape_cast %956 : vector<1x8x32xf32> to vector<8x32xf32>
      %c2_467 = arith.constant 2 : index
      %c0_468 = arith.constant 0 : index
      %c0_469 = arith.constant 0 : index
      %958 = vector.load %arg15[%c2_467, %c0_468, %c0_469] : memref<3x8x32xf32, #tpu.memory_space<vmem>>, vector<1x8x32xf32>
      %959 = vector.shape_cast %958 : vector<1x8x32xf32> to vector<8x32xf32>
      %c0_470 = arith.constant 0 : index
      %c0_471 = arith.constant 0 : index
      %960 = vector.load %arg7[%c0_470, %c0_471] : memref<64x128xf32, #tpu.memory_space<vmem>>, vector<64x128xf32>
      %c0_472 = arith.constant 0 : index
      %c0_473 = arith.constant 0 : index
      %961 = vector.load %arg8[%c0_472, %c0_473] : memref<1x128xf32, #tpu.memory_space<vmem>>, vector<1x128xf32>
      %962 = tpu.concatenate %949, %957 in 1 : vector<8x32xf32>, vector<8x32xf32> -> vector<8x64xf32>
      %cst_474 = arith.constant dense<0.000000e+00> : vector<8x128xf32>
      %963 = tpu.matmul %962, %960, %cst_474 {dimension_numbers = #tpu.dot_dimension_numbers<[1], [0], [0], [1], [0, 0, 1, 1], [], []>} : vector<8x64xf32>, vector<64x128xf32>, vector<8x128xf32> -> vector<8x128xf32>
      %964 = vector.broadcast %961 : vector<1x128xf32> to vector<8x128xf32>
      %965 = arith.addf %963, %964 : vector<8x128xf32>
      %966 = vector.extract_strided_slice %965 {offsets = [0, 0], sizes = [8, 96], strides = [1, 1]} : vector<8x128xf32> to vector<8x96xf32>
      %cst_475 = arith.constant 5.000000e-01 : f32
      %967 = vector.broadcast %cst_475 : f32 to vector<8x96xf32>
      %968 = arith.mulf %967, %966 : vector<8x96xf32>
      %969 = math.tanh %968 : vector<8x96xf32>
      %cst_476 = arith.constant 5.000000e-01 : f32
      %970 = vector.broadcast %cst_476 : f32 to vector<8x96xf32>
      %971 = arith.mulf %970, %969 : vector<8x96xf32>
      %cst_477 = arith.constant 5.000000e-01 : f32
      %972 = vector.broadcast %cst_477 : f32 to vector<8x96xf32>
      %973 = arith.addf %971, %972 : vector<8x96xf32>
      %974 = vector.extract_strided_slice %973 {offsets = [0, 0], sizes = [8, 32], strides = [1, 1]} : vector<8x96xf32> to vector<8x32xf32>
      %975 = vector.extract_strided_slice %973 {offsets = [0, 32], sizes = [8, 32], strides = [1, 1]} : vector<8x96xf32> to vector<8x32xf32>
      %976 = vector.extract_strided_slice %973 {offsets = [0, 64], sizes = [8, 32], strides = [1, 1]} : vector<8x96xf32> to vector<8x32xf32>
      %977 = vector.extract_strided_slice %965 {offsets = [0, 96], sizes = [8, 32], strides = [1, 1]} : vector<8x128xf32> to vector<8x32xf32>
      %978 = math.tanh %977 : vector<8x32xf32>
      %979 = arith.mulf %975, %959 : vector<8x32xf32>
      %980 = arith.mulf %974, %978 : vector<8x32xf32>
      %981 = arith.addf %979, %980 : vector<8x32xf32>
      %982 = math.tanh %981 : vector<8x32xf32>
      %983 = arith.mulf %976, %982 : vector<8x32xf32>
      %984 = vector.shape_cast %875 : vector<8x1xi1> to vector<8x1xi1>
      %985 = vector.broadcast %984 : vector<8x1xi1> to vector<8x32xi1>
      %986 = arith.select %985, %981, %959 : vector<8x32xi1>, vector<8x32xf32>
      %987 = vector.shape_cast %875 : vector<8x1xi1> to vector<8x1xi1>
      %988 = vector.broadcast %987 : vector<8x1xi1> to vector<8x32xi1>
      %989 = arith.select %988, %983, %957 : vector<8x32xi1>, vector<8x32xf32>
      %c2_478 = arith.constant 2 : index
      %c0_479 = arith.constant 0 : index
      %c0_480 = arith.constant 0 : index
      %990 = vector.load %arg15[%c2_478, %c0_479, %c0_480] : memref<3x8x32xf32, #tpu.memory_space<vmem>>, vector<1x8x32xf32>
      %991 = vector.shape_cast %990 : vector<1x8x32xf32> to vector<8x32xf32>
      %992 = vector.shape_cast %986 : vector<8x32xf32> to vector<1x8x32xf32>
      tpu.vector_store %arg15[%c2_478, %c0_479, %c0_480], %992 {strides = array<i32>} : memref<3x8x32xf32, #tpu.memory_space<vmem>>, vector<1x8x32xf32>,
      %c2_481 = arith.constant 2 : index
      %c0_482 = arith.constant 0 : index
      %c0_483 = arith.constant 0 : index
      %993 = vector.load %arg14[%c2_481, %c0_482, %c0_483] : memref<3x8x32xf32, #tpu.memory_space<vmem>>, vector<1x8x32xf32>
      %994 = vector.shape_cast %993 : vector<1x8x32xf32> to vector<8x32xf32>
      %995 = vector.shape_cast %989 : vector<8x32xf32> to vector<1x8x32xf32>
      tpu.vector_store %arg14[%c2_481, %c0_482, %c0_483], %995 {strides = array<i32>} : memref<3x8x32xf32, #tpu.memory_space<vmem>>, vector<1x8x32xf32>,
      %c8_i32_484 = arith.constant 8 : i32
    } else {
    }
    %c2_i32 = arith.constant 2 : i32
    %9 = arith.cmpi eq, %arg0, %c2_i32 : i32
    %10 = arith.extui %9 : i1 to i32
    %c0_i32_4 = arith.constant 0 : i32
    %11 = arith.cmpi ne, %10, %c0_i32_4 : i32
    scf.if %11 {
      %12 = vector.broadcast %1 : i32 to vector<8x1xi32>
      %13 = arith.cmpi eq, %2, %12 : vector<8x1xi32>
      %c2 = arith.constant 2 : index
      %c0_5 = arith.constant 0 : index
      %c0_6 = arith.constant 0 : index
      %14 = vector.load %arg14[%c2, %c0_5, %c0_6] : memref<3x8x32xf32, #tpu.memory_space<vmem>>, vector<1x8x32xf32>
      %15 = vector.shape_cast %14 : vector<1x8x32xf32> to vector<8x32xf32>
      %cst = arith.constant 0.000000e+00 : f32
      %16 = vector.shape_cast %13 : vector<8x1xi1> to vector<8x1xi1>
      %17 = vector.broadcast %16 : vector<8x1xi1> to vector<8x32xi1>
      %18 = vector.broadcast %cst : f32 to vector<8x32xf32>
      %19 = arith.select %17, %15, %18 : vector<8x32xi1>, vector<8x32xf32>
      %c0_7 = arith.constant 0 : index
      %c0_8 = arith.constant 0 : index
      %20 = vector.load %arg9[%c0_7, %c0_8] : memref<32x32xf32, #tpu.memory_space<vmem>>, vector<32x32xf32>
      %cst_9 = arith.constant dense<0.000000e+00> : vector<8x32xf32>
      %21 = tpu.matmul %19, %20, %cst_9 {dimension_numbers = #tpu.dot_dimension_numbers<[1], [0], [0], [1], [0, 0, 1, 1], [], []>} : vector<8x32xf32>, vector<32x32xf32>, vector<8x32xf32> -> vector<8x32xf32>
      %c0_10 = arith.constant 0 : index
      %c0_11 = arith.constant 0 : index
      %22 = vector.load %arg10[%c0_10, %c0_11] : memref<1x32xf32, #tpu.memory_space<vmem>>, vector<1x32xf32>
      %23 = vector.broadcast %22 : vector<1x32xf32> to vector<8x32xf32>
      %24 = arith.addf %21, %23 : vector<8x32xf32>
      %cst_12 = arith.constant 0.000000e+00 : f32
      %25 = vector.broadcast %cst_12 : f32 to vector<8x32xf32>
      %26 = arith.maximumf %24, %25 : vector<8x32xf32>
      %c0_13 = arith.constant 0 : index
      %c0_14 = arith.constant 0 : index
      %27 = vector.load %arg11[%c0_13, %c0_14] : memref<32x128xf32, #tpu.memory_space<vmem>>, vector<32x128xf32>
      %cst_15 = arith.constant dense<0.000000e+00> : vector<8x128xf32>
      %28 = tpu.matmul %26, %27, %cst_15 {dimension_numbers = #tpu.dot_dimension_numbers<[1], [0], [0], [1], [0, 0, 1, 1], [], []>} : vector<8x32xf32>, vector<32x128xf32>, vector<8x128xf32> -> vector<8x128xf32>
      %c0_16 = arith.constant 0 : index
      %c0_17 = arith.constant 0 : index
      %29 = vector.load %arg12[%c0_16, %c0_17] : memref<1x128xf32, #tpu.memory_space<vmem>>, vector<1x128xf32>
      %30 = vector.broadcast %29 : vector<1x128xf32> to vector<8x128xf32>
      %31 = arith.addf %28, %30 : vector<8x128xf32>
      %c0_18 = arith.constant 0 : index
      %c0_19 = arith.constant 0 : index
      %32 = vector.load %arg13[%c0_18, %c0_19] : memref<8x128xf32, #tpu.memory_space<vmem>>, vector<8x128xf32>
      tpu.vector_store %arg13[%c0_18, %c0_19], %31 {strides = array<i32>} : memref<8x128xf32, #tpu.memory_space<vmem>>, vector<8x128xf32>,
    } else {
    }
    return
  }
  func.func @transform_0(%arg0: i32, %arg1: memref<1xi32, #tpu.memory_space<smem>>) -> (i32, i32, i32) {
    %c0_i32 = arith.constant 0 : i32
    %c0_i32_0 = arith.constant 0 : i32
    %c0_i32_1 = arith.constant 0 : i32
    return %arg0, %c0_i32, %c0_i32_0 : i32, i32, i32
  }
  func.func @transform_1(%arg0: i32, %arg1: memref<1xi32, #tpu.memory_space<smem>>) -> (i32, i32) {
    %c0_i32 = arith.constant 0 : i32
    %c0_i32_0 = arith.constant 0 : i32
    %c0_i32_1 = arith.constant 0 : i32
    return %c0_i32, %c0_i32_0 : i32, i32
  }
  func.func @transform_2(%arg0: i32, %arg1: memref<1xi32, #tpu.memory_space<smem>>) -> (i32, i32) {
    %c0_i32 = arith.constant 0 : i32
    %c0_i32_0 = arith.constant 0 : i32
    %c0_i32_1 = arith.constant 0 : i32
    return %c0_i32, %c0_i32_0 : i32, i32
  }
  func.func @transform_3(%arg0: i32, %arg1: memref<1xi32, #tpu.memory_space<smem>>) -> (i32, i32) {
    %c0_i32 = arith.constant 0 : i32
    %c0_i32_0 = arith.constant 0 : i32
    %c0_i32_1 = arith.constant 0 : i32
    return %c0_i32, %c0_i32_0 : i32, i32
  }
  func.func @transform_4(%arg0: i32, %arg1: memref<1xi32, #tpu.memory_space<smem>>) -> (i32, i32) {
    %c0_i32 = arith.constant 0 : i32
    %c0_i32_0 = arith.constant 0 : i32
    %c0_i32_1 = arith.constant 0 : i32
    return %c0_i32, %c0_i32_0 : i32, i32
  }
  func.func @transform_5(%arg0: i32, %arg1: memref<1xi32, #tpu.memory_space<smem>>) -> (i32, i32) {
    %c0_i32 = arith.constant 0 : i32
    %c0_i32_0 = arith.constant 0 : i32
    %c0_i32_1 = arith.constant 0 : i32
    return %c0_i32, %c0_i32_0 : i32, i32
  }
  func.func @transform_6(%arg0: i32, %arg1: memref<1xi32, #tpu.memory_space<smem>>) -> (i32, i32) {
    %c0_i32 = arith.constant 0 : i32
    %c0_i32_0 = arith.constant 0 : i32
    %c0_i32_1 = arith.constant 0 : i32
    return %c0_i32, %c0_i32_0 : i32, i32
  }
  func.func @transform_7(%arg0: i32, %arg1: memref<1xi32, #tpu.memory_space<smem>>) -> (i32, i32) {
    %c0_i32 = arith.constant 0 : i32
    %c0_i32_0 = arith.constant 0 : i32
    %c0_i32_1 = arith.constant 0 : i32
    return %c0_i32, %c0_i32_0 : i32, i32
  }
  func.func @transform_8(%arg0: i32, %arg1: memref<1xi32, #tpu.memory_space<smem>>) -> (i32, i32) {
    %c0_i32 = arith.constant 0 : i32
    %c0_i32_0 = arith.constant 0 : i32
    %c0_i32_1 = arith.constant 0 : i32
    return %c0_i32, %c0_i32_0 : i32, i32
  }
  func.func @transform_9(%arg0: i32, %arg1: memref<1xi32, #tpu.memory_space<smem>>) -> (i32, i32) {
    %c0_i32 = arith.constant 0 : i32
    %c0_i32_0 = arith.constant 0 : i32
    %c0_i32_1 = arith.constant 0 : i32
    return %c0_i32, %c0_i32_0 : i32, i32
  }
  func.func @transform_10(%arg0: i32, %arg1: memref<1xi32, #tpu.memory_space<smem>>) -> (i32, i32) {
    %c0_i32 = arith.constant 0 : i32
    %c0_i32_0 = arith.constant 0 : i32
    %c0_i32_1 = arith.constant 0 : i32
    return %c0_i32, %c0_i32_0 : i32, i32
  }
  func.func @transform_11(%arg0: i32, %arg1: memref<1xi32, #tpu.memory_space<smem>>) -> (i32, i32) {
    %c0_i32 = arith.constant 0 : i32
    %c0_i32_0 = arith.constant 0 : i32
    %c0_i32_1 = arith.constant 0 : i32
    return %c0_i32, %c0_i32_0 : i32, i32
  }
}

</mosaic_0001>

<bundles_post_ra>
// kernel: tpu_custom_call.1
= control target key start
LH: loop header
LB: loop body
LE: loop exit
PB: predicated region body
PF: predicated region fallthrough
CT: control target
= control target key end

     0   :  { %s4324_s0 = inlined_call_operand.<no memory space> [shape: s32[1], index: 0, kind: input, shape index: {}]   ;;  %s4325_s1 = inlined_call_operand.hbm [shape: f32[24,8,128], index: 1, kind: input, shape index: {}]   ;;  %s4326_s2 = inlined_call_operand.vmem [shape: s32[8,1], index: 2, kind: input, shape index: {}]   ;;  %s4327_s3 = inlined_call_operand.hbm [shape: f32[32,128], index: 3, kind: input, shape index: {}]   ;;  %s4328_s4 = inlined_call_operand.hbm [shape: f32[64,128], index: 4, kind: input, shape index: {}]   ;;  %s4329_s5 = inlined_call_operand.vmem [shape: f32[1,128], index: 5, kind: input, shape index: {}]   ;;  %s4330_s6 = inlined_call_operand.hbm [shape: f32[64,128], index: 6, kind: input, shape index: {}]   ;;  %s4331_s7 = inlined_call_operand.vmem [shape: f32[1,128], index: 7, kind: input, shape index: {}]   ;;  %s4332_s8 = inlined_call_operand.hbm [shape: f32[32,32], index: 8, kind: input, shape index: {}]   ;;  %s4333_s9 = inlined_call_operand.vmem [shape: f32[1,32], index: 9, kind: input, shape index: {}]   ;;  %s4334_s10 = inlined_call_operand.hbm [shape: f32[32,128], index: 10, kind: input, shape index: {}]   ;;  %s4335_s11 = inlined_call_operand.vmem [shape: f32[1,128], index: 11, kind: input, shape index: {}]   ;;  %s4336_s12 = inlined_call_operand.hbm [shape: f32[8,128], index: 12, kind: output, shape index: {}]  }
   0x1   :  { %4339 = sst [smem:[#allocation23_spill]] %s4327_s3 }
   0x2   :  { %4340 = sst [smem:[#allocation24_spill]] %s4328_s4 }
   0x3   :  { %17 = sst [smem:[#allocation5]] %s4324_s0 }
   0x4   :  { %18 = vsyncpa [#allocation7], 0 }
   0x5   :  { %20 = vsyncpa [#allocation7 + $0x1], 0 }
   0x6   :  { %21 = vsyncpa [#allocation10], 0 }
   0x7   :  { %22 = vsyncpa [#allocation13], 0 }
   0x8   :  { %23 = vsyncpa [#allocation16], 0 }
   0x9   :  { %24 = vsyncpa [#allocation8], 0  ;;  %s3338_s23 = smov 0   ;;  %s3340_s24 = smov 0  }
   0xa   :  { %s3342_s25 = smov 0   ;;  %s3344_s26 = smov 0  }
   0xb LB: > { %s4341_s3 = sld [smem:[#allocation23_spill]]  ;;  %s3362_s29 = sadd.s32 4294967295, %s3254_s26   ;;  %s3254_s26 = sphi %s3344_s26, %s4352_s26   ;;  %s3250_s25 = sphi %s3342_s25, %s4351_s25   ;;  %s3246_s24 = sphi %s3340_s24, %s4350_s24   ;;  %s3242_s23 = sphi %s3338_s23, %s4349_s23  }
   0xc   : > { %p2666_p0 = scmp.ge.s32.totalorder %s3254_s26, 1  ;;  %p51_p1 = scmp.eq.s32.totalorder %s3362_s29, 0 }
   0xd   : > { %p292_p2 = scmp.lt.s32.totalorder %s3254_s26, 4  ;;  %p2667_p3 = scmp.ne.s32.totalorder %s3362_s29, 0 }
   0xe   : > { %s3256_s13 = smov [#allocation9]   ;;  %s337_s17 = sshll.u32 %s4330_s6, 4  ;;  %s338_s17 = int_to_ptr.hbm [resolvable:$true] %s337_s17 }
   0xf   : > { %p3368_p4 = pnand %p2666_p0, %p292_p2  ;;  %s308_s14 = sshll.u32 %s3256_s13, 4  ;;  %s309_s14 = int_to_ptr.vmem [resolvable:$true] %s308_s14 }
  0x10   : > { %s4344_s4 = sld [smem:[#allocation24_spill]]  ;;  %s3257_s22 = smov [#allocation12]  }
  0x11   : > { %s306_s28 = sshll.u32 %s4341_s3, 4  ;;  %p2751_p5 = pneg %p3368_p4  ;;  %s307_s28 = int_to_ptr.hbm [resolvable:$true] %s306_s28 }
  0x12   : > { %s339_s0 = sshll.u32 %s3257_s22, 4  ;;  %s4337_s27 = smov 128   ;;  %s340_s0 = int_to_ptr.vmem [resolvable:$true] %s339_s0 }
  0x13   : > { %p3379_p6 = pnand %p2751_p5, %p51_p1  ;;  %s4338_s13 = smov 8  }
  0x14   : > { %s354_s19 = sshll.u32 %s4332_s8, 4  ;;  %s3260_s20 = smov [#allocation11]   ;;  %s355_s19 = int_to_ptr.hbm [resolvable:$true] %s354_s19 }
  0x15   : > { %2754 = dma.hbm_to_vmem [thread:$0]  (!%p3379_p6), %s307_s28, 512, %s309_s14, [#allocation10], %s4337_s27, %s4337_s27, %s4338_s13  }
  0x16   : > { %s320_s21 = sshll.u32 %s4344_s4, 4  ;;  %s322_s22 = sshll.u32 %s3260_s20, 4  ;;  %s321_s21 = int_to_ptr.hbm [resolvable:$true] %s320_s21  ;;  %s323_s22 = int_to_ptr.vmem [resolvable:$true] %s322_s22 }
  0x17   : > { %2760 = dma.hbm_to_vmem [thread:$0]  (!%p3379_p6), %s338_s17, 1024, %s340_s0, [#allocation13], %s4337_s27, %s4337_s27, %s4338_s13  }
  0x18   : > { %2757 = dma.hbm_to_vmem [thread:$0]  (!%p3379_p6), %s321_s21, 1024, %s323_s22, [#allocation10], %s4337_s27, %s4337_s27, %s4338_s13  }
  0x19   : > { %s3261_s28 = smov [#allocation14]   ;;  %s371_s15 = sshll.u32 %s4334_s10, 4  ;;  %s372_s15 = int_to_ptr.hbm [resolvable:$true] %s371_s15 }
  0x1a   : > { %s356_s14 = sshll.u32 %s3261_s28, 4  ;;  %s3262_s21 = smov [#allocation15]   ;;  %s357_s14 = int_to_ptr.vmem [resolvable:$true] %s356_s14 }
  0x1b   : > { %2763 = dma.hbm_to_vmem [thread:$0]  (!%p3379_p6), %s355_s19, 512, %s357_s14, [#allocation13], %s4337_s27, %s4337_s27, %s4338_s13  }
  0x1c   : > { %s373_s16 = sshll.u32 %s3262_s21, 4  ;;  %s3418_s20 = sadd.s32 1, %s3254_s26   ;;  %s374_s16 = int_to_ptr.vmem [resolvable:$true] %s373_s16 }
  0x1d   : > { %2766 = dma.hbm_to_vmem [thread:$0]  (!%p3379_p6), %s372_s15, 512, %s374_s16, [#allocation16], %s4337_s27, %s4337_s27, %s4338_s13  }
  0x1e   : > { %s34_s22 = ssub.s32 %s3254_s26, %s3418_s20  ;;  %s37_s28 = sadd.s32 1, %s3250_s25 }
  0x1f   : > { %p35_p7 = scmp.eq.s32.totalorder %s34_s22, 0  ;;  %p44_p8 = scmp.ne.s32.totalorder %s3250_s25, %s3246_s24 }
  0x20   : > { %p45_p9 = scmp.eq.s32.totalorder %s3254_s26, 0  ;;  %p50_p10 = scmp.ne.s32.totalorder %s3246_s24, %s3242_s23 }
  0x21   : > { %s3429_s19 = scalar_select %p35_p7, %s3250_s25, %s37_s28  }
  0x22   : > { %p46_p11 = por %p45_p9, %p44_p8  ;;  %p3433_p12 = por %p51_p1, %p50_p10 }
  0x23   : > { %p2776_p13 = scmp.lt.s32.totalorder %s3254_s26, 3  ;;  %s390_s18 = sand.u32 1, %s3250_s25  }
  0x24   : > { %s2673_s17 = sshll.u32 %s390_s18, 6  ;;  %s2724_s0 = sshll.u32 %s3254_s26, 6 }
  0x25   : > { %s399_s16 = scalar_lea.hbm %s4325_s1, %s2724_s0  ;;  %s394_s22 = scalar_lea.vmem [#allocation6], %s2673_s17 }
  0x26   : > { %s402_s27 = sshll.u32 %s394_s22, 4  ;;  %s400_s13 = sshll.u32 %s399_s16, 4  ;;  %s403_s27 = int_to_ptr.vmem [resolvable:$true] %s402_s27  ;;  %s401_s13 = int_to_ptr.hbm [resolvable:$true] %s400_s13 }
  0x27   : > { %p3443_p0 = pnand %p2776_p13, %p46_p11  ;;  %s391_s28 = scalar_lea.sflag [#allocation7], %s390_s18 }
  0x28   : > { %s3146_s3 = sshra.s32 %s401_s13, 4  ;;  %s3153_s0 = scalar_lea.hbm %s4325_s1, 192  ;;  %s3147_s3 = int_to_ptr.hbm [resolvable:$true] %s3146_s3 }
  0x29   : > { %s3148_s4 = scalar_lea.hbm %s3147_s3, 64  ;;  %p3150_p5 = pneg %p3443_p0 }
  0x2a   : > { %p3149_p2 = scmp.ne.s32.totalorder %s3147_s3, %s3148_s4  ;;  %p3154_p8 = scmp.lt.s32.totalorder %s3147_s3, %s4325_s1 }
  0x2b   : > { %p3155_p9 = scmp.lt.s32.totalorder %s3153_s0, %s3148_s4 }
  0x2c   : > { %p3151_p6 = pnand %p3150_p5, %p3149_p2 }
  0x2d   : > { %p3156_p10 = por %p3155_p9, %p3154_p8 }
  0x2e   : > { %p3152_p7 = pneg %p3151_p6 }
  0x30   : > { %p3157_p11 = pnand %p3156_p10, %p3152_p7 }
  0x32   : > { %3160 = shalt.err (!%p3157_p11)
}
  0x33   : > { %s4347_s18 = smov 8   ;;  %s4348_s16 = smov 128  }
  0x34   : > { %2770 = dma.hbm_to_vmem [thread:$0]  (!%p3443_p0), %s401_s13, 1024, %s403_s27, %s391_s28, %s4348_s16, %s4348_s16, %s4347_s18  }
  0x35   : > { %414 = sbr.rel (%p3368_p4) target bundleno = 7363 (0x1cc3), region = 64  ;;  %s416_s22 = sand.u32 (!%p3368_p4), 1, %s3246_s24  }
  0x36   : > { %s2677_s26 = sshll.u32 (!%p3368_p4), %s416_s22, 6  ;;  %s417_s17 = scalar_lea.sflag (!%p3368_p4), [#allocation7], %s416_s22 }
  0x37   : > { %s3463_s15 = scalar_lea.vmem (!%p3368_p4), [#allocation6], %s2677_s26 }
  0x3a   : > { %3221 = dma.done.wait (%p3433_p12), %s417_s17, 1024  }
  0x3b   : > { %3223 = vsyncadd (%p3433_p12), %s417_s17, 4294966272 }
  0x3c   : > { %3225 = dma.done.wait (%p51_p1), [#allocation10], 1536  }
  0x3d   : > { %3227 = vsyncadd (%p51_p1), [#allocation10], 4294965760 }
  0x3e   : > { %3229 = dma.done.wait (%p51_p1), [#allocation13], 1536  }
  0x3f   : > { %3231 = vsyncadd (%p51_p1), [#allocation13], 4294965760 }
  0x40   : > { %3233 = dma.done.wait (%p51_p1), [#allocation16], 512  }
  0x41   : > { %3235 = vsyncadd (%p51_p1), [#allocation16], 4294966784  ;;  %s3482_s3 = sshll.u32 %s3362_s29, 3  ;;  %s3484_s4 = sld [smem:[#allocation5]]  ;;  %v3489_v0 = vld [vmem:[%s4326_s2] sm:$0xff] }
  0x42   : > { %487 = sbr.rel (%p2667_p3) target bundleno = 78 (0x4e), region = 92 }
  0x47   : > { %vm488_vm0 = vcmask 261120   ;;  %v3263_v1 = vmov 0.0  }
  0x48   : > { %489 = vst.msk [vmem:[#allocation2] sm:$0xff] %vm488_vm0, %v3263_v1 }
  0x49   : > { %490 = vst.msk [vmem:[#allocation2 + $0x8] sm:$0xff] %vm488_vm0, %v3263_v1 }
  0x4a   : > { %491 = vst.msk [vmem:[#allocation2 + $0x10] sm:$0xff] %vm488_vm0, %v3263_v1 }
  0x4b   : > { %492 = vst.msk [vmem:[#allocation3] sm:$0xff] %vm488_vm0, %v3263_v1 }
  0x4c   : > { %493 = vst.msk [vmem:[#allocation3 + $0x8] sm:$0xff] %vm488_vm0, %v3263_v1 }
  0x4d   : > { %494 = vst.msk [vmem:[#allocation3 + $0x10] sm:$0xff] %vm488_vm0, %v3263_v1 }
  0x4e PF: > { %p2685_p1 = scmp.ge.s32.totalorder %s3482_s3, %s3484_s4 }
  0x4f   : > { %s3264_s13 = smov (!%p2685_p1), 32   ;;  %s3266_s14 = smov (!%p2685_p1), 64  }
  0x50   : > { %498 = sbr.rel (%p2685_p1) target bundleno = 6972 (0x1b3c), region = 96  ;;  %s3267_s23 = smov (!%p2685_p1), 96  }
  0x51   : > { %s750_s21 = sadd.s32 (!%p2685_p1), 1, %s3482_s3  ;;  %s997_s17 = sadd.s32 (!%p2685_p1), 2, %s3482_s3 }
  0x55   : > { %v3495_v2 = vld [vmem:[#allocation9 + $0x18] sm:$0xff]  ;;  %v3497_v3 = vld [vmem:[#allocation9 + $0x10] sm:$0xff]  ;;  %v3500_v4 = vld [vmem:[#allocation9 + $0x8] sm:$0xff]  ;;  %vm508_vm1 = vcmask 261120   ;;  %v499_v12 = vstv %s3482_s3  ;;  %v3265_v13 = vmov 0   ;;  %vm600_vm4 = vcmask 523264  }
  0x56   : > { %524 = vmatpush.msra.mxu0 %v3495_v2  ;;  %776 = vmatpush.msra.mxu3 %v3495_v2  ;;  %v3503_v5 = vld [vmem:[#allocation9] sm:$0xff]  ;;  %v501_v6 = vld [vmem:[#allocation2] sm:$0xff]  ;;  %v502_v11 = vld [vmem:[#allocation3] sm:$0xff]  ;;  %vm500_vm2 = vcmp.lt.s32.totalorder %v499_v12, %v3489_v0 }
  0x57   : > { %v503_v7 = vld [vmem:[%s3463_s15] sm:$0xff]  ;;  %2830 = vset.pattern.permute.xlu2 %v3265_v13  ;;  %2831 = vset.pattern.permute.xlu1 %v3265_v13  ;;  %v559_v14 = vsel %vm500_vm2, 1, %v3265_v13  ;;  %v580_v26 = vld [vmem:[#allocation2 + $0x8] sm:$0xff]  ;;  %v3527_v28 = vld [vmem:[#allocation11 + $0x30] sm:$0xff] }
  0x58   : > { %525 = vmatpush.msra.mxu0 %v3497_v3  ;;  %777 = vmatpush.msra.mxu3 %v3497_v3  ;;  %v3525_v27 = vld [vmem:[#allocation11 + $0x38] sm:$0xff]  ;;  %v3531_v29 = vld [vmem:[#allocation11 + $0x28] sm:$0xff]  ;;  %v3535_v30 = vld [vmem:[#allocation11 + $0x20] sm:$0xff] }
  0x59   : > { %2832 = vset.pattern.permute.xlu0 %v3265_v13  ;;  %561 = vperm.xlu2 %2830, %v559_v14   ;;  %v3539_v31 = vld [vmem:[#allocation11 + $0x18] sm:$0xff]  ;;  %v3543_v32 = vld [vmem:[#allocation11 + $0x10] sm:$0xff]  ;;  %v3547_v33 = vld [vmem:[#allocation11 + $0x8] sm:$0xff] }
  0x5a   : > { %526 = vmatpush.msra.mxu0 %v3500_v4  ;;  %778 = vmatpush.msra.mxu3 %v3500_v4  ;;  %v3562_v40 = vld [vmem:[#allocation11] sm:$0xff]  ;;  %v582_v41 = vld [vmem:[#allocation3 + $0x8] sm:$0xff]  ;;  %v2689_v52 = vld [vmem:[%s3463_s15 + $0x8] sm:$0xff] }
  0x5b   : > { %612 = vmatpush.msra.mxu1 %v3525_v27  ;;  %v2833_v48 = vld [vmem:[%s4329_s5] ss:$0 sm:$0xff] }
  0x5c   : > { %527 = vmatpush.msra.mxu0 %v3503_v5  ;;  %779 = vmatpush.msra.mxu3 %v3503_v5 }
  0x5d   : > { %2686 = vmatmul.msk.f32.vlgmr.msra.gmra.mxu0 %vm508_vm1, %v501_v6  ;;  %613 = vmatpush.msra.mxu1 %v3527_v28 }
  0x5e   : > { %861 = vmatpush.msrb.mxu0 %v3525_v27 }
  0x5f   : > { %614 = vmatpush.msra.mxu1 %v3531_v29 }
  0x60   : > { %862 = vmatpush.msrb.mxu0 %v3527_v28 }
  0x61   : > { %565 = vrot.lane.b32.xlu2 %v501_v6, %s3266_s14  ;;  %615 = vmatpush.msra.mxu1 %v3535_v30 }
  0x62   : > { %863 = vmatpush.msrb.mxu0 %v3531_v29 }
  0x63   : > { %616 = vmatpush.msra.mxu1 %v3539_v31 }
  0x64   : > { %864 = vmatpush.msrb.mxu0 %v3535_v30 }
  0x65   : > { %617 = vmatpush.msra.mxu1 %v3543_v32 }
  0x66   : > { %865 = vmatpush.msrb.mxu0 %v3539_v31 }
  0x67   : > { %618 = vmatpush.msra.mxu1 %v3547_v33 }
  0x68   : > { %866 = vmatpush.msrb.mxu0 %v3543_v32 }
  0x69   : > { %619 = vmatpush.msra.mxu1 %v3562_v40 }
  0x6a   : > { %867 = vmatpush.msrb.mxu0 %v3547_v33 }
  0x6b   : > { %1270 = vmatpush.msrb.mxu1 %v3495_v2 }
  0x6c   : > { %868 = vmatpush.msrb.mxu0 %v3562_v40 }
  0x6d   : > { %1271 = vmatpush.msrb.mxu1 %v3497_v3 }
  0x6f   : > { %1272 = vmatpush.msrb.mxu1 %v3500_v4 }
  0x71   : > { %1273 = vmatpush.msrb.mxu1 %v3503_v5 }
  0xb3   : > { %v3551_v34 = vpop.permute.xlu2 %561 }
  0xb4   : > { %vm563_vm3 = vcmp.eq.s32.totalorder %v3551_v34, 1 }
  0xbb   : > { %v566_v36 = vpop.permute.xlu2 %565 }
  0xda   : > { %v529_v8 = vpop.f32.mrf.mxu0 }
  0xdb   : > { %v532_v9 = vadd.f32 %v529_v8, %v503_v7 }
  0xdd   : > { %2849 = vtanh.f32 %v532_v9  ;;  %v533_v15 = vmul.f32 0.5, %v532_v9 }
  0xdf   : > { %2851 = vtanh.f32 %v533_v15  ;;  %v3596_v15 = vld [vmem:[#allocation2 + $0x10] sm:$0xff] }
  0xe3   : > { %v2850_v10 = vpop.eup %2849 }
  0xe4   : > { %544 = vrot.lane.b32.xlu0 %v2850_v10, %s3264_s13 }
  0xe5   : > { %v2852_v16 = vpop.eup %2851 }
  0xe6   : > { %v535_v17 = vmul.f32 0.5, %v2852_v16 }
  0xe8   : > { %v536_v18 = vadd.f32 0.5, %v535_v17 }
  0xec   : > { %539 = vrot.lane.b32.xlu0 %v502_v11, %s3264_s13 }
 0x156   : > { %v545_v19 = vpop.permute.xlu0 %544 }
 0x157   : > { %v547_v20 = vmul.f32 %v545_v19, %v536_v18 }
 0x159   : > { %549 = vrot.lane.b32.xlu1 %v547_v20, %s3264_s13 }
 0x15e   : > { %v540_v21 = vpop.permute.xlu0 %539 }
 0x15f   : > { %v542_v22 = vmul.f32 %v540_v21, %v536_v18 }
 0x1cb   : > { %v550_v23 = vpop.permute.xlu1 %549 }
 0x1cc   : > { %v552_v24 = vadd.f32 %v550_v23, %v542_v22 }
 0x1ce   : > { %2853 = vtanh.f32 %v552_v24  ;;  %v564_v39 = vsel %vm563_vm3, %v552_v24, %v540_v21 }
 0x1d4   : > { %v2854_v25 = vpop.eup %2853 }
 0x1d5   : > { %555 = vrot.lane.b32.xlu1 %v2854_v25, %s3264_s13  ;;  %v751_v25 = vstv %s750_s21  ;;  %s1244_s21 = sadd.s32 3, %s3482_s3 }
 0x1d6   : > { %vm752_vm5 = vcmp.lt.s32.totalorder %v751_v25, %v3489_v0 }
 0x1dd   : > { %593 = vrot.lane.b32.xlu1 %v580_v26, %s3264_s13 }
 0x1e5   : > { %630 = vrot.lane.b32.xlu1 %v582_v41, %s3264_s13  ;;  %v671_v41 = vld [vmem:[#allocation12 + $0x10] sm:$0xff] }
 0x247   : > { %v556_v35 = vpop.permute.xlu1 %555 }
 0x248   : > { %v558_v37 = vmul.f32 %v556_v35, %v536_v18  ;;  %v675_v35 = vld [vmem:[#allocation12 + $0x30] sm:$0xff] }
 0x24a   : > { %v568_v38 = vsel %vm563_vm3, %v558_v37, %v566_v36  ;;  %v674_v36 = vld [vmem:[#allocation12 + $0x28] sm:$0xff]  ;;  %v811_v37 = vsel %vm752_vm5, 1, %v3265_v13 }
 0x24b   : > { %575 = vrot.lane.b32.xlu0 %v568_v38, %s3266_s14  ;;  %v673_v38 = vld [vmem:[#allocation12 + $0x20] sm:$0xff] }
 0x24f   : > { %v594_v42 = vpop.permute.xlu1 %593 }
 0x253   : > { %570 = vrot.lane.b32.xlu0 %v564_v39, %s3267_s23  ;;  %v672_v39 = vld [vmem:[#allocation12 + $0x18] sm:$0xff] }
 0x257   : > { %v3589_v9 = vpop.permute.xlu1 %630 }
 0x2bd   : > { %v576_v43 = vpop.permute.xlu0 %575 }
 0x2be   : > { %578 = vst.msk [vmem:[#allocation2] sm:$0xff] %vm508_vm1, %v576_v43  ;;  %v596_v44 = vsel %vm508_vm1, %v576_v43, %v594_v42  ;;  %v670_v42 = vld [vmem:[#allocation12 + $0x8] sm:$0xff]  ;;  %v669_v43 = vld [vmem:[#allocation12] sm:$0xff] }
 0x2bf   : > { %2687 = vmatmul.msk.f32.vlgmr.msra.gmra.mxu1 %vm600_vm4, %v596_v44 }
 0x2c5   : > { %v571_v45 = vpop.permute.xlu0 %570  ;;  %v753_v46 = vld [vmem:[#allocation2] sm:$0xff] }
 0x2c6   : > { %573 = vst.msk [vmem:[#allocation3] sm:$0xff] %vm508_vm1, %v571_v45  ;;  %2690 = vmatmul.msk.f32.vlgmr.msra.gmra.mxu3 %vm508_vm1, %v753_v46 }
 0x2cd   : > { %v754_v47 = vld [vmem:[#allocation3] sm:$0xff] }
 0x2ce   : > { %791 = vrot.lane.b32.xlu1 %v754_v47, %s3264_s13 }
 0x2d6   : > { %651 = vrot.lane.b32.xlu1 %v580_v26, %s3266_s14  ;;  %v676_v26 = vld [vmem:[#allocation12 + $0x38] sm:$0xff] }
 0x2d7   : > { %697 = vmatpush.msra.mxu2 %v676_v26  ;;  %944 = vmatpush.msrb.mxu3 %v676_v26 }
 0x2d8   : > { %1191 = vmatpush.msra.mxu0 %v676_v26  ;;  %1438 = vmatpush.msra.mxu1 %v676_v26 }
 0x2d9   : > { %698 = vmatpush.msra.mxu2 %v675_v35  ;;  %945 = vmatpush.msrb.mxu3 %v675_v35 }
 0x2da   : > { %1192 = vmatpush.msra.mxu0 %v675_v35  ;;  %1439 = vmatpush.msra.mxu1 %v675_v35 }
 0x2db   : > { %699 = vmatpush.msra.mxu2 %v674_v36  ;;  %946 = vmatpush.msrb.mxu3 %v674_v36 }
 0x2dc   : > { %1193 = vmatpush.msra.mxu0 %v674_v36  ;;  %1440 = vmatpush.msra.mxu1 %v674_v36 }
 0x2dd   : > { %700 = vmatpush.msra.mxu2 %v673_v38  ;;  %947 = vmatpush.msrb.mxu3 %v673_v38 }
 0x2de   : > { %1194 = vmatpush.msra.mxu0 %v673_v38  ;;  %1441 = vmatpush.msra.mxu1 %v673_v38 }
 0x2df   : > { %701 = vmatpush.msra.mxu2 %v672_v39  ;;  %948 = vmatpush.msrb.mxu3 %v672_v39 }
 0x2e0   : > { %1195 = vmatpush.msra.mxu0 %v672_v39  ;;  %1442 = vmatpush.msra.mxu1 %v672_v39 }
 0x2e1   : > { %702 = vmatpush.msra.mxu2 %v671_v41  ;;  %949 = vmatpush.msrb.mxu3 %v671_v41 }
 0x2e2   : > { %1196 = vmatpush.msra.mxu0 %v671_v41  ;;  %1443 = vmatpush.msra.mxu1 %v671_v41 }
 0x2e3   : > { %703 = vmatpush.msra.mxu2 %v670_v42  ;;  %950 = vmatpush.msrb.mxu3 %v670_v42 }
 0x2e4   : > { %1197 = vmatpush.msra.mxu0 %v670_v42  ;;  %1444 = vmatpush.msra.mxu1 %v670_v42 }
 0x2e5   : > { %704 = vmatpush.msra.mxu2 %v669_v43  ;;  %951 = vmatpush.msrb.mxu3 %v669_v43 }
 0x2e6   : > { %1198 = vmatpush.msra.mxu0 %v669_v43  ;;  %1445 = vmatpush.msra.mxu1 %v669_v43 }
 0x2e7   : > { %1023 = vmatpush.msrb.mxu2 %v3495_v2  ;;  %1355 = vmatpush.msra.mxu3 %v3525_v27 }
 0x2e9   : > { %1024 = vmatpush.msrb.mxu2 %v3497_v3  ;;  %1356 = vmatpush.msra.mxu3 %v3527_v28 }
 0x2eb   : > { %1025 = vmatpush.msrb.mxu2 %v3500_v4  ;;  %1357 = vmatpush.msra.mxu3 %v3531_v29 }
 0x2ed   : > { %1026 = vmatpush.msrb.mxu2 %v3503_v5  ;;  %1358 = vmatpush.msra.mxu3 %v3535_v30 }
 0x2ef   : > { %1359 = vmatpush.msra.mxu3 %v3539_v31 }
 0x2f1   : > { %1360 = vmatpush.msra.mxu3 %v3543_v32 }
 0x2f3   : > { %1361 = vmatpush.msra.mxu3 %v3547_v33 }
 0x2f5   : > { %1362 = vmatpush.msra.mxu3 %v3562_v40 }
 0x33c   : > { %v621_v49 = vpop.f32.mrf.mxu1 }
 0x33d   : > { %v622_v50 = vadd.f32 %v2833_v48, %v621_v49  ;;  %v2834_v49 = vld [vmem:[%s4331_s7] ss:$0 sm:$0xff] }
 0x33f   : > { %2855 = vtanh.f32 %v622_v50  ;;  %v624_v56 = vmul.f32 0.5, %v622_v50 }
 0x340   : > { %v3601_v16 = vpop.permute.xlu1 %791 }
 0x345   : > { %v2856_v51 = vpop.eup %2855 }
 0x346   : > { %635 = vrot.lane.b32.xlu2 %v2856_v51, %s3264_s13 }
 0x348   : > { %v652_v22 = vpop.permute.xlu1 %651 }
 0x349   : > { %v781_v53 = vpop.f32.mrf.mxu3 }
 0x34a   : > { %v784_v54 = vadd.f32 %v2689_v52, %v781_v53 }
 0x34c   : > { %2857 = vtanh.f32 %v784_v54  ;;  %v785_v62 = vmul.f32 0.5, %v784_v54 }
 0x34d   : > { %2859 = vtanh.f32 %v624_v56 }
 0x34e   : > { %2861 = vtanh.f32 %v785_v62 }
 0x352   : > { %v2858_v55 = vpop.eup %2857 }
 0x353   : > { %796 = vrot.lane.b32.xlu0 %v2858_v55, %s3264_s13  ;;  %v2860_v57 = vpop.eup %2859 }
 0x354   : > { %v626_v58 = vmul.f32 0.5, %v2860_v57  ;;  %v2862_v63 = vpop.eup %2861  ;;  %v2835_v57 = vld [vmem:[%s4329_s5] ss:$0 sm:$0xff] }
 0x355   : > { %v787_v1 = vmul.f32 0.5, %v2862_v63 }
 0x356   : > { %v627_v59 = vadd.f32 0.5, %v626_v58 }
 0x357   : > { %v3585_v6 = vadd.f32 0.5, %v787_v1 }
 0x358   : > { %v633_v10 = vmul.f32 %v3589_v9, %v627_v59 }
 0x359   : > { %v794_v17 = vmul.f32 %v3601_v16, %v3585_v6 }
 0x3a0   : > { %v636_v60 = vpop.permute.xlu2 %635 }
 0x3a1   : > { %v638_v61 = vmul.f32 %v636_v60, %v627_v59 }
 0x3a3   : > { %640 = vrot.lane.b32.xlu2 %v638_v61, %s3264_s13 }
 0x3c5   : > { %v797_v7 = vpop.permute.xlu0 %796 }
 0x3c6   : > { %v799_v8 = vmul.f32 %v797_v7, %v3585_v6 }
 0x3c8   : > { %801 = vrot.lane.b32.xlu2 %v799_v8, %s3264_s13 }
 0x3fd   : > { %v641_v11 = vpop.permute.xlu2 %640 }
 0x3fe   : > { %v3592_v12 = vadd.f32 %v641_v11, %v633_v10 }
 0x400   : > { %2863 = vtanh.f32 %v3592_v12 }
 0x406   : > { %v2864_v14 = vpop.eup %2863 }
 0x407   : > { %646 = vrot.lane.b32.xlu0 %v2864_v14, %s3264_s13 }
 0x40f   : > { %679 = vrot.lane.b32.xlu0 %v3596_v15, %s3264_s13 }
 0x417   : > { %817 = vrot.lane.b32.xlu0 %v753_v46, %s3266_s14 }
 0x422   : > { %v802_v18 = vpop.permute.xlu2 %801 }
 0x423   : > { %v3605_v19 = vadd.f32 %v802_v18, %v794_v17 }
 0x425   : > { %2865 = vtanh.f32 %v3605_v19 }
 0x42b   : > { %v2866_v20 = vpop.eup %2865 }
 0x42c   : > { %807 = vrot.lane.b32.xlu1 %v2866_v20, %s3264_s13 }
 0x479   : > { %v647_v21 = vpop.permute.xlu0 %646 }
 0x47a   : > { %v649_v23 = vmul.f32 %v647_v21, %v627_v59 }
 0x47c   : > { %v654_v24 = vsel %vm563_vm3, %v649_v23, %v652_v22 }
 0x47d   : > { %661 = vrot.lane.b32.xlu2 %v654_v24, %s3266_s14 }
 0x481   : > { %v680_v2 = vpop.permute.xlu0 %679 }
 0x485   : > { %813 = vperm.xlu2 %2830, %v811_v37  }
 0x489   : > { %v818_v47 = vpop.permute.xlu0 %817 }
 0x49e   : > { %v808_v5 = vpop.permute.xlu1 %807 }
 0x49f   : > { %v810_v44 = vmul.f32 %v808_v5, %v3585_v6  ;;  %v2693_v6 = vld [vmem:[%s3463_s15 + $0x10] sm:$0xff] }
 0x4d7   : > { %v662_v3 = vpop.permute.xlu2 %661 }
 0x4d8   : > { %664 = vst.msk [vmem:[#allocation2 + $0x8] sm:$0xff] %vm508_vm1, %v662_v3  ;;  %v682_v4 = vsel %vm508_vm1, %v662_v3, %v680_v2 }
 0x4d9   : > { %2688 = vmatmul.msk.f32.vlgmr.msra.gmra.mxu2 %vm600_vm4, %v682_v4 }
 0x4da   : > { %1108 = vmatpush.msra.mxu2 %v3525_v27 }
 0x4dc   : > { %1109 = vmatpush.msra.mxu2 %v3527_v28  ;;  %v668_v28 = vld [vmem:[#allocation3 + $0x10] sm:$0xff] }
 0x4de   : > { %1110 = vmatpush.msra.mxu2 %v3531_v29  ;;  %v650_v29 = vsel %vm563_vm3, %v3592_v12, %v3589_v9 }
 0x4df   : > { %v3634_v45 = vpop.permute.xlu2 %813  ;;  %v3636_v46 = vld [vmem:[#allocation2 + $0x8] sm:$0xff] }
 0x4e0   : > { %vm815_vm6 = vcmp.eq.s32.totalorder %v3634_v45, 1  ;;  %843 = vrot.lane.b32.xlu2 %v3636_v46, %s3264_s13  ;;  %1111 = vmatpush.msra.mxu2 %v3535_v30 }
 0x4e1   : > { %v820_v27 = vsel %vm815_vm6, %v810_v44, %v818_v47  ;;  %v816_v30 = vsel %vm815_vm6, %v3605_v19, %v3601_v16 }
 0x4e2   : > { %827 = vrot.lane.b32.xlu1 %v820_v27, %s3266_s14  ;;  %1112 = vmatpush.msra.mxu2 %v3539_v31 }
 0x4e4   : > { %1113 = vmatpush.msra.mxu2 %v3543_v32 }
 0x4e6   : > { %1114 = vmatpush.msra.mxu2 %v3547_v33 }
 0x4e8   : > { %715 = vrot.lane.b32.xlu2 %v668_v28, %s3264_s13  ;;  %1115 = vmatpush.msra.mxu2 %v3562_v40 }
 0x4ea   : > { %656 = vrot.lane.b32.xlu1 %v650_v29, %s3267_s23 }
 0x4f0   : > { %822 = vrot.lane.b32.xlu2 %v816_v30, %s3267_s23 }
 0x53a   : > { %v844_v31 = vpop.permute.xlu2 %843 }
 0x542   : > { %v3660_v32 = vpop.permute.xlu2 %715 }
 0x54a   : > { %v823_v33 = vpop.permute.xlu2 %822 }
 0x54b   : > { %825 = vst.msk [vmem:[#allocation3] sm:$0xff] %vm508_vm1, %v823_v33 }
 0x552   : > { %v1001_v11 = vld [vmem:[#allocation3] sm:$0xff] }
 0x554   : > { %v828_v40 = vpop.permute.xlu1 %827 }
 0x555   : > { %830 = vst.msk [vmem:[#allocation2] sm:$0xff] %vm508_vm1, %v828_v40  ;;  %v846_v48 = vsel %vm508_vm1, %v828_v40, %v844_v31 }
 0x556   : > { %2691 = vmatmul.msk.f32.vlgmr.msrb.gmra.mxu0 %vm600_vm4, %v846_v48 }
 0x55c   : > { %v706_v50 = vpop.f32.mrf.mxu2  ;;  %v657_v51 = vpop.permute.xlu1 %656  ;;  %v3669_v52 = vld [vmem:[#allocation2] sm:$0xff] }
 0x55d   : > { %v707_v53 = vadd.f32 %v2834_v49, %v706_v50  ;;  %659 = vst.msk [vmem:[#allocation3 + $0x8] sm:$0xff] %vm508_vm1, %v657_v51  ;;  %2694 = vmatmul.msk.f32.vlgmr.msrb.gmra.mxu2 %vm508_vm1, %v3669_v52 }
 0x55f   : > { %2867 = vtanh.f32 %v707_v53  ;;  %v709_v55 = vmul.f32 0.5, %v707_v53 }
 0x561   : > { %2869 = vtanh.f32 %v709_v55 }
 0x564   : > { %v832_v9 = vld [vmem:[#allocation3 + $0x8] sm:$0xff] }
 0x565   : > { %v2868_v54 = vpop.eup %2867 }
 0x566   : > { %720 = vrot.lane.b32.xlu0 %v2868_v54, %s3264_s13 }
 0x567   : > { %v2870_v56 = vpop.eup %2869 }
 0x568   : > { %v711_v58 = vmul.f32 0.5, %v2870_v56 }
 0x56a   : > { %v712_v61 = vadd.f32 0.5, %v711_v58 }
 0x56c   : > { %v718_v18 = vmul.f32 %v3660_v32, %v712_v61 }
 0x5d3   : > { %v870_v59 = vpop.f32.mrf.mxu0 }
 0x5d4   : > { %v871_v60 = vadd.f32 %v2835_v57, %v870_v59 }
 0x5d6   : > { %2871 = vtanh.f32 %v871_v60  ;;  %v873_v12 = vmul.f32 0.5, %v871_v60 }
 0x5d8   : > { %v721_v62 = vpop.permute.xlu0 %720 }
 0x5d9   : > { %v723_v63 = vmul.f32 %v721_v62, %v712_v61 }
 0x5db   : > { %725 = vrot.lane.b32.xlu0 %v723_v63, %s3264_s13 }
 0x5dc   : > { %v2872_v1 = vpop.eup %2871 }
 0x5dd   : > { %884 = vrot.lane.b32.xlu1 %v2872_v1, %s3264_s13 }
 0x5e0   : > { %v1028_v7 = vpop.f32.mrf.mxu2 }
 0x5e1   : > { %v1031_v8 = vadd.f32 %v2693_v6, %v1028_v7 }
 0x5e3   : > { %2873 = vtanh.f32 %v1031_v8  ;;  %879 = vrot.lane.b32.xlu0 %v832_v9, %s3264_s13  ;;  %v1032_v17 = vmul.f32 0.5, %v1031_v8  ;;  %v2836_v8 = vld [vmem:[%s4331_s7] ss:$0 sm:$0xff] }
 0x5e4   : > { %2875 = vtanh.f32 %v873_v12 }
 0x5e5   : > { %2877 = vtanh.f32 %v1032_v17 }
 0x5e9   : > { %v2874_v10 = vpop.eup %2873 }
 0x5ea   : > { %1043 = vrot.lane.b32.xlu2 %v2874_v10, %s3264_s13  ;;  %v2876_v14 = vpop.eup %2875 }
 0x5eb   : > { %v875_v16 = vmul.f32 0.5, %v2876_v14  ;;  %v2878_v24 = vpop.eup %2877 }
 0x5ec   : > { %v1034_v26 = vmul.f32 0.5, %v2878_v24 }
 0x5ed   : > { %v876_v20 = vadd.f32 0.5, %v875_v16 }
 0x5ee   : > { %v1035_v36 = vadd.f32 0.5, %v1034_v26 }
 0x5f2   : > { %1038 = vrot.lane.b32.xlu2 %v1001_v11, %s3264_s13 }
 0x644   : > { %v1044_v35 = vpop.permute.xlu2 %1043 }
 0x645   : > { %v1046_v37 = vmul.f32 %v1044_v35, %v1035_v36 }
 0x64c   : > { %v1039_v5 = vpop.permute.xlu2 %1038 }
 0x64d   : > { %v726_v19 = vpop.permute.xlu0 %725  ;;  %v1041_v44 = vmul.f32 %v1039_v5, %v1035_v36 }
 0x64e   : > { %v728_v21 = vadd.f32 %v726_v19, %v718_v18  ;;  %v2837_v19 = vld [vmem:[%s4329_s5] ss:$0 sm:$0xff] }
 0x64f   : > { %v885_v22 = vpop.permute.xlu1 %884 }
 0x650   : > { %2879 = vtanh.f32 %v728_v21  ;;  %v887_v23 = vmul.f32 %v885_v22, %v876_v20  ;;  %v735_v28 = vsel %vm563_vm3, %v728_v21, %v3660_v32  ;;  %v998_v32 = vstv %s997_s17  ;;  %v2697_v22 = vld [vmem:[%s3463_s15 + $0x18] sm:$0xff]  ;;  %s1491_s17 = sadd.s32 4, %s3482_s3 }
 0x651   : > { %vm999_vm7 = vcmp.lt.s32.totalorder %v998_v32, %v3489_v0 }
 0x652   : > { %889 = vrot.lane.b32.xlu1 %v887_v23, %s3264_s13  ;;  %v1058_v51 = vsel %vm999_vm7, 1, %v3265_v13 }
 0x655   : > { %v880_v38 = vpop.permute.xlu0 %879 }
 0x656   : > { %v2880_v25 = vpop.eup %2879  ;;  %v882_v39 = vmul.f32 %v880_v38, %v876_v20 }
 0x657   : > { %731 = vrot.lane.b32.xlu0 %v2880_v25, %s3264_s13 }
 0x65a   : > { %736 = vrot.lane.b32.xlu1 %v3596_v15, %s3266_s14 }
 0x65f   : > { %1048 = vrot.lane.b32.xlu0 %v1046_v37, %s3264_s13 }
 0x667   : > { %900 = vrot.lane.b32.xlu0 %v3636_v46, %s3266_s14 }
 0x6c4   : > { %v890_v41 = vpop.permute.xlu1 %889 }
 0x6c5   : > { %v892_v42 = vadd.f32 %v890_v41, %v882_v39 }
 0x6c7   : > { %2881 = vtanh.f32 %v892_v42 }
 0x6c9   : > { %v732_v43 = vpop.permute.xlu0 %731 }
 0x6ca   : > { %v734_v2 = vmul.f32 %v732_v43, %v712_v61  ;;  %v899_v61 = vsel %vm815_vm6, %v892_v42, %v880_v38 }
 0x6cc   : > { %v737_v3 = vpop.permute.xlu1 %736 }
 0x6cd   : > { %v2882_v4 = vpop.eup %2881  ;;  %v739_v15 = vsel %vm563_vm3, %v734_v2, %v737_v3 }
 0x6ce   : > { %895 = vrot.lane.b32.xlu1 %v2882_v4, %s3264_s13  ;;  %746 = vrot.lane.b32.xlu2 %v739_v15, %s3266_s14 }
 0x6d1   : > { %v1049_v46 = vpop.permute.xlu0 %1048 }
 0x6d2   : > { %v1051_v47 = vadd.f32 %v1049_v46, %v1041_v44 }
 0x6d4   : > { %2883 = vtanh.f32 %v1051_v47 }
 0x6d9   : > { %v901_v49 = vpop.permute.xlu0 %900 }
 0x6da   : > { %v2884_v27 = vpop.eup %2883 }
 0x6db   : > { %1054 = vrot.lane.b32.xlu2 %v2884_v27, %s3264_s13 }
 0x6e3   : > { %1064 = vrot.lane.b32.xlu2 %v3669_v52, %s3266_s14 }
 0x6eb   : > { %741 = vrot.lane.b32.xlu2 %v735_v28, %s3267_s23 }
 0x728   : > { %v747_v29 = vpop.permute.xlu2 %746 }
 0x729   : > { %749 = vst.msk [vmem:[#allocation2 + $0x10] sm:$0xff] %vm508_vm1, %v747_v29 }
 0x730   : > { %v3704_v30 = vld [vmem:[#allocation2 + $0x10] sm:$0xff] }
 0x731   : > { %926 = vrot.lane.b32.xlu0 %v3704_v30, %s3264_s13 }
 0x735   : > { %v1055_v31 = vpop.permute.xlu2 %1054 }
 0x736   : > { %v1057_v56 = vmul.f32 %v1055_v31, %v1035_v36 }
 0x73d   : > { %v1065_v33 = vpop.permute.xlu2 %1064 }
 0x740   : > { %v896_v40 = vpop.permute.xlu1 %895 }
 0x741   : > { %v898_v48 = vmul.f32 %v896_v40, %v876_v20 }
 0x743   : > { %v903_v34 = vsel %vm815_vm6, %v898_v48, %v901_v49 }
 0x744   : > { %910 = vrot.lane.b32.xlu1 %v903_v34, %s3266_s14 }
 0x745   : > { %v742_v50 = vpop.permute.xlu2 %741 }
 0x746   : > { %744 = vst.msk [vmem:[#allocation3 + $0x10] sm:$0xff] %vm508_vm1, %v742_v50 }
 0x74c   : > { %1060 = vperm.xlu1 %2831, %v1058_v51  }
 0x74d   : > { %v915_v52 = vld [vmem:[#allocation3 + $0x10] sm:$0xff] }
 0x74e   : > { %962 = vrot.lane.b32.xlu2 %v915_v52, %s3264_s13 }
 0x7a3   : > { %v927_v53 = vpop.permute.xlu0 %926 }
 0x7a8   : > { %v3735_v62 = vpop.permute.xlu2 %962 }
 0x7b6   : > { %v911_v54 = vpop.permute.xlu1 %910 }
 0x7b7   : > { %913 = vst.msk [vmem:[#allocation2 + $0x8] sm:$0xff] %vm508_vm1, %v911_v54  ;;  %v929_v55 = vsel %vm508_vm1, %v911_v54, %v927_v53 }
 0x7b8   : > { %2692 = vmatmul.msk.f32.vlgmr.msrb.gmra.mxu3 %vm600_vm4, %v929_v55 }
 0x7be   : > { %v3719_v57 = vpop.permute.xlu1 %1060  ;;  %v3721_v58 = vld [vmem:[#allocation2 + $0x8] sm:$0xff] }
 0x7bf   : > { %vm1062_vm8 = vcmp.eq.s32.totalorder %v3719_v57, 1  ;;  %1090 = vrot.lane.b32.xlu1 %v3721_v58, %s3264_s13 }
 0x7c0   : > { %v1067_v59 = vsel %vm1062_vm8, %v1057_v56, %v1065_v33  ;;  %v1063_v60 = vsel %vm1062_vm8, %v1051_v47, %v1039_v5 }
 0x7c1   : > { %1074 = vrot.lane.b32.xlu0 %v1067_v59, %s3266_s14  ;;  %1069 = vrot.lane.b32.xlu2 %v1063_v60, %s3267_s23 }
 0x7c7   : > { %905 = vrot.lane.b32.xlu1 %v899_v61, %s3267_s23 }
 0x81b   : > { %v1070_v63 = vpop.permute.xlu2 %1069 }
 0x81c   : > { %1072 = vst.msk [vmem:[#allocation3] sm:$0xff] %vm508_vm1, %v1070_v63 }
 0x823   : > { %v1248_v39 = vld [vmem:[#allocation3] sm:$0xff] }
 0x831   : > { %v1091_v1 = vpop.permute.xlu1 %1090 }
 0x833   : > { %v1075_v6 = vpop.permute.xlu0 %1074 }
 0x834   : > { %1077 = vst.msk [vmem:[#allocation2] sm:$0xff] %vm508_vm1, %v1075_v6  ;;  %v1093_v7 = vsel %vm508_vm1, %v1075_v6, %v1091_v1 }
 0x835   : > { %2695 = vmatmul.msk.f32.vlgmr.msra.gmra.mxu2 %vm600_vm4, %v1093_v7 }
 0x839   : > { %v906_v9 = vpop.permute.xlu1 %905 }
 0x83a   : > { %908 = vst.msk [vmem:[#allocation3 + $0x8] sm:$0xff] %vm508_vm1, %v906_v9  ;;  %v1245_v9 = vstv %s1244_s21  ;;  %s1738_s21 = sadd.s32 5, %s3482_s3 }
 0x83b   : > { %v953_v10 = vpop.f32.mrf.mxu3  ;;  %v3745_v11 = vld [vmem:[#allocation2] sm:$0xff]  ;;  %vm1246_vm9 = vcmp.lt.s32.totalorder %v1245_v9, %v3489_v0 }
 0x83c   : > { %v954_v12 = vadd.f32 %v2836_v8, %v953_v10  ;;  %2698 = vmatmul.msk.f32.vlgmr.msrb.gmra.mxu1 %vm508_vm1, %v3745_v11 }
 0x83e   : > { %2885 = vtanh.f32 %v954_v12  ;;  %v956_v16 = vmul.f32 0.5, %v954_v12 }
 0x840   : > { %2887 = vtanh.f32 %v956_v16 }
 0x841   : > { %v1079_v37 = vld [vmem:[#allocation3 + $0x8] sm:$0xff] }
 0x844   : > { %v2886_v14 = vpop.eup %2885 }
 0x845   : > { %967 = vrot.lane.b32.xlu0 %v2886_v14, %s3264_s13 }
 0x846   : > { %v2888_v17 = vpop.eup %2887 }
 0x847   : > { %v958_v18 = vmul.f32 0.5, %v2888_v17 }
 0x849   : > { %v959_v20 = vadd.f32 0.5, %v958_v18 }
 0x84b   : > { %v965_v43 = vmul.f32 %v3735_v62, %v959_v20 }
 0x8b7   : > { %v968_v21 = vpop.permute.xlu0 %967 }
 0x8b8   : > { %v970_v23 = vmul.f32 %v968_v21, %v959_v20  ;;  %v1117_v24 = vpop.f32.mrf.mxu2 }
 0x8b9   : > { %v1118_v25 = vadd.f32 %v2837_v19, %v1117_v24  ;;  %v1275_v26 = vpop.f32.mrf.mxu1  ;;  %v3809_v24 = vld [vmem:[#allocation9 + $0x18] sm:$0xff] }
 0x8ba   : > { %v1278_v35 = vadd.f32 %v2697_v22, %v1275_v26  ;;  %972 = vrot.lane.b32.xlu0 %v970_v23, %s3264_s13  ;;  %1517 = vmatpush.msrb.mxu2 %v3809_v24  ;;  %v3817_v26 = vld [vmem:[#allocation9 + $0x8] sm:$0xff] }
 0x8bb   : > { %2889 = vtanh.f32 %v1118_v25  ;;  %v1120_v41 = vmul.f32 0.5, %v1118_v25  ;;  %1764 = vmatpush.msrb.mxu3 %v3809_v24  ;;  %v3813_v25 = vld [vmem:[#allocation9 + $0x10] sm:$0xff] }
 0x8bc   : > { %2891 = vtanh.f32 %v1278_v35  ;;  %v1279_v42 = vmul.f32 0.5, %v1278_v35  ;;  %1518 = vmatpush.msrb.mxu2 %v3813_v25  ;;  %v3821_v35 = vld [vmem:[#allocation9] sm:$0xff] }
 0x8bd   : > { %2893 = vtanh.f32 %v1120_v41  ;;  %1765 = vmatpush.msrb.mxu3 %v3813_v25 }
 0x8be   : > { %2895 = vtanh.f32 %v1279_v42  ;;  %1519 = vmatpush.msrb.mxu2 %v3817_v26 }
 0x8bf   : > { %1766 = vmatpush.msrb.mxu3 %v3817_v26 }
 0x8c0   : > { %1520 = vmatpush.msrb.mxu2 %v3821_v35 }
 0x8c1   : > { %v2890_v36 = vpop.eup %2889  ;;  %1767 = vmatpush.msrb.mxu3 %v3821_v35 }
 0x8c2   : > { %v2892_v38 = vpop.eup %2891  ;;  %1131 = vrot.lane.b32.xlu1 %v2890_v36, %s3264_s13  ;;  %1126 = vrot.lane.b32.xlu0 %v1079_v37, %s3264_s13 }
 0x8c3   : > { %1290 = vrot.lane.b32.xlu2 %v2892_v38, %s3264_s13  ;;  %v2894_v2 = vpop.eup %2893  ;;  %v2838_v38 = vld [vmem:[%s4331_s7] ss:$0 sm:$0xff] }
 0x8c4   : > { %v1122_v5 = vmul.f32 0.5, %v2894_v2  ;;  %v2896_v15 = vpop.eup %2895 }
 0x8c5   : > { %v1281_v28 = vmul.f32 0.5, %v2896_v15 }
 0x8c6   : > { %v1123_v44 = vadd.f32 0.5, %v1122_v5 }
 0x8c7   : > { %v1282_v31 = vadd.f32 0.5, %v1281_v28  ;;  %v2839_v28 = vld [vmem:[%s4329_s5] ss:$0 sm:$0xff] }
 0x8cb   : > { %1285 = vrot.lane.b32.xlu2 %v1248_v39, %s3264_s13 }
 0x91d   : > { %v1291_v29 = vpop.permute.xlu2 %1290 }
 0x91e   : > { %v1293_v33 = vmul.f32 %v1291_v29, %v1282_v31 }
 0x925   : > { %v1286_v50 = vpop.permute.xlu2 %1285 }
 0x926   : > { %v1288_v51 = vmul.f32 %v1286_v50, %v1282_v31 }
 0x92c   : > { %v973_v3 = vpop.permute.xlu0 %972 }
 0x92d   : > { %v975_v4 = vadd.f32 %v973_v3, %v965_v43 }
 0x92f   : > { %2897 = vtanh.f32 %v975_v4 }
 0x934   : > { %v1132_v46 = vpop.permute.xlu1 %1131  ;;  %v1127_v40 = vpop.permute.xlu0 %1126 }
 0x935   : > { %v2898_v47 = vpop.eup %2897  ;;  %v1134_v27 = vmul.f32 %v1132_v46, %v1123_v44  ;;  %v1129_v48 = vmul.f32 %v1127_v40, %v1123_v44 }
 0x936   : > { %978 = vrot.lane.b32.xlu0 %v2898_v47, %s3264_s13 }
 0x937   : > { %1136 = vrot.lane.b32.xlu1 %v1134_v27, %s3264_s13 }
 0x93e   : > { %1295 = vrot.lane.b32.xlu0 %v1293_v33, %s3264_s13 }
 0x93f   : > { %983 = vrot.lane.b32.xlu1 %v3704_v30, %s3266_s14 }
 0x946   : > { %1147 = vrot.lane.b32.xlu0 %v3721_v58, %s3266_s14  ;;  %v982_v58 = vsel %vm815_vm6, %v975_v4, %v3735_v62 }
 0x9a8   : > { %v979_v49 = vpop.permute.xlu0 %978 }
 0x9a9   : > { %v1137_v34 = vpop.permute.xlu1 %1136  ;;  %v981_v52 = vmul.f32 %v979_v49, %v959_v20 }
 0x9aa   : > { %v1139_v32 = vadd.f32 %v1137_v34, %v1129_v48 }
 0x9ac   : > { %2899 = vtanh.f32 %v1139_v32  ;;  %v1146_v22 = vsel %vm1062_vm8, %v1139_v32, %v1127_v40 }
 0x9b0   : > { %v1296_v53 = vpop.permute.xlu0 %1295 }
 0x9b1   : > { %v1298_v54 = vadd.f32 %v1296_v53, %v1288_v51  ;;  %v984_v55 = vpop.permute.xlu1 %983 }
 0x9b2   : > { %v2900_v56 = vpop.eup %2899  ;;  %v986_v59 = vsel %vm815_vm6, %v981_v52, %v984_v55 }
 0x9b3   : > { %2901 = vtanh.f32 %v1298_v54  ;;  %1142 = vrot.lane.b32.xlu1 %v2900_v56, %s3264_s13  ;;  %993 = vrot.lane.b32.xlu2 %v986_v59, %s3266_s14 }
 0x9b8   : > { %v1148_v45 = vpop.permute.xlu0 %1147 }
 0x9b9   : > { %v2902_v30 = vpop.eup %2901 }
 0x9bb   : > { %1301 = vrot.lane.b32.xlu2 %v2902_v30, %s3264_s13 }
 0x9c3   : > { %1311 = vrot.lane.b32.xlu2 %v3745_v11, %s3266_s14  ;;  %v1305_v11 = vsel %vm1246_vm9, 1, %v3265_v13 }
 0x9cb   : > { %988 = vrot.lane.b32.xlu2 %v982_v58, %s3267_s23 }
 0xa0d   : > { %v994_v60 = vpop.permute.xlu2 %993 }
 0xa0e   : > { %996 = vst.msk [vmem:[#allocation2 + $0x10] sm:$0xff] %vm508_vm1, %v994_v60 }
 0xa15   : > { %v1302_v61 = vpop.permute.xlu2 %1301  ;;  %v3779_v63 = vld [vmem:[#allocation2 + $0x10] sm:$0xff] }
 0xa16   : > { %1173 = vrot.lane.b32.xlu0 %v3779_v63, %s3264_s13  ;;  %v1304_v17 = vmul.f32 %v1302_v61, %v1282_v31 }
 0xa1d   : > { %v1312_v1 = vpop.permute.xlu2 %1311 }
 0xa25   : > { %v1143_v6 = vpop.permute.xlu1 %1142  ;;  %v989_v7 = vpop.permute.xlu2 %988 }
 0xa26   : > { %v1145_v8 = vmul.f32 %v1143_v6, %v1123_v44  ;;  %991 = vst.msk [vmem:[#allocation3 + $0x10] sm:$0xff] %vm508_vm1, %v989_v7 }
 0xa28   : > { %v1150_v62 = vsel %vm1062_vm8, %v1145_v8, %v1148_v45 }
 0xa29   : > { %1157 = vrot.lane.b32.xlu1 %v1150_v62, %s3266_s14 }
 0xa2d   : > { %v1162_v10 = vld [vmem:[#allocation3 + $0x10] sm:$0xff] }
 0xa2e   : > { %1209 = vrot.lane.b32.xlu2 %v1162_v10, %s3264_s13 }
 0xa31   : > { %1307 = vperm.xlu1 %2831, %v1305_v11  }
 0xa88   : > { %v1174_v12 = vpop.permute.xlu0 %1173  ;;  %v3807_v23 = vpop.permute.xlu2 %1209 }
 0xa9b   : > { %v1158_v14 = vpop.permute.xlu1 %1157 }
 0xa9c   : > { %1160 = vst.msk [vmem:[#allocation2 + $0x8] sm:$0xff] %vm508_vm1, %v1158_v14  ;;  %v1176_v16 = vsel %vm508_vm1, %v1158_v14, %v1174_v12 }
 0xa9d   : > { %2696 = vmatmul.msk.f32.vlgmr.msra.gmra.mxu0 %vm600_vm4, %v1176_v16 }
 0xaa3   : > { %v3794_v18 = vpop.permute.xlu1 %1307  ;;  %v1325_v19 = vld [vmem:[#allocation2 + $0x8] sm:$0xff] }
 0xaa4   : > { %vm1309_vm10 = vcmp.eq.s32.totalorder %v3794_v18, 1  ;;  %1337 = vrot.lane.b32.xlu1 %v1325_v19, %s3264_s13 }
 0xaa5   : > { %v1314_v20 = vsel %vm1309_vm10, %v1304_v17, %v1312_v1  ;;  %v1310_v21 = vsel %vm1309_vm10, %v1298_v54, %v1286_v50  ;;  %v2701_v54 = vld [vmem:[%s3463_s15 + $0x20] sm:$0xff] }
 0xaa6   : > { %1321 = vrot.lane.b32.xlu0 %v1314_v20, %s3266_s14  ;;  %1316 = vrot.lane.b32.xlu2 %v1310_v21, %s3267_s23 }
 0xaac   : > { %1152 = vrot.lane.b32.xlu1 %v1146_v22, %s3267_s23 }
 0xb00   : > { %v1317_v36 = vpop.permute.xlu2 %1316 }
 0xb01   : > { %1319 = vst.msk [vmem:[#allocation3] sm:$0xff] %vm508_vm1, %v1317_v36 }
 0xb08   : > { %v1495_v48 = vld [vmem:[#allocation3] sm:$0xff] }
 0xb16   : > { %v1338_v37 = vpop.permute.xlu1 %1337 }
 0xb18   : > { %v1322_v39 = vpop.permute.xlu0 %1321 }
 0xb19   : > { %1324 = vst.msk [vmem:[#allocation2] sm:$0xff] %vm508_vm1, %v1322_v39  ;;  %v1340_v41 = vsel %vm508_vm1, %v1322_v39, %v1338_v37 }
 0xb1a   : > { %v1200_v42 = vpop.f32.mrf.mxu0  ;;  %2699 = vmatmul.msk.f32.vlgmr.msra.gmra.mxu3 %vm600_vm4, %v1340_v41  ;;  %v1492_v41 = vstv %s1491_s17  ;;  %s1985_s17 = sadd.s32 6, %s3482_s3 }
 0xb1b   : > { %v1201_v43 = vadd.f32 %v2838_v38, %v1200_v42  ;;  %vm1493_vm11 = vcmp.lt.s32.totalorder %v1492_v41, %v3489_v0 }
 0xb1c   : > { %v1552_v42 = vsel %vm1493_vm11, 1, %v3265_v13 }
 0xb1d   : > { %2903 = vtanh.f32 %v1201_v43  ;;  %v1203_v5 = vmul.f32 0.5, %v1201_v43 }
 0xb1e   : > { %v1153_v2 = vpop.permute.xlu1 %1152 }
 0xb1f   : > { %1155 = vst.msk [vmem:[#allocation3 + $0x8] sm:$0xff] %vm508_vm1, %v1153_v2  ;;  %2905 = vtanh.f32 %v1203_v5 }
 0xb20   : > { %v3833_v3 = vld [vmem:[#allocation2] sm:$0xff] }
 0xb21   : > { %2702 = vmatmul.msk.f32.vlgmr.msrb.gmra.mxu2 %vm508_vm1, %v3833_v3 }
 0xb23   : > { %v2904_v4 = vpop.eup %2903 }
 0xb24   : > { %1214 = vrot.lane.b32.xlu0 %v2904_v4, %s3264_s13 }
 0xb25   : > { %v2906_v15 = vpop.eup %2905 }
 0xb26   : > { %v1205_v44 = vmul.f32 0.5, %v2906_v15  ;;  %v1326_v33 = vld [vmem:[#allocation3 + $0x8] sm:$0xff] }
 0xb28   : > { %v1206_v46 = vadd.f32 0.5, %v1205_v44 }
 0xb2a   : > { %v1212_v34 = vmul.f32 %v3807_v23, %v1206_v46 }
 0xb96   : > { %v1215_v47 = vpop.permute.xlu0 %1214 }
 0xb97   : > { %v1217_v27 = vmul.f32 %v1215_v47, %v1206_v46 }
 0xb99   : > { %1219 = vrot.lane.b32.xlu0 %v1217_v27, %s3264_s13 }
 0xb9d   : > { %v1364_v29 = vpop.f32.mrf.mxu3 }
 0xb9e   : > { %v1365_v31 = vadd.f32 %v2839_v28, %v1364_v29 }
 0xba0   : > { %2907 = vtanh.f32 %v1365_v31  ;;  %v1367_v49 = vmul.f32 0.5, %v1365_v31 }
 0xba1   : > { %1373 = vrot.lane.b32.xlu0 %v1326_v33, %s3264_s13 }
 0xba2   : > { %2909 = vtanh.f32 %v1367_v49 }
 0xba4   : > { %v1522_v55 = vpop.f32.mrf.mxu2 }
 0xba5   : > { %v1525_v59 = vadd.f32 %v2701_v54, %v1522_v55  ;;  %v3922_v54 = vld [vmem:[#allocation11 + $0x8] sm:$0xff]  ;;  %v3928_v55 = vld [vmem:[#allocation11] sm:$0xff] }
 0xba6   : > { %v2908_v40 = vpop.eup %2907 }
 0xba7   : > { %1378 = vrot.lane.b32.xlu1 %v2908_v40, %s3264_s13  ;;  %v1526_v8 = vmul.f32 0.5, %v1525_v59 }
 0xba8   : > { %v2910_v51 = vpop.eup %2909 }
 0xba9   : > { %1230 = vrot.lane.b32.xlu0 %v3779_v63, %s3266_s14  ;;  %v1369_v53 = vmul.f32 0.5, %v2910_v51  ;;  %v3910_v51 = vld [vmem:[#allocation11 + $0x20] sm:$0xff] }
 0xbab   : > { %v1370_v56 = vadd.f32 0.5, %v1369_v53  ;;  %v3918_v53 = vld [vmem:[#allocation11 + $0x10] sm:$0xff] }
 0xbb1   : > { %1532 = vrot.lane.b32.xlu0 %v1495_v48, %s3264_s13 }
 0xbb9   : > { %1394 = vrot.lane.b32.xlu0 %v1325_v19, %s3266_s14 }
 0xc0b   : > { %v1220_v32 = vpop.permute.xlu0 %1219 }
 0xc0c   : > { %v1222_v50 = vadd.f32 %v1220_v32, %v1212_v34  ;;  %v3900_v34 = vld [vmem:[#allocation11 + $0x38] sm:$0xff]  ;;  %v3904_v32 = vld [vmem:[#allocation11 + $0x30] sm:$0xff] }
 0xc0d   : > { %1602 = vmatpush.msrb.mxu0 %v3900_v34  ;;  %1849 = vmatpush.msrb.mxu1 %v3900_v34 }
 0xc0e   : > { %2911 = vtanh.f32 %v1222_v50  ;;  %v1229_v21 = vsel %vm1062_vm8, %v1222_v50, %v3807_v23  ;;  %v3908_v50 = vld [vmem:[#allocation11 + $0x28] sm:$0xff] }
 0xc0f   : > { %2913 = vtanh.f32 %v1525_v59  ;;  %1603 = vmatpush.msrb.mxu0 %v3904_v32  ;;  %1850 = vmatpush.msrb.mxu1 %v3904_v32  ;;  %v2840_v59 = vld [vmem:[%s4331_s7] ss:$0 sm:$0xff] }
 0xc10   : > { %2915 = vtanh.f32 %v1526_v8 }
 0xc11   : > { %1604 = vmatpush.msrb.mxu0 %v3908_v50  ;;  %1851 = vmatpush.msrb.mxu1 %v3908_v50 }
 0xc13   : > { %v1374_v61 = vpop.permute.xlu0 %1373  ;;  %1605 = vmatpush.msrb.mxu0 %v3910_v51  ;;  %1852 = vmatpush.msrb.mxu1 %v3910_v51 }
 0xc14   : > { %v2912_v52 = vpop.eup %2911  ;;  %v1376_v45 = vmul.f32 %v1374_v61, %v1370_v56 }
 0xc15   : > { %1225 = vrot.lane.b32.xlu2 %v2912_v52, %s3264_s13  ;;  %v2914_v60 = vpop.eup %2913  ;;  %v3914_v52 = vld [vmem:[#allocation11 + $0x18] sm:$0xff] }
 0xc16   : > { %v2916_v62 = vpop.eup %2915  ;;  %1606 = vmatpush.msrb.mxu0 %v3914_v52  ;;  %1853 = vmatpush.msrb.mxu1 %v3914_v52 }
 0xc17   : > { %v1528_v11 = vmul.f32 0.5, %v2916_v62  ;;  %v2841_v62 = vld [vmem:[%s4329_s5] ss:$0 sm:$0xff] }
 0xc18   : > { %1607 = vmatpush.msrb.mxu0 %v3918_v53  ;;  %1854 = vmatpush.msrb.mxu1 %v3918_v53 }
 0xc19   : > { %v1379_v30 = vpop.permute.xlu1 %1378  ;;  %v1529_v12 = vadd.f32 0.5, %v1528_v11 }
 0xc1a   : > { %v1381_v58 = vmul.f32 %v1379_v30, %v1370_v56  ;;  %1608 = vmatpush.msrb.mxu0 %v3922_v54  ;;  %1855 = vmatpush.msrb.mxu1 %v3922_v54 }
 0xc1b   : > { %v1231_v6 = vpop.permute.xlu0 %1230 }
 0xc1c   : > { %1383 = vrot.lane.b32.xlu1 %v1381_v58, %s3264_s13  ;;  %1609 = vmatpush.msrb.mxu0 %v3928_v55 }
 0xc1d   : > { %1856 = vmatpush.msrb.mxu1 %v3928_v55 }
 0xc1e   : > { %2011 = vmatpush.msra.mxu0 %v3809_v24 }
 0xc20   : > { %2012 = vmatpush.msra.mxu0 %v3813_v25 }
 0xc22   : > { %2013 = vmatpush.msra.mxu0 %v3817_v26 }
 0xc23   : > { %v1533_v22 = vpop.permute.xlu0 %1532 }
 0xc24   : > { %1537 = vrot.lane.b32.xlu1 %v2914_v60, %s3264_s13  ;;  %v1535_v57 = vmul.f32 %v1533_v22, %v1529_v12  ;;  %2014 = vmatpush.msra.mxu0 %v3821_v35 }
 0xc2b   : > { %v1395_v38 = vpop.permute.xlu0 %1394 }
 0xc6f   : > { %v1226_v63 = vpop.permute.xlu2 %1225 }
 0xc70   : > { %v1228_v1 = vmul.f32 %v1226_v63, %v1206_v46 }
 0xc72   : > { %v1233_v7 = vsel %vm1062_vm8, %v1228_v1, %v1231_v6 }
 0xc73   : > { %1240 = vrot.lane.b32.xlu2 %v1233_v7, %s3266_s14 }
 0xc8e   : > { %v1384_v9 = vpop.permute.xlu1 %1383 }
 0xc8f   : > { %v1386_v10 = vadd.f32 %v1384_v9, %v1376_v45 }
 0xc91   : > { %2917 = vtanh.f32 %v1386_v10  ;;  %v1393_v29 = vsel %vm1309_vm10, %v1386_v10, %v1374_v61 }
 0xc96   : > { %v1538_v14 = vpop.permute.xlu1 %1537 }
 0xc97   : > { %v2918_v16 = vpop.eup %2917  ;;  %v1540_v17 = vmul.f32 %v1538_v14, %v1529_v12 }
 0xc98   : > { %1389 = vrot.lane.b32.xlu2 %v2918_v16, %s3264_s13 }
 0xc99   : > { %1542 = vrot.lane.b32.xlu1 %v1540_v17, %s3264_s13 }
 0xccd   : > { %v1241_v19 = vpop.permute.xlu2 %1240 }
 0xcce   : > { %1243 = vst.msk [vmem:[#allocation2 + $0x10] sm:$0xff] %vm508_vm1, %v1241_v19 }
 0xcd5   : > { %v3859_v20 = vld [vmem:[#allocation2 + $0x10] sm:$0xff] }
 0xcd6   : > { %1420 = vrot.lane.b32.xlu2 %v3859_v20, %s3264_s13 }
 0xcde   : > { %1558 = vrot.lane.b32.xlu2 %v3833_v3, %s3266_s14 }
 0xce6   : > { %1235 = vrot.lane.b32.xlu2 %v1229_v21, %s3267_s23 }
 0xcf2   : > { %v1390_v36 = vpop.permute.xlu2 %1389 }
 0xcf3   : > { %v1392_v37 = vmul.f32 %v1390_v36, %v1370_v56  ;;  %v2705_v36 = vld [vmem:[%s3463_s15 + $0x28] sm:$0xff] }
 0xcf5   : > { %v1397_v39 = vsel %vm1309_vm10, %v1392_v37, %v1395_v38 }
 0xcf6   : > { %1404 = vrot.lane.b32.xlu1 %v1397_v39, %s3266_s14 }
 0xcfe   : > { %1554 = vperm.xlu1 %2831, %v1552_v42  }
 0xd0b   : > { %v1543_v23 = vpop.permute.xlu1 %1542 }
 0xd0c   : > { %v1545_v43 = vadd.f32 %v1543_v23, %v1535_v57 }
 0xd0e   : > { %2919 = vtanh.f32 %v1545_v43 }
 0xd14   : > { %v2920_v2 = vpop.eup %2919 }
 0xd15   : > { %1548 = vrot.lane.b32.xlu0 %v2920_v2, %s3264_s13 }
 0xd30   : > { %v1421_v3 = vpop.permute.xlu2 %1420 }
 0xd38   : > { %v1559_v4 = vpop.permute.xlu2 %1558 }
 0xd40   : > { %v1236_v5 = vpop.permute.xlu2 %1235 }
 0xd41   : > { %1238 = vst.msk [vmem:[#allocation3 + $0x10] sm:$0xff] %vm508_vm1, %v1236_v5 }
 0xd48   : > { %v1409_v15 = vld [vmem:[#allocation3 + $0x10] sm:$0xff] }
 0xd49   : > { %1456 = vrot.lane.b32.xlu2 %v1409_v15, %s3264_s13 }
 0xd68   : > { %v1405_v44 = vpop.permute.xlu1 %1404 }
 0xd69   : > { %1407 = vst.msk [vmem:[#allocation2 + $0x8] sm:$0xff] %vm508_vm1, %v1405_v44  ;;  %v1423_v46 = vsel %vm508_vm1, %v1405_v44, %v1421_v3 }
 0xd6a   : > { %2700 = vmatmul.msk.f32.vlgmr.msra.gmra.mxu1 %vm600_vm4, %v1423_v46 }
 0xd6b   : > { %2258 = vmatpush.msra.mxu1 %v3809_v24 }
 0xd6d   : > { %2259 = vmatpush.msra.mxu1 %v3813_v25 }
 0xd6f   : > { %2260 = vmatpush.msra.mxu1 %v3817_v26 }
 0xd70   : > { %v3881_v47 = vpop.permute.xlu1 %1554  ;;  %v3883_v27 = vld [vmem:[#allocation2 + $0x8] sm:$0xff] }
 0xd71   : > { %vm1556_vm12 = vcmp.eq.s32.totalorder %v3881_v47, 1  ;;  %1584 = vrot.lane.b32.xlu1 %v3883_v27, %s3264_s13  ;;  %2261 = vmatpush.msra.mxu1 %v3821_v35 }
 0xd72   : > { %v1557_v28 = vsel %vm1556_vm12, %v1545_v43, %v1533_v22 }
 0xd73   : > { %1563 = vrot.lane.b32.xlu2 %v1557_v28, %s3267_s23 }
 0xd79   : > { %1399 = vrot.lane.b32.xlu1 %v1393_v29, %s3267_s23 }
 0xd87   : > { %v1549_v31 = vpop.permute.xlu0 %1548 }
 0xd88   : > { %v1551_v33 = vmul.f32 %v1549_v31, %v1529_v12 }
 0xd8a   : > { %v1561_v40 = vsel %vm1556_vm12, %v1551_v33, %v1559_v4 }
 0xd8b   : > { %1568 = vrot.lane.b32.xlu0 %v1561_v40, %s3266_s14 }
 0xda3   : > { %v3897_v48 = vpop.permute.xlu2 %1456 }
 0xdcd   : > { %v1564_v49 = vpop.permute.xlu2 %1563 }
 0xdce   : > { %1566 = vst.msk [vmem:[#allocation3] sm:$0xff] %vm508_vm1, %v1564_v49 }
 0xdd5   : > { %v1742_v11 = vld [vmem:[#allocation3] sm:$0xff] }
 0xde3   : > { %v1585_v56 = vpop.permute.xlu1 %1584 }
 0xde7   : > { %v1447_v30 = vpop.f32.mrf.mxu1 }
 0xde8   : > { %v1448_v58 = vadd.f32 %v2840_v59, %v1447_v30 }
 0xdea   : > { %2921 = vtanh.f32 %v1448_v58  ;;  %v1450_v35 = vmul.f32 0.5, %v1448_v58 }
 0xdeb   : > { %v1400_v24 = vpop.permute.xlu1 %1399 }
 0xdec   : > { %1402 = vst.msk [vmem:[#allocation3 + $0x8] sm:$0xff] %vm508_vm1, %v1400_v24  ;;  %2923 = vtanh.f32 %v1450_v35 }
 0xdf0   : > { %v2922_v25 = vpop.eup %2921 }
 0xdf1   : > { %1461 = vrot.lane.b32.xlu0 %v2922_v25, %s3264_s13 }
 0xdf2   : > { %v2924_v63 = vpop.eup %2923 }
 0xdf3   : > { %v1452_v1 = vmul.f32 0.5, %v2924_v63  ;;  %v1573_v45 = vld [vmem:[#allocation3 + $0x8] sm:$0xff] }
 0xdf5   : > { %v1453_v6 = vadd.f32 0.5, %v1452_v1  ;;  %v4007_v1 = vld [vmem:[#allocation12 + $0x38] sm:$0xff] }
 0xdf6   : > { %1685 = vmatpush.msra.mxu2 %v4007_v1  ;;  %1932 = vmatpush.msra.mxu3 %v4007_v1 }
 0xdf7   : > { %v1459_v14 = vmul.f32 %v3897_v48, %v1453_v6 }
 0xdfd   : > { %v1569_v60 = vpop.permute.xlu0 %1568 }
 0xdfe   : > { %1571 = vst.msk [vmem:[#allocation2] sm:$0xff] %vm508_vm1, %v1569_v60  ;;  %v1587_v26 = vsel %vm508_vm1, %v1569_v60, %v1585_v56 }
 0xdff   : > { %2703 = vmatmul.msk.f32.vlgmr.msrb.gmra.mxu0 %vm600_vm4, %v1587_v26  ;;  %v1739_v26 = vstv %s1738_s21 }
 0xe00   : > { %vm1740_vm13 = vcmp.lt.s32.totalorder %v1739_v26, %v3489_v0  ;;  %2179 = vmatpush.msrb.mxu0 %v4007_v1 }
 0xe05   : > { %v3948_v61 = vld [vmem:[#allocation2] sm:$0xff] }
 0xe06   : > { %2706 = vmatmul.msk.f32.vlgmr.msrb.gmra.mxu3 %vm508_vm1, %v3948_v61 }
 0xe63   : > { %v1462_v7 = vpop.permute.xlu0 %1461 }
 0xe64   : > { %v1464_v8 = vmul.f32 %v1462_v7, %v1453_v6  ;;  %v4013_v7 = vld [vmem:[#allocation12 + $0x28] sm:$0xff] }
 0xe66   : > { %1466 = vrot.lane.b32.xlu0 %v1464_v8, %s3264_s13  ;;  %v4018_v8 = vld [vmem:[#allocation12 + $0x20] sm:$0xff] }
 0xe6e   : > { %1620 = vrot.lane.b32.xlu0 %v1573_v45, %s3264_s13  ;;  %v4023_v45 = vld [vmem:[#allocation12 + $0x18] sm:$0xff] }
 0xe76   : > { %1477 = vrot.lane.b32.xlu0 %v3859_v20, %s3266_s14 }
 0xe7c   : > { %v1611_v9 = vpop.f32.mrf.mxu0 }
 0xe7d   : > { %v1612_v10 = vadd.f32 %v2841_v62, %v1611_v9  ;;  %v4028_v9 = vld [vmem:[#allocation12 + $0x10] sm:$0xff] }
 0xe7e   : > { %1779 = vrot.lane.b32.xlu0 %v1742_v11, %s3264_s13 }
 0xe7f   : > { %2925 = vtanh.f32 %v1612_v10  ;;  %v1614_v20 = vmul.f32 0.5, %v1612_v10  ;;  %v4033_v10 = vld [vmem:[#allocation12 + $0x8] sm:$0xff] }
 0xe85   : > { %v2926_v12 = vpop.eup %2925 }
 0xe86   : > { %1625 = vrot.lane.b32.xlu1 %v2926_v12, %s3264_s13  ;;  %1641 = vrot.lane.b32.xlu0 %v3883_v27, %s3266_s14 }
 0xe89   : > { %v1769_v37 = vpop.f32.mrf.mxu3 }
 0xe8a   : > { %v1772_v39 = vadd.f32 %v2705_v36, %v1769_v37 }
 0xe8c   : > { %v1773_v5 = vmul.f32 0.5, %v1772_v39 }
 0xed8   : > { %v1467_v16 = vpop.permute.xlu0 %1466 }
 0xed9   : > { %v1469_v17 = vadd.f32 %v1467_v16, %v1459_v14  ;;  %v1657_v16 = vld [vmem:[#allocation12] sm:$0xff] }
 0xedb   : > { %2927 = vtanh.f32 %v1469_v17  ;;  %v1476_v59 = vsel %vm1309_vm10, %v1469_v17, %v3897_v48 }
 0xedc   : > { %2929 = vtanh.f32 %v1614_v20 }
 0xedd   : > { %2931 = vtanh.f32 %v1772_v39 }
 0xede   : > { %2933 = vtanh.f32 %v1773_v5 }
 0xee0   : > { %v3968_v23 = vpop.permute.xlu0 %1620 }
 0xee1   : > { %v2928_v19 = vpop.eup %2927 }
 0xee2   : > { %1472 = vrot.lane.b32.xlu2 %v2928_v19, %s3264_s13  ;;  %v2930_v21 = vpop.eup %2929 }
 0xee3   : > { %v1616_v22 = vmul.f32 0.5, %v2930_v21  ;;  %v2932_v57 = vpop.eup %2931 }
 0xee4   : > { %v2934_v44 = vpop.eup %2933 }
 0xee5   : > { %v1617_v38 = vadd.f32 0.5, %v1616_v22  ;;  %v1775_v28 = vmul.f32 0.5, %v2934_v44  ;;  %v2842_v22 = vld [vmem:[%s4331_s7] ss:$0 sm:$0xff] }
 0xee6   : > { %v2843_v44 = vld [vmem:[%s4329_s5] ss:$0 sm:$0xff] }
 0xee7   : > { %v1623_v15 = vmul.f32 %v3968_v23, %v1617_v38  ;;  %v3977_v29 = vadd.f32 0.5, %v1775_v28  ;;  %v2709_v28 = vld [vmem:[%s3463_s15 + $0x30] sm:$0xff] }
 0xee8   : > { %v1478_v3 = vpop.permute.xlu0 %1477 }
 0xef0   : > { %v3993_v30 = vpop.permute.xlu0 %1779 }
 0xef1   : > { %v1782_v18 = vmul.f32 %v3993_v30, %v3977_v29 }
 0xef8   : > { %v1626_v41 = vpop.permute.xlu1 %1625  ;;  %v1642_v25 = vpop.permute.xlu0 %1641 }
 0xef9   : > { %v1628_v42 = vmul.f32 %v1626_v41, %v1617_v38 }
 0xefb   : > { %1630 = vrot.lane.b32.xlu1 %v1628_v42, %s3264_s13 }
 0xf03   : > { %1784 = vrot.lane.b32.xlu1 %v2932_v57, %s3264_s13 }
 0xf3c   : > { %v1473_v43 = vpop.permute.xlu2 %1472 }
 0xf3d   : > { %v1475_v2 = vmul.f32 %v1473_v43, %v1453_v6  ;;  %v4009_v6 = vld [vmem:[#allocation12 + $0x30] sm:$0xff] }
 0xf3e   : > { %1686 = vmatpush.msra.mxu2 %v4009_v6  ;;  %1933 = vmatpush.msra.mxu3 %v4009_v6 }
 0xf3f   : > { %v1480_v4 = vsel %vm1309_vm10, %v1475_v2, %v1478_v3  ;;  %2180 = vmatpush.msrb.mxu0 %v4009_v6 }
 0xf40   : > { %1487 = vrot.lane.b32.xlu2 %v1480_v4, %s3266_s14  ;;  %1687 = vmatpush.msra.mxu2 %v4013_v7 }
 0xf41   : > { %1934 = vmatpush.msra.mxu3 %v4013_v7  ;;  %2181 = vmatpush.msrb.mxu0 %v4013_v7 }
 0xf42   : > { %1688 = vmatpush.msra.mxu2 %v4018_v8 }
 0xf43   : > { %1935 = vmatpush.msra.mxu3 %v4018_v8  ;;  %2182 = vmatpush.msrb.mxu0 %v4018_v8 }
 0xf44   : > { %1689 = vmatpush.msra.mxu2 %v4023_v45 }
 0xf45   : > { %1936 = vmatpush.msra.mxu3 %v4023_v45  ;;  %2183 = vmatpush.msrb.mxu0 %v4023_v45 }
 0xf46   : > { %1690 = vmatpush.msra.mxu2 %v4028_v9 }
 0xf47   : > { %1937 = vmatpush.msra.mxu3 %v4028_v9  ;;  %2184 = vmatpush.msrb.mxu0 %v4028_v9 }
 0xf48   : > { %1691 = vmatpush.msra.mxu2 %v4033_v10 }
 0xf49   : > { %1938 = vmatpush.msra.mxu3 %v4033_v10  ;;  %2185 = vmatpush.msrb.mxu0 %v4033_v10 }
 0xf4a   : > { %1692 = vmatpush.msra.mxu2 %v1657_v16 }
 0xf4b   : > { %1939 = vmatpush.msra.mxu3 %v1657_v16  ;;  %2186 = vmatpush.msrb.mxu0 %v1657_v16 }
 0xf4c   : > { %2096 = vmatpush.msrb.mxu2 %v3900_v34 }
 0xf4d   : > { %2343 = vmatpush.msrb.mxu3 %v3900_v34 }
 0xf4e   : > { %2097 = vmatpush.msrb.mxu2 %v3904_v32 }
 0xf4f   : > { %2344 = vmatpush.msrb.mxu3 %v3904_v32 }
 0xf50   : > { %2098 = vmatpush.msrb.mxu2 %v3908_v50 }
 0xf51   : > { %2345 = vmatpush.msrb.mxu3 %v3908_v50 }
 0xf52   : > { %2099 = vmatpush.msrb.mxu2 %v3910_v51 }
 0xf53   : > { %2346 = vmatpush.msrb.mxu3 %v3910_v51 }
 0xf54   : > { %2100 = vmatpush.msrb.mxu2 %v3914_v52 }
 0xf55   : > { %2347 = vmatpush.msrb.mxu3 %v3914_v52 }
 0xf56   : > { %2101 = vmatpush.msrb.mxu2 %v3918_v53 }
 0xf57   : > { %2348 = vmatpush.msrb.mxu3 %v3918_v53 }
 0xf58   : > { %2102 = vmatpush.msrb.mxu2 %v3922_v54 }
 0xf59   : > { %2349 = vmatpush.msrb.mxu3 %v3922_v54 }
 0xf5a   : > { %2103 = vmatpush.msrb.mxu2 %v3928_v55 }
 0xf5b   : > { %2350 = vmatpush.msrb.mxu3 %v3928_v55 }
 0xf6d   : > { %v1631_v46 = vpop.permute.xlu1 %1630 }
 0xf6e   : > { %v3974_v27 = vadd.f32 %v1631_v46, %v1623_v15 }
 0xf70   : > { %2935 = vtanh.f32 %v3974_v27  ;;  %v1640_v53 = vsel %vm1556_vm12, %v3974_v27, %v3968_v23 }
 0xf75   : > { %v1785_v31 = vpop.permute.xlu1 %1784 }
 0xf76   : > { %v2936_v33 = vpop.eup %2935  ;;  %v1787_v40 = vmul.f32 %v1785_v31, %v3977_v29 }
 0xf77   : > { %1636 = vrot.lane.b32.xlu2 %v2936_v33, %s3264_s13 }
 0xf78   : > { %1789 = vrot.lane.b32.xlu1 %v1787_v40, %s3264_s13 }
 0xf9a   : > { %v1488_v49 = vpop.permute.xlu2 %1487 }
 0xf9b   : > { %1490 = vst.msk [vmem:[#allocation2 + $0x10] sm:$0xff] %vm508_vm1, %v1488_v49 }
 0xfa2   : > { %v3983_v56 = vld [vmem:[#allocation2 + $0x10] sm:$0xff] }
 0xfa3   : > { %1667 = vrot.lane.b32.xlu2 %v3983_v56, %s3264_s13 }
 0xfab   : > { %1805 = vrot.lane.b32.xlu2 %v3948_v61, %s3266_s14  ;;  %v1799_v61 = vsel %vm1740_vm13, 1, %v3265_v13 }
 0xfb3   : > { %1482 = vrot.lane.b32.xlu2 %v1476_v59, %s3267_s23 }
 0xfd1   : > { %v1637_v58 = vpop.permute.xlu2 %1636 }
 0xfd2   : > { %v1639_v24 = vmul.f32 %v1637_v58, %v1617_v38 }
 0xfd4   : > { %v1644_v60 = vsel %vm1556_vm12, %v1639_v24, %v1642_v25 }
 0xfd5   : > { %1651 = vrot.lane.b32.xlu1 %v1644_v60, %s3266_s14 }
 0xfdd   : > { %1801 = vperm.xlu1 %2831, %v1799_v61  }
 0xfea   : > { %v1790_v48 = vpop.permute.xlu1 %1789 }
 0xfeb   : > { %v4003_v35 = vadd.f32 %v1790_v48, %v1782_v18 }
 0xfed   : > { %2937 = vtanh.f32 %v4003_v35 }
 0xff3   : > { %v2938_v63 = vpop.eup %2937 }
 0xff4   : > { %1795 = vrot.lane.b32.xlu0 %v2938_v63, %s3264_s13 }
 0xffd   : > { %v1668_v62 = vpop.permute.xlu2 %1667 }
0x1005   : > { %v1806_v11 = vpop.permute.xlu2 %1805 }
0x100d   : > { %v1483_v12 = vpop.permute.xlu2 %1482 }
0x100e   : > { %1485 = vst.msk [vmem:[#allocation3 + $0x10] sm:$0xff] %vm508_vm1, %v1483_v12 }
0x1015   : > { %v1656_v14 = vld [vmem:[#allocation3 + $0x10] sm:$0xff] }
0x1016   : > { %1703 = vrot.lane.b32.xlu2 %v1656_v14, %s3264_s13 }
0x1047   : > { %v1652_v34 = vpop.permute.xlu1 %1651 }
0x1048   : > { %1654 = vst.msk [vmem:[#allocation2 + $0x8] sm:$0xff] %vm508_vm1, %v1652_v34  ;;  %v1670_v32 = vsel %vm508_vm1, %v1652_v34, %v1668_v62 }
0x1049   : > { %2704 = vmatmul.msk.f32.vlgmr.msra.gmra.mxu2 %vm600_vm4, %v1670_v32 }
0x104f   : > { %v4063_v50 = vpop.permute.xlu1 %1801  ;;  %v4065_v51 = vld [vmem:[#allocation2 + $0x8] sm:$0xff] }
0x1050   : > { %vm1803_vm14 = vcmp.eq.s32.totalorder %v4063_v50, 1  ;;  %1831 = vrot.lane.b32.xlu1 %v4065_v51, %s3264_s13 }
0x1051   : > { %v1804_v52 = vsel %vm1803_vm14, %v4003_v35, %v3993_v30 }
0x1052   : > { %1810 = vrot.lane.b32.xlu2 %v1804_v52, %s3267_s23 }
0x1058   : > { %1646 = vrot.lane.b32.xlu1 %v1640_v53, %s3267_s23 }
0x1066   : > { %v1796_v54 = vpop.permute.xlu0 %1795 }
0x1067   : > { %v1798_v55 = vmul.f32 %v1796_v54, %v3977_v29 }
0x1069   : > { %v1808_v17 = vsel %vm1803_vm14, %v1798_v55, %v1806_v11 }
0x106a   : > { %1815 = vrot.lane.b32.xlu0 %v1808_v17, %s3266_s14 }
0x1070   : > { %v4084_v19 = vpop.permute.xlu2 %1703 }
0x10ac   : > { %v1811_v20 = vpop.permute.xlu2 %1810 }
0x10ad   : > { %1813 = vst.msk [vmem:[#allocation3] sm:$0xff] %vm508_vm1, %v1811_v20 }
0x10b4   : > { %v1989_v49 = vld [vmem:[#allocation3] sm:$0xff] }
0x10c2   : > { %v1832_v21 = vpop.permute.xlu1 %1831 }
0x10ca   : > { %v1647_v36 = vpop.permute.xlu1 %1646 }
0x10cb   : > { %1649 = vst.msk [vmem:[#allocation3 + $0x8] sm:$0xff] %vm508_vm1, %v1647_v36 }
0x10cc   : > { %v1694_v37 = vpop.f32.mrf.mxu2 }
0x10cd   : > { %v1695_v38 = vadd.f32 %v2842_v22, %v1694_v37 }
0x10cf   : > { %2939 = vtanh.f32 %v1695_v38  ;;  %v1697_v23 = vmul.f32 0.5, %v1695_v38  ;;  %v1986_v38 = vstv %s1985_s17 }
0x10d0   : > { %vm1987_vm15 = vcmp.lt.s32.totalorder %v1986_v38, %v3489_v0 }
0x10d1   : > { %2941 = vtanh.f32 %v1697_v23 }
0x10d2   : > { %v1820_v15 = vld [vmem:[#allocation3 + $0x8] sm:$0xff] }
0x10d5   : > { %v2940_v39 = vpop.eup %2939 }
0x10d6   : > { %1708 = vrot.lane.b32.xlu0 %v2940_v39, %s3264_s13 }
0x10d7   : > { %v2942_v43 = vpop.eup %2941 }
0x10d8   : > { %v1699_v2 = vmul.f32 0.5, %v2942_v43 }
0x10da   : > { %v1700_v3 = vadd.f32 0.5, %v1699_v2 }
0x10dc   : > { %v1816_v41 = vpop.permute.xlu0 %1815  ;;  %v1706_v30 = vmul.f32 %v4084_v19, %v1700_v3 }
0x10dd   : > { %1818 = vst.msk [vmem:[#allocation2] sm:$0xff] %vm508_vm1, %v1816_v41  ;;  %v1834_v42 = vsel %vm508_vm1, %v1816_v41, %v1832_v21  ;;  %v2046_v41 = vsel %vm1987_vm15, 1, %v3265_v13 }
0x10de   : > { %2707 = vmatmul.msk.f32.vlgmr.msrb.gmra.mxu1 %vm600_vm4, %v1834_v42 }
0x10df   : > { %2426 = vmatpush.msrb.mxu1 %v4007_v1 }
0x10e1   : > { %2427 = vmatpush.msrb.mxu1 %v4009_v6 }
0x10e3   : > { %2428 = vmatpush.msrb.mxu1 %v4013_v7 }
0x10e4   : > { %v4098_v57 = vld [vmem:[#allocation2] sm:$0xff] }
0x10e5   : > { %2710 = vmatmul.msk.f32.vlgmr.msra.gmra.mxu0 %vm508_vm1, %v4098_v57  ;;  %2429 = vmatpush.msrb.mxu1 %v4018_v8 }
0x10e7   : > { %2430 = vmatpush.msrb.mxu1 %v4023_v45 }
0x10e9   : > { %2431 = vmatpush.msrb.mxu1 %v4028_v9 }
0x10eb   : > { %2432 = vmatpush.msrb.mxu1 %v4033_v10 }
0x10ed   : > { %2433 = vmatpush.msrb.mxu1 %v1657_v16 }
0x1148   : > { %v1709_v4 = vpop.permute.xlu0 %1708 }
0x1149   : > { %v1711_v5 = vmul.f32 %v1709_v4, %v1700_v3 }
0x114b   : > { %1713 = vrot.lane.b32.xlu0 %v1711_v5, %s3264_s13 }
0x1153   : > { %1867 = vrot.lane.b32.xlu0 %v1820_v15, %s3264_s13 }
0x115b   : > { %v1858_v46 = vpop.f32.mrf.mxu1 }
0x115c   : > { %v1859_v27 = vadd.f32 %v2843_v44, %v1858_v46 }
0x115e   : > { %2943 = vtanh.f32 %v1859_v27  ;;  %v1861_v60 = vmul.f32 0.5, %v1859_v27 }
0x1162   : > { %v2016_v29 = vpop.f32.mrf.mxu0 }
0x1163   : > { %v2019_v31 = vadd.f32 %v2709_v28, %v2016_v29 }
0x1164   : > { %v2944_v33 = vpop.eup %2943 }
0x1165   : > { %2945 = vtanh.f32 %v2019_v31  ;;  %1872 = vrot.lane.b32.xlu1 %v2944_v33, %s3264_s13  ;;  %v2020_v59 = vmul.f32 0.5, %v2019_v31  ;;  %v2844_v31 = vld [vmem:[%s4331_s7] ss:$0 sm:$0xff] }
0x1167   : > { %2947 = vtanh.f32 %v2020_v59 }
0x116b   : > { %v2946_v40 = vpop.eup %2945 }
0x116c   : > { %2031 = vrot.lane.b32.xlu2 %v2946_v40, %s3264_s13 }
0x116d   : > { %v2948_v25 = vpop.eup %2947 }
0x116e   : > { %v2022_v61 = vmul.f32 0.5, %v2948_v25 }
0x1170   : > { %v2023_v48 = vadd.f32 0.5, %v2022_v61 }
0x1174   : > { %2026 = vrot.lane.b32.xlu2 %v1989_v49, %s3264_s13 }
0x11bd   : > { %v1714_v58 = vpop.permute.xlu0 %1713 }
0x11be   : > { %v1716_v24 = vadd.f32 %v1714_v58, %v1706_v30 }
0x11c0   : > { %2949 = vtanh.f32 %v1716_v24  ;;  %v1723_v54 = vsel %vm1556_vm12, %v1716_v24, %v4084_v19 }
0x11c1   : > { %2951 = vtanh.f32 %v1861_v60  ;;  %v2845_v60 = vld [vmem:[%s4329_s5] ss:$0 sm:$0xff] }
0x11c5   : > { %v1868_v45 = vpop.permute.xlu0 %1867 }
0x11c6   : > { %v2950_v26 = vpop.eup %2949  ;;  %v2032_v18 = vpop.permute.xlu2 %2031 }
0x11c7   : > { %1719 = vrot.lane.b32.xlu0 %v2950_v26, %s3264_s13  ;;  %v2034_v35 = vmul.f32 %v2032_v18, %v2023_v48  ;;  %v2952_v63 = vpop.eup %2951  ;;  %v2713_v18 = vld [vmem:[%s3463_s15 + $0x38] sm:$0xff]  ;;  %s2232_s15 = sadd.s32 7, %s3482_s3 }
0x11c8   : > { %v1863_v1 = vmul.f32 0.5, %v2952_v63 }
0x11ca   : > { %v1864_v6 = vadd.f32 0.5, %v1863_v1 }
0x11cc   : > { %v1870_v9 = vmul.f32 %v1868_v45, %v1864_v6 }
0x11ce   : > { %v2027_v12 = vpop.permute.xlu2 %2026 }
0x11cf   : > { %2036 = vrot.lane.b32.xlu0 %v2034_v35, %s3264_s13  ;;  %v2029_v16 = vmul.f32 %v2027_v12, %v2023_v48 }
0x11d7   : > { %v1873_v7 = vpop.permute.xlu1 %1872  ;;  %1888 = vrot.lane.b32.xlu0 %v4065_v51, %s3266_s14 }
0x11d8   : > { %v1875_v8 = vmul.f32 %v1873_v7, %v1864_v6 }
0x11da   : > { %1877 = vrot.lane.b32.xlu1 %v1875_v8, %s3264_s13 }
0x11e2   : > { %1724 = vrot.lane.b32.xlu1 %v3983_v56, %s3266_s14 }
0x1239   : > { %v1720_v62 = vpop.permute.xlu0 %1719 }
0x123a   : > { %v1722_v34 = vmul.f32 %v1720_v62, %v1700_v3 }
0x1241   : > { %v2037_v14 = vpop.permute.xlu0 %2036 }
0x1242   : > { %v2039_v32 = vadd.f32 %v2037_v14, %v2029_v16 }
0x1249   : > { %v1889_v47 = vpop.permute.xlu0 %1888 }
0x124c   : > { %v1878_v10 = vpop.permute.xlu1 %1877 }
0x124d   : > { %v1880_v11 = vadd.f32 %v1878_v10, %v1870_v9 }
0x124f   : > { %2953 = vtanh.f32 %v1880_v11  ;;  %v1887_v15 = vsel %vm1803_vm14, %v1880_v11, %v1868_v45 }
0x1250   : > { %2955 = vtanh.f32 %v2039_v32 }
0x1254   : > { %v1725_v52 = vpop.permute.xlu1 %1724 }
0x1255   : > { %v2954_v53 = vpop.eup %2953  ;;  %v1727_v51 = vsel %vm1556_vm12, %v1722_v34, %v1725_v52 }
0x1256   : > { %1883 = vrot.lane.b32.xlu1 %v2954_v53, %s3264_s13  ;;  %1734 = vrot.lane.b32.xlu2 %v1727_v51, %s3266_s14  ;;  %v2956_v56 = vpop.eup %2955 }
0x125e   : > { %2042 = vrot.lane.b32.xlu2 %v2956_v56, %s3264_s13 }
0x1266   : > { %2052 = vrot.lane.b32.xlu2 %v4098_v57, %s3266_s14 }
0x126e   : > { %1729 = vrot.lane.b32.xlu2 %v1723_v54, %s3267_s23 }
0x12b0   : > { %v1735_v55 = vpop.permute.xlu2 %1734 }
0x12b1   : > { %1737 = vst.msk [vmem:[#allocation2 + $0x10] sm:$0xff] %vm508_vm1, %v1735_v55 }
0x12b8   : > { %v2043_v17 = vpop.permute.xlu2 %2042  ;;  %v4135_v20 = vld [vmem:[#allocation2 + $0x10] sm:$0xff] }
0x12b9   : > { %1914 = vrot.lane.b32.xlu0 %v4135_v20, %s3264_s13  ;;  %v2045_v43 = vmul.f32 %v2043_v17, %v2023_v48 }
0x12c0   : > { %v2053_v21 = vpop.permute.xlu2 %2052 }
0x12c8   : > { %v1884_v22 = vpop.permute.xlu1 %1883  ;;  %v1730_v36 = vpop.permute.xlu2 %1729 }
0x12c9   : > { %v1886_v37 = vmul.f32 %v1884_v22, %v1864_v6  ;;  %1732 = vst.msk [vmem:[#allocation3 + $0x10] sm:$0xff] %vm508_vm1, %v1730_v36 }
0x12cb   : > { %v1891_v19 = vsel %vm1803_vm14, %v1886_v37, %v1889_v47 }
0x12cc   : > { %1898 = vrot.lane.b32.xlu1 %v1891_v19, %s3266_s14 }
0x12d0   : > { %v1903_v39 = vld [vmem:[#allocation3 + $0x10] sm:$0xff] }
0x12d1   : > { %1950 = vrot.lane.b32.xlu2 %v1903_v39, %s3264_s13 }
0x12d4   : > { %2048 = vperm.xlu1 %2831, %v2046_v41  }
0x132b   : > { %v1915_v42 = vpop.permute.xlu0 %1914  ;;  %v4166_v44 = vpop.permute.xlu2 %1950 }
0x133e   : > { %v1899_v57 = vpop.permute.xlu1 %1898 }
0x133f   : > { %1901 = vst.msk [vmem:[#allocation2 + $0x8] sm:$0xff] %vm508_vm1, %v1899_v57  ;;  %v1917_v23 = vsel %vm508_vm1, %v1899_v57, %v1915_v42 }
0x1340   : > { %2708 = vmatmul.msk.f32.vlgmr.msra.gmra.mxu3 %vm600_vm4, %v1917_v23 }
0x1346   : > { %v4150_v2 = vpop.permute.xlu1 %2048  ;;  %v4152_v3 = vld [vmem:[#allocation2 + $0x8] sm:$0xff] }
0x1347   : > { %vm2050_vm0 = vcmp.eq.s32.totalorder %v4150_v2, 1  ;;  %2078 = vrot.lane.b32.xlu1 %v4152_v3, %s3264_s13 }
0x1348   : > { %v2055_v4 = vsel %vm2050_vm0, %v2045_v43, %v2053_v21  ;;  %v2051_v5 = vsel %vm2050_vm0, %v2039_v32, %v2027_v12 }
0x1349   : > { %2062 = vrot.lane.b32.xlu0 %v2055_v4, %s3266_s14  ;;  %2057 = vrot.lane.b32.xlu2 %v2051_v5, %s3267_s23 }
0x134f   : > { %1893 = vrot.lane.b32.xlu1 %v1887_v15, %s3267_s23 }
0x13a3   : > { %v2058_v46 = vpop.permute.xlu2 %2057 }
0x13a4   : > { %2060 = vst.msk [vmem:[#allocation3] sm:$0xff] %vm508_vm1, %v2058_v46 }
0x13ab   : > { %v2236_v62 = vld [vmem:[#allocation3] sm:$0xff] }
0x13b9   : > { %v2079_v27 = vpop.permute.xlu1 %2078 }
0x13bb   : > { %v2063_v28 = vpop.permute.xlu0 %2062 }
0x13bc   : > { %2065 = vst.msk [vmem:[#allocation2] sm:$0xff] %vm508_vm1, %v2063_v28  ;;  %v2081_v29 = vsel %vm508_vm1, %v2063_v28, %v2079_v27 }
0x13bd   : > { %2711 = vmatmul.msk.f32.vlgmr.msrb.gmra.mxu2 %vm600_vm4, %v2081_v29 }
0x13c1   : > { %v1894_v33 = vpop.permute.xlu1 %1893 }
0x13c2   : > { %1896 = vst.msk [vmem:[#allocation3 + $0x8] sm:$0xff] %vm508_vm1, %v1894_v33 }
0x13c3   : > { %v1941_v40 = vpop.f32.mrf.mxu3  ;;  %v4176_v49 = vld [vmem:[#allocation2] sm:$0xff] }
0x13c4   : > { %v1942_v59 = vadd.f32 %v2844_v31, %v1941_v40  ;;  %2714 = vmatmul.msk.f32.vlgmr.msra.gmra.mxu1 %vm508_vm1, %v4176_v49 }
0x13c6   : > { %2957 = vtanh.f32 %v1942_v59  ;;  %v1944_v58 = vmul.f32 0.5, %v1942_v59 }
0x13c8   : > { %2959 = vtanh.f32 %v1944_v58 }
0x13c9   : > { %v2067_v8 = vld [vmem:[#allocation3 + $0x8] sm:$0xff] }
0x13cc   : > { %v2958_v30 = vpop.eup %2957 }
0x13cd   : > { %1955 = vrot.lane.b32.xlu0 %v2958_v30, %s3264_s13 }
0x13ce   : > { %v2960_v24 = vpop.eup %2959 }
0x13cf   : > { %v1946_v25 = vmul.f32 0.5, %v2960_v24 }
0x13d1   : > { %v1947_v26 = vadd.f32 0.5, %v1946_v25 }
0x13d3   : > { %v1953_v11 = vmul.f32 %v4166_v44, %v1947_v26 }
0x143f   : > { %v1956_v61 = vpop.permute.xlu0 %1955 }
0x1440   : > { %v1958_v48 = vmul.f32 %v1956_v61, %v1947_v26  ;;  %v2105_v35 = vpop.f32.mrf.mxu2 }
0x1441   : > { %v2106_v63 = vadd.f32 %v2845_v60, %v2105_v35  ;;  %v2263_v1 = vpop.f32.mrf.mxu1 }
0x1442   : > { %v2266_v6 = vadd.f32 %v2713_v18, %v2263_v1  ;;  %1960 = vrot.lane.b32.xlu0 %v1958_v48, %s3264_s13  ;;  %v2846_v18 = vld [vmem:[%s4331_s7] ss:$0 sm:$0xff] }
0x1443   : > { %2961 = vtanh.f32 %v2106_v63  ;;  %v2108_v9 = vmul.f32 0.5, %v2106_v63 }
0x1444   : > { %2963 = vtanh.f32 %v2266_v6  ;;  %v2267_v10 = vmul.f32 0.5, %v2266_v6 }
0x1445   : > { %2965 = vtanh.f32 %v2108_v9 }
0x1446   : > { %2967 = vtanh.f32 %v2267_v10 }
0x1449   : > { %v2962_v7 = vpop.eup %2961 }
0x144a   : > { %v2964_v45 = vpop.eup %2963  ;;  %2119 = vrot.lane.b32.xlu1 %v2962_v7, %s3264_s13  ;;  %2114 = vrot.lane.b32.xlu0 %v2067_v8, %s3264_s13 }
0x144b   : > { %2278 = vrot.lane.b32.xlu2 %v2964_v45, %s3264_s13  ;;  %v2966_v12 = vpop.eup %2965 }
0x144c   : > { %v2110_v34 = vmul.f32 0.5, %v2966_v12  ;;  %v2968_v32 = vpop.eup %2967 }
0x144d   : > { %v2269_v54 = vmul.f32 0.5, %v2968_v32 }
0x144e   : > { %v2111_v52 = vadd.f32 0.5, %v2110_v34 }
0x144f   : > { %v2270_v17 = vadd.f32 0.5, %v2269_v54 }
0x1453   : > { %2273 = vrot.lane.b32.xlu2 %v2236_v62, %s3264_s13 }
0x14a5   : > { %v2279_v55 = vpop.permute.xlu2 %2278 }
0x14a6   : > { %v2281_v21 = vmul.f32 %v2279_v55, %v2270_v17 }
0x14ad   : > { %v4198_v38 = vpop.permute.xlu2 %2273 }
0x14ae   : > { %v2276_v39 = vmul.f32 %v4198_v38, %v2270_v17 }
0x14b4   : > { %v1961_v14 = vpop.permute.xlu0 %1960 }
0x14b5   : > { %v1963_v16 = vadd.f32 %v1961_v14, %v1953_v11  ;;  %v2847_v14 = vld [vmem:[%s4329_s5] ss:$0 sm:$0xff] }
0x14b7   : > { %2969 = vtanh.f32 %v1963_v16  ;;  %v1970_v4 = vsel %vm1803_vm14, %v1963_v16, %v4166_v44  ;;  %v2233_v44 = vstv %s2232_s15 }
0x14b8   : > { %vm2234_vm2 = vcmp.lt.s32.totalorder %v2233_v44, %v3489_v0 }
0x14bc   : > { %v2120_v53 = vpop.permute.xlu1 %2119  ;;  %v2115_v22 = vpop.permute.xlu0 %2114 }
0x14bd   : > { %v2970_v51 = vpop.eup %2969  ;;  %v2122_v56 = vmul.f32 %v2120_v53, %v2111_v52  ;;  %v2117_v36 = vmul.f32 %v2115_v22, %v2111_v52 }
0x14be   : > { %1966 = vrot.lane.b32.xlu0 %v2970_v51, %s3264_s13 }
0x14bf   : > { %2124 = vrot.lane.b32.xlu1 %v2122_v56, %s3264_s13 }
0x14c6   : > { %2283 = vrot.lane.b32.xlu0 %v2281_v21, %s3264_s13 }
0x14c7   : > { %1971 = vrot.lane.b32.xlu1 %v4135_v20, %s3266_s14 }
0x14ce   : > { %2135 = vrot.lane.b32.xlu0 %v4152_v3, %s3266_s14 }
0x1530   : > { %v1967_v37 = vpop.permute.xlu0 %1966 }
0x1531   : > { %v2125_v47 = vpop.permute.xlu1 %2124  ;;  %v1969_v41 = vmul.f32 %v1967_v37, %v1947_v26 }
0x1532   : > { %v2127_v19 = vadd.f32 %v2125_v47, %v2117_v36 }
0x1534   : > { %2971 = vtanh.f32 %v2127_v19  ;;  %v2134_v26 = vsel %vm2050_vm0, %v2127_v19, %v2115_v22 }
0x1538   : > { %v2284_v42 = vpop.permute.xlu0 %2283 }
0x1539   : > { %v4201_v57 = vadd.f32 %v2284_v42, %v2276_v39  ;;  %v1972_v23 = vpop.permute.xlu1 %1971 }
0x153a   : > { %v2972_v43 = vpop.eup %2971  ;;  %v1974_v20 = vsel %vm1803_vm14, %v1969_v41, %v1972_v23 }
0x153b   : > { %2973 = vtanh.f32 %v4201_v57  ;;  %2130 = vrot.lane.b32.xlu1 %v2972_v43, %s3264_s13  ;;  %1981 = vrot.lane.b32.xlu2 %v1974_v20, %s3266_s14 }
0x1540   : > { %v2136_v33 = vpop.permute.xlu0 %2135 }
0x1541   : > { %v2974_v3 = vpop.eup %2973 }
0x1543   : > { %2289 = vrot.lane.b32.xlu2 %v2974_v3, %s3264_s13 }
0x154b   : > { %2299 = vrot.lane.b32.xlu2 %v4176_v49, %s3266_s14  ;;  %v2293_v49 = vsel %vm2234_vm2, 1, %v3265_v13 }
0x1553   : > { %1976 = vrot.lane.b32.xlu2 %v1970_v4, %s3267_s23 }
0x1595   : > { %v1982_v5 = vpop.permute.xlu2 %1981 }
0x1596   : > { %1984 = vst.msk [vmem:[#allocation2 + $0x10] sm:$0xff] %vm508_vm1, %v1982_v5 }
0x159d   : > { %v2290_v15 = vpop.permute.xlu2 %2289  ;;  %v2149_v46 = vld [vmem:[#allocation2 + $0x10] sm:$0xff] }
0x159e   : > { %2161 = vrot.lane.b32.xlu0 %v2149_v46, %s3264_s13  ;;  %v2292_v24 = vmul.f32 %v2290_v15, %v2270_v17 }
0x15a5   : > { %v2300_v27 = vpop.permute.xlu2 %2299 }
0x15ad   : > { %v2131_v28 = vpop.permute.xlu1 %2130  ;;  %v1977_v29 = vpop.permute.xlu2 %1976 }
0x15ae   : > { %v2133_v31 = vmul.f32 %v2131_v28, %v2111_v52  ;;  %1979 = vst.msk [vmem:[#allocation3 + $0x10] sm:$0xff] %vm508_vm1, %v1977_v29 }
0x15b0   : > { %v2138_v50 = vsel %vm2050_vm0, %v2133_v31, %v2136_v33 }
0x15b1   : > { %2145 = vrot.lane.b32.xlu1 %v2138_v50, %s3266_s14 }
0x15b5   : > { %v2150_v40 = vld [vmem:[#allocation3 + $0x10] sm:$0xff] }
0x15b6   : > { %2197 = vrot.lane.b32.xlu2 %v2150_v40, %s3264_s13  ;;  %v2848_v40 = vld [vmem:[%s4331_s7] ss:$0 sm:$0xff] }
0x15b9   : > { %2295 = vperm.xlu1 %2831, %v2293_v49  }
0x1610   : > { %v2162_v59 = vpop.permute.xlu0 %2161  ;;  %v2198_v53 = vpop.permute.xlu2 %2197 }
0x1623   : > { %v2146_v30 = vpop.permute.xlu1 %2145 }
0x1624   : > { %2148 = vst.msk [vmem:[#allocation2 + $0x8] sm:$0xff] %vm508_vm1, %v2146_v30  ;;  %v2164_v58 = vsel %vm508_vm1, %v2146_v30, %v2162_v59 }
0x1625   : > { %2712 = vmatmul.msk.f32.vlgmr.msrb.gmra.mxu0 %vm600_vm4, %v2164_v58 }
0x162b   : > { %v4228_v25 = vpop.permute.xlu1 %2295  ;;  %v2313_v60 = vld [vmem:[#allocation2 + $0x8] sm:$0xff] }
0x162c   : > { %vm2297_vm3 = vcmp.eq.s32.totalorder %v4228_v25, 1  ;;  %2325 = vrot.lane.b32.xlu1 %v2313_v60, %s3264_s13 }
0x162d   : > { %v2302_v13 = vsel %vm2297_vm3, %v2292_v24, %v2300_v27 }
0x162e   : > { %2309 = vrot.lane.b32.xlu0 %v2302_v13, %s3266_s14 }
0x1634   : > { %2140 = vrot.lane.b32.xlu1 %v2134_v26, %s3267_s23 }
0x169e   : > { %v2326_v61 = vpop.permute.xlu1 %2325 }
0x16a0   : > { %v2310_v48 = vpop.permute.xlu0 %2309 }
0x16a1   : > { %2312 = vst.msk [vmem:[#allocation2] sm:$0xff] %vm508_vm1, %v2310_v48  ;;  %v2328_v35 = vsel %vm508_vm1, %v2310_v48, %v2326_v61 }
0x16a2   : > { %v2188_v63 = vpop.f32.mrf.mxu0  ;;  %2715 = vmatmul.msk.f32.vlgmr.msrb.gmra.mxu3 %vm600_vm4, %v2328_v35 }
0x16a3   : > { %v2189_v1 = vadd.f32 %v2846_v18, %v2188_v63  ;;  %v2298_v18 = vsel %vm2297_vm3, %v4201_v57, %v4198_v38 }
0x16a5   : > { %2975 = vtanh.f32 %v2189_v1  ;;  %v2191_v45 = vmul.f32 0.5, %v2189_v1 }
0x16a6   : > { %v2141_v6 = vpop.permute.xlu1 %2140 }
0x16a7   : > { %2143 = vst.msk [vmem:[#allocation3 + $0x8] sm:$0xff] %vm508_vm1, %v2141_v6  ;;  %2977 = vtanh.f32 %v2191_v45 }
0x16ab   : > { %v2976_v7 = vpop.eup %2975 }
0x16ac   : > { %2202 = vrot.lane.b32.xlu0 %v2976_v7, %s3264_s13 }
0x16ad   : > { %v2978_v62 = vpop.eup %2977 }
0x16ae   : > { %v2314_v8 = vld [vmem:[#allocation3 + $0x8] sm:$0xff]  ;;  %v2193_v9 = vmul.f32 0.5, %v2978_v62 }
0x16af   : > { %2361 = vrot.lane.b32.xlu2 %v2314_v8, %s3264_s13 }
0x16b0   : > { %v2194_v10 = vadd.f32 0.5, %v2193_v9 }
0x16b2   : > { %v2200_v51 = vmul.f32 %v2198_v53, %v2194_v10 }
0x16b7   : > { %2218 = vrot.lane.b32.xlu2 %v2149_v46, %s3266_s14 }
0x16bf   : > { %2382 = vrot.lane.b32.xlu2 %v2313_v60, %s3266_s14 }
0x1709   : > { %v2362_v19 = vpop.permute.xlu2 %2361 }
0x1711   : > { %v2219_v39 = vpop.permute.xlu2 %2218 }
0x1719   : > { %v2383_v41 = vpop.permute.xlu2 %2382 }
0x171e   : > { %v2203_v11 = vpop.permute.xlu0 %2202 }
0x171f   : > { %v2205_v12 = vmul.f32 %v2203_v11, %v2194_v10 }
0x1721   : > { %2207 = vrot.lane.b32.xlu0 %v2205_v12, %s3264_s13 }
0x1725   : > { %v2352_v16 = vpop.f32.mrf.mxu3 }
0x1726   : > { %v2353_v34 = vadd.f32 %v2847_v14, %v2352_v16 }
0x1728   : > { %2979 = vtanh.f32 %v2353_v34  ;;  %v2355_v52 = vmul.f32 0.5, %v2353_v34 }
0x172a   : > { %2981 = vtanh.f32 %v2355_v52 }
0x172e   : > { %v2980_v32 = vpop.eup %2979 }
0x172f   : > { %2366 = vrot.lane.b32.xlu1 %v2980_v32, %s3264_s13 }
0x1730   : > { %v2982_v17 = vpop.eup %2981 }
0x1731   : > { %v2357_v22 = vmul.f32 0.5, %v2982_v17 }
0x1733   : > { %v2358_v36 = vadd.f32 0.5, %v2357_v22 }
0x1735   : > { %v2364_v3 = vmul.f32 %v2362_v19, %v2358_v36 }
0x1793   : > { %v2208_v56 = vpop.permute.xlu0 %2207 }
0x1794   : > { %v2210_v54 = vadd.f32 %v2208_v56, %v2200_v51 }
0x1796   : > { %2983 = vtanh.f32 %v2210_v54  ;;  %v2217_v55 = vsel %vm2050_vm0, %v2210_v54, %v2198_v53 }
0x1797   : > { %2223 = vrot.lane.b32.xlu2 %v2217_v55, %s3267_s23 }
0x179c   : > { %v2984_v21 = vpop.eup %2983 }
0x179d   : > { %2213 = vrot.lane.b32.xlu1 %v2984_v21, %s3264_s13 }
0x17a1   : > { %v2367_v37 = vpop.permute.xlu1 %2366 }
0x17a2   : > { %v2369_v47 = vmul.f32 %v2367_v37, %v2358_v36 }
0x17a4   : > { %2371 = vrot.lane.b32.xlu0 %v2369_v47, %s3264_s13 }
0x17f1   : > { %v2224_v42 = vpop.permute.xlu2 %2223 }
0x17f2   : > { %2226 = vst.msk [vmem:[#allocation3 + $0x10] sm:$0xff] %vm508_vm1, %v2224_v42 }
0x17f9   : > { %v2397_v31 = vld [vmem:[#allocation3 + $0x10] sm:$0xff] }
0x180f   : > { %v2214_v23 = vpop.permute.xlu1 %2213 }
0x1810   : > { %v2216_v43 = vmul.f32 %v2214_v23, %v2194_v10 }
0x1812   : > { %v2221_v20 = vsel %vm2050_vm0, %v2216_v43, %v2219_v39 }
0x1813   : > { %2228 = vrot.lane.b32.xlu0 %v2221_v20, %s3266_s14 }
0x1816   : > { %v2372_v4 = vpop.permute.xlu0 %2371 }
0x1817   : > { %v2374_v5 = vadd.f32 %v2372_v4, %v2364_v3 }
0x1819   : > { %2985 = vtanh.f32 %v2374_v5  ;;  %v2381_v38 = vsel %vm2297_vm3, %v2374_v5, %v2362_v19 }
0x181f   : > { %v2986_v15 = vpop.eup %2985 }
0x1820   : > { %2377 = vrot.lane.b32.xlu1 %v2986_v15, %s3264_s13 }
0x1885   : > { %v2229_v46 = vpop.permute.xlu0 %2228 }
0x1886   : > { %2231 = vst.msk [vmem:[#allocation2 + $0x10] sm:$0xff] %vm508_vm1, %v2229_v46 }
0x188d   : > { %v2396_v27 = vld [vmem:[#allocation2 + $0x10] sm:$0xff] }
0x188e   : > { %2408 = vrot.lane.b32.xlu1 %v2396_v27, %s3264_s13 }
0x1892   : > { %v2378_v28 = vpop.permute.xlu1 %2377 }
0x1893   : > { %v2380_v29 = vmul.f32 %v2378_v28, %v2358_v36 }
0x1895   : > { %v2385_v2 = vsel %vm2297_vm3, %v2380_v29, %v2383_v41 }
0x1896   : > { %2392 = vrot.lane.b32.xlu0 %v2385_v2, %s3266_s14  ;;  %2444 = vrot.lane.b32.xlu1 %v2397_v31, %s3264_s13 }
0x189e   : > { %2465 = vrot.lane.b32.xlu1 %v2396_v27, %s3266_s14 }
0x1900   : > { %v2409_v33 = vpop.permute.xlu1 %2408 }
0x1908   : > { %v2393_v50 = vpop.permute.xlu0 %2392  ;;  %v2445_v48 = vpop.permute.xlu1 %2444 }
0x1909   : > { %2395 = vst.msk [vmem:[#allocation2 + $0x8] sm:$0xff] %vm508_vm1, %v2393_v50  ;;  %v2411_v44 = vsel %vm508_vm1, %v2393_v50, %v2409_v33 }
0x190a   : > { %2716 = vmatmul.msk.f32.vlgmr.msrb.gmra.mxu1 %vm600_vm4, %v2411_v44 }
0x1910   : > { %v2466_v57 = vpop.permute.xlu1 %2465 }
0x1987   : > { %v2435_v49 = vpop.f32.mrf.mxu1 }
0x1988   : > { %v2436_v59 = vadd.f32 %v2848_v40, %v2435_v49 }
0x198a   : > { %2987 = vtanh.f32 %v2436_v59  ;;  %v2438_v58 = vmul.f32 0.5, %v2436_v59 }
0x198c   : > { %2989 = vtanh.f32 %v2438_v58 }
0x1990   : > { %v2988_v30 = vpop.eup %2987 }
0x1991   : > { %2449 = vrot.lane.b32.xlu0 %v2988_v30, %s3264_s13 }
0x1992   : > { %v2990_v24 = vpop.eup %2989 }
0x1993   : > { %v2440_v60 = vmul.f32 0.5, %v2990_v24 }
0x1995   : > { %v2441_v13 = vadd.f32 0.5, %v2440_v60 }
0x1997   : > { %v2447_v35 = vmul.f32 %v2445_v48, %v2441_v13 }
0x1a03   : > { %v2450_v26 = vpop.permute.xlu0 %2449 }
0x1a04   : > { %v2452_v61 = vmul.f32 %v2450_v26, %v2441_v13 }
0x1a06   : > { %2454 = vrot.lane.b32.xlu2 %v2452_v61, %s3264_s13 }
0x1a0e   : > { %2304 = vrot.lane.b32.xlu2 %v2298_v18, %s3267_s23 }
0x1a60   : > { %v2455_v63 = vpop.permute.xlu2 %2454 }
0x1a61   : > { %v2457_v1 = vadd.f32 %v2455_v63, %v2447_v35 }
0x1a63   : > { %2991 = vtanh.f32 %v2457_v1  ;;  %v2464_v6 = vsel %vm2297_vm3, %v2457_v1, %v2445_v48 }
0x1a64   : > { %2470 = vrot.lane.b32.xlu1 %v2464_v6, %s3267_s23 }
0x1a68   : > { %v2305_v7 = vpop.permute.xlu2 %2304 }
0x1a69   : > { %v2992_v8 = vpop.eup %2991  ;;  %2307 = vst.msk [vmem:[#allocation3] sm:$0xff] %vm508_vm1, %v2305_v7 }
0x1a6a   : > { %2460 = vrot.lane.b32.xlu0 %v2992_v8, %s3264_s13 }
0x1a72   : > { %2387 = vrot.lane.b32.xlu0 %v2381_v38, %s3267_s23 }
0x1ad6   : > { %v2471_v45 = vpop.permute.xlu1 %2470 }
0x1ad7   : > { %2473 = vst.msk [vmem:[#allocation3 + $0x10] sm:$0xff] %vm508_vm1, %v2471_v45 }
0x1adc   : > { %v2461_v62 = vpop.permute.xlu0 %2460 }
0x1add   : > { %v2463_v9 = vmul.f32 %v2461_v62, %v2441_v13 }
0x1adf   : > { %v2468_v10 = vsel %vm2297_vm3, %v2463_v9, %v2466_v57 }
0x1ae0   : > { %2475 = vrot.lane.b32.xlu2 %v2468_v10, %s3266_s14 }
0x1ae4   : > { %v2388_v11 = vpop.permute.xlu0 %2387 }
0x1ae5   : > { %2390 = vst.msk [vmem:[#allocation3 + $0x8] sm:$0xff] %vm508_vm1, %v2388_v11 }
0x1b3a   : > { %v2476_v12 = vpop.permute.xlu2 %2475 }
0x1b3b   : > { %2478 = vst.msk [vmem:[#allocation2 + $0x10] sm:$0xff] %vm508_vm1, %v2476_v12 }
0x1b3c PF: > { %p2717_p3 = scmp.ne.s32.totalorder %s3362_s29, 2 }
0x1b3e   : > { %2482 = sbr.rel (%p2717_p3) target bundleno = 7358 (0x1cbe), region = 100 }
0x1b43   : > { %v2483_v14 = vstv %s3484_s4  ;;  %v2496_v16 = vld [vmem:[#allocation14 + $0x18] sm:$0xff]  ;;  %v2495_v34 = vld [vmem:[#allocation14 + $0x10] sm:$0xff]  ;;  %v3268_v32 = vmov 0   ;;  %v2494_v52 = vld [vmem:[#allocation14 + $0x8] sm:$0xff]  ;;  %vm2501_vm1 = vcmask 261120  }
0x1b44   : > { %2993 = vset.pattern.permute.xlu0 %v3268_v32  ;;  %vm2484_vm4 = vcmp.eq.s32.totalorder %v3489_v0, %v2483_v14  ;;  %2517 = vmatpush.msra.mxu0 %v2496_v16  ;;  %v2493_v53 = vld [vmem:[#allocation14] sm:$0xff]  ;;  %v2529_v51 = vld [vmem:[#allocation15 + $0x18] sm:$0xff]  ;;  %v2528_v17 = vld [vmem:[#allocation15 + $0x10] sm:$0xff] }
0x1b45   : > { %v2487_v25 = vsel %vm2484_vm4, 1, %v3268_v32  ;;  %2549 = vmatpush.msra.mxu1 %v2529_v51  ;;  %v2486_v56 = vld [vmem:[#allocation2 + $0x10] sm:$0xff]  ;;  %v2527_v21 = vld [vmem:[#allocation15 + $0x8] sm:$0xff]  ;;  %v2994_v22 = vld [vmem:[%s4333_s9] ss:$0 sm:$0xff] }
0x1b46   : > { %2489 = vperm.xlu0 %2993, %v2487_v25   ;;  %2518 = vmatpush.msra.mxu0 %v2495_v34  ;;  %v2526_v0 = vld [vmem:[#allocation15] sm:$0xff]  ;;  %v2995_v19 = vld [vmem:[%s4335_s11] ss:$0 sm:$0xff] }
0x1b47   : > { %2550 = vmatpush.msra.mxu1 %v2528_v17 }
0x1b48   : > { %2519 = vmatpush.msra.mxu0 %v2494_v52 }
0x1b49   : > { %2551 = vmatpush.msra.mxu1 %v2527_v21 }
0x1b4a   : > { %2520 = vmatpush.msra.mxu0 %v2493_v53 }
0x1b4b   : > { %2552 = vmatpush.msra.mxu1 %v2526_v0 }
0x1bb8   : > { %v2490_v54 = vpop.permute.xlu0 %2489 }
0x1bb9   : > { %vm2491_vm5 = vcmp.eq.s32.totalorder %v2490_v54, 1 }
0x1bba   : > { %v2492_v55 = vsel %vm2491_vm5, %v2486_v56, 0.0 }
0x1bbb   : > { %2718 = vmatmul.msk.f32.vlgmr.msra.gmra.mxu0 %vm2501_vm1, %v2492_v55 }
0x1c38   : > { %v2522_v36 = vpop.f32.mrf.mxu0 }
0x1c39   : > { %v2523_v37 = vadd.f32 %v2994_v22, %v2522_v36 }
0x1c3b   : > { %v2525_v47 = vmax.f32 %v2523_v37, 0.0 }
0x1c3d   : > { %2719 = vmatmul.msk.f32.vlgmr.msra.gmra.mxu1 %vm2501_vm1, %v2525_v47 }
0x1cba   : > { %v2554_v39 = vpop.f32.mrf.mxu1 }
0x1cbb   : > { %v2555_v41 = vadd.f32 %v2995_v19, %v2554_v39 }
0x1cbd   : > { %2557 = vst [vmem:[#allocation17] sm:$0xff] %v2555_v41 }
0x1cbe PF: > { %p2782_p4 = scmp.eq.s32.totalorder %s3362_s29, 2  ;;  %s3269_s17 = smov [#allocation17]  }
0x1cbf   : > { %s2564_s30 = sshll.u32 %s3269_s17, 4  ;;  %s2566_s0 = sshll.u32 %s4336_s12, 4  ;;  %s2565_s30 = int_to_ptr.vmem [resolvable:$true] %s2564_s30  ;;  %s2567_s0 = int_to_ptr.hbm [resolvable:$true] %s2566_s0 }
0x1cc0   : > { %2748 = dma.vmem_to_hbm [thread:$0]  (%p2782_p4), %s2565_s30, 128, %s2567_s0, [#allocation8]  }
0x1cc1   : > { %3237 = dma.done.wait (%p2782_p4), [#allocation8], 128  }
0x1cc2   : > { %3239 = vsyncadd (%p2782_p4), [#allocation8], 4294967168 }
0x1cc3 PF: > { %p27_p12 = scmp.ge.s32.totalorder %s3418_s20, 5   ;;  %s4349_s23 = smov %s3246_s24 }
0x1cc4   : > { %s4350_s24 = smov %s3250_s25  ;;  %s4351_s25 = smov %s3429_s19 }
0x1cc5   : > { %s4352_s26 = smov %s3418_s20  ;;  %29 = sbr.rel (!%p27_p12) target bundleno = 11 (0xb), region = 145 }
0x1cca   :  { %2580 = vsyncpa [#allocation7], 1 }
0x1ccb   :  { %2582 = vsyncpa [#allocation7 + $0x1], 1 }
0x1ccc   :  { %2583 = vsyncpa [#allocation10], 1 }
0x1ccd   :  { %2584 = vsyncpa [#allocation13], 1 }
0x1cce   :  { %2585 = vsyncpa [#allocation16], 1 }
0x1ccf   :  { %2586 = vsyncpa [#allocation8], 1 }
0x1cd0   :  { %2588 = vsyncpa [#allocation8 + $0x1], 1 }

</bundles_post_ra>
